<compile_context>
chip_gen: v7x
topology: tpu7x:2x2x1
jax: 0.10.0
libtpu: 0.0.40
codegen_flags: <defaults>
</compile_context>

<pallas_src>
import math
import jax
import jax.numpy as jnp
from jax.experimental import pallas as pl
from jax.experimental.pallas import tpu as pltpu


def _round_up(x, m):
    return ((x + m - 1) // m) * m


# ----------------------------------------------------------------------------
# Fused kernel: all GRU layers (wavefront) + final Linear in one call.
#
#   x_ref    : (S*Bp, P)   bf16  time-major flattened input, row = t*Bp + b
#   h0_ref   : (L, Bp, P)  f32   initial hidden state per layer (zero padded)
#   wih_ref  : (L, P, 3P)  bf16  input->gate weights (transposed, per-gate pad)
#   whh_ref  : (L, P, 3P)  bf16  hidden->gate weights
#   bihf_ref : (L, 1, 3P)  f32   b_ih with b_hh folded in for r,z; b_ih for n
#   bhhn_ref : (L, 1, P)   f32   n-gate b_hh (must stay inside r * (...))
#   fcw_ref  : (P, Op)     bf16  fc weight (transposed, padded)
#   fcb_ref  : (1, Op)     f32
#   out_ref  : (Bp, Op)    f32   pred (padded)
#   gx0_ref  : (S*Bp, 3P)  f32   scratch: hoisted layer-0 input projection
# ----------------------------------------------------------------------------
def fused_gru_kernel(x_ref, h0_ref, wih_ref, whh_ref, bihf_ref, bhhn_ref,
                     fcw_ref, fcb_ref, out_ref, gx0_ref):
    L, Bp, P = h0_ref.shape
    S = x_ref.shape[0] // Bp

    # Hoisted layer-0 input projection for ALL timesteps: one GEMM, bias
    # (with r/z b_hh folded in) added once for the whole sequence.
    gx0_ref[...] = (
        jnp.dot(x_ref[...], wih_ref[0], preferred_element_type=jnp.float32)
        + bihf_ref[0])

    # Hoist per-layer bias broadcasts once (the wavefront below is fully
    # unrolled; broadcast_in_dim is not CSE'd so never emit it per step).
    bihf_b = [None] + [jnp.broadcast_to(bihf_ref[l], (Bp, 3 * P))
                       for l in range(1, L)]
    bhhn_b = [jnp.broadcast_to(bhhn_ref[l], (Bp, P)) for l in range(L)]

    def gru_cell(gx, h_prev, l):
        # gx: (Bp, 3P) f32 = x @ W_ih^T + b_ih  (+ b_hh folded for r,z)
        gh = jnp.dot(h_prev.astype(jnp.bfloat16), whh_ref[l],
                     preferred_element_type=jnp.float32)          # (Bp, 3P)
        # PyTorch GRU gate order: r, z, n (each gate padded to P lanes).
        r = jax.nn.sigmoid(gx[:, 0:P] + gh[:, 0:P])
        z = jax.nn.sigmoid(gx[:, P:2 * P] + gh[:, P:2 * P])
        n = jnp.tanh(gx[:, 2 * P:3 * P] + r * (gh[:, 2 * P:3 * P] + bhhn_b[l]))
        # h_new = (1-z)*n + z*h_prev, fused form (one fewer VALU op).
        return n + z * (h_prev - n)

    # Wavefront: macro step k runs layer l at timestep t = k - l.  Every
    # layer-step in a macro step depends only on the previous macro step's
    # carries, so they are mutually independent (ILP); the dependent chain is
    # S + L - 1 cells instead of L * S.
    h = [h0_ref[l] for l in range(L)]
    for k in range(S + L - 1):
        h_old = list(h)                      # snapshot of previous macro step
        for l in range(L):
            t = k - l
            if 0 <= t < S:
                if l == 0:
                    gx = gx0_ref[pl.ds(t * Bp, Bp), :]
                else:
                    # h_old[l-1] is layer l-1's output at timestep t.
                    gx = (jnp.dot(h_old[l - 1].astype(jnp.bfloat16),
                                  wih_ref[l],
                                  preferred_element_type=jnp.float32)
                          + bihf_b[l])
                h[l] = gru_cell(gx, h_old[l], l)

    # Final Linear on the last layer's last-timestep hidden state
    # (== fc(output)[:, -1, :]).
    out_ref[...] = (
        jnp.dot(h[L - 1].astype(jnp.bfloat16), fcw_ref[...],
                preferred_element_type=jnp.float32)
        + fcb_ref[...])


# ----------------------------------------------------------------------------
# Host-side wrapper: pad / pack parameters, launch the single fused kernel.
# ----------------------------------------------------------------------------
def _rnn_forward(x, params, h0):
    """
    x      : (B, S, input_dim)   batch-first (PyTorch convention)
    params : dict of per-layer GRU weights + fc weights (PyTorch layout)
    h0     : (num_layer, B, H)   initial hidden states
    returns (B, output_dim)
    """
    B, S, D = x.shape
    L, _, H = h0.shape
    O = params["fc_w"].shape[0]

    P = _round_up(max(D, H), 128)     # common padded feature width (lanes)
    G = 3 * P                         # padded gate width
    Bp = _round_up(B, 8)              # padded batch (sublanes)
    Op = _round_up(O, 128)            # padded output width (lanes)

    # Time-major, padded, flattened input (tiny; pad+transpose+reshape fuse).
    x_tm = jnp.transpose(x, (1, 0, 2)).astype(jnp.float32)          # (S, B, D)
    x_pad = jnp.zeros((S, Bp, P), jnp.float32).at[:, :B, :D].set(x_tm)
    x_flat = x_pad.reshape(S * Bp, P).astype(jnp.bfloat16)

    h0_pad = (jnp.zeros((L, Bp, P), jnp.float32)
              .at[:, :B, :H].set(h0.astype(jnp.float32)))

    def pack_w(w, in_d):
        # w: (3H, in_d) PyTorch layout -> (P, 3P), transposed, per-gate padded.
        out = jnp.zeros((P, G), jnp.float32)
        for g in range(3):
            out = out.at[:in_d, g * P:g * P + H].set(w[g * H:(g + 1) * H, :].T)
        return out

    def pack_bihf(b_ih, b_hh):
        # r,z gates: b_ih + b_hh folded (they always appear summed);
        # n gate: b_ih only (b_hh_n must stay inside r * (W_hn h + b_hn)).
        out = jnp.zeros((1, G), jnp.float32)
        for g in range(2):
            out = out.at[0, g * P:g * P + H].set(
                b_ih[g * H:(g + 1) * H] + b_hh[g * H:(g + 1) * H])
        out = out.at[0, 2 * P:2 * P + H].set(b_ih[2 * H:3 * H])
        return out

    def pack_bhn(b_hh):
        return jnp.zeros((1, P), jnp.float32).at[0, :H].set(b_hh[2 * H:3 * H])

    wih_all = jnp.stack([pack_w(params[f"w_ih_l{l}"], D if l == 0 else H)
                         for l in range(L)]).astype(jnp.bfloat16)
    whh_all = jnp.stack([pack_w(params[f"w_hh_l{l}"], H)
                         for l in range(L)]).astype(jnp.bfloat16)
    bihf_all = jnp.stack([pack_bihf(params[f"b_ih_l{l}"], params[f"b_hh_l{l}"])
                          for l in range(L)])
    bhhn_all = jnp.stack([pack_bhn(params[f"b_hh_l{l}"]) for l in range(L)])

    fcw = (jnp.zeros((P, Op), jnp.float32)
           .at[:H, :O].set(params["fc_w"].T).astype(jnp.bfloat16))
    fcb = jnp.zeros((1, Op), jnp.float32).at[0, :O].set(params["fc_b"])

    out = pl.pallas_call(
        fused_gru_kernel,
        out_shape=jax.ShapeDtypeStruct((Bp, Op), jnp.float32),
        in_specs=[
            pl.BlockSpec((S * Bp, P), lambda: (0, 0)),        # x (flattened)
            pl.BlockSpec((L, Bp, P), lambda: (0, 0, 0)),      # h0
            pl.BlockSpec((L, P, G), lambda: (0, 0, 0)),       # W_ih (stacked)
            pl.BlockSpec((L, P, G), lambda: (0, 0, 0)),       # W_hh (stacked)
            pl.BlockSpec((L, 1, G), lambda: (0, 0, 0)),       # b_ih (folded)
            pl.BlockSpec((L, 1, P), lambda: (0, 0, 0)),       # b_hh (n gate)
            pl.BlockSpec((P, Op), lambda: (0, 0)),            # fc W^T
            pl.BlockSpec((1, Op), lambda: (0, 0)),            # fc b
        ],
        out_specs=pl.BlockSpec((Bp, Op), lambda: (0, 0)),
        scratch_shapes=[
            pltpu.VMEM((S * Bp, G), jnp.float32),             # hoisted gx0
        ],
    )(x_flat, h0_pad, wih_all, whh_all, bihf_all, bhhn_all, fcw, fcb)

    return out[:B, :O]


rnn_forward = jax.jit(_rnn_forward)


def init_params(key, input_dim, hidden_dim, output_dim, num_layer):
    """PyTorch-style uniform(-1/sqrt(H), 1/sqrt(H)) init, deterministic."""
    params = {}
    k = 1.0 / math.sqrt(hidden_dim)
    keys = jax.random.split(key, 4 * num_layer + 2)
    idx = 0
    for l in range(num_layer):
        in_d = input_dim if l == 0 else hidden_dim
        params[f"w_ih_l{l}"] = jax.random.uniform(
            keys[idx], (3 * hidden_dim, in_d), jnp.float32, -k, k); idx += 1
        params[f"w_hh_l{l}"] = jax.random.uniform(
            keys[idx], (3 * hidden_dim, hidden_dim), jnp.float32, -k, k); idx += 1
        params[f"b_ih_l{l}"] = jax.random.uniform(
            keys[idx], (3 * hidden_dim,), jnp.float32, -k, k); idx += 1
        params[f"b_hh_l{l}"] = jax.random.uniform(
            keys[idx], (3 * hidden_dim,), jnp.float32, -k, k); idx += 1
    params["fc_w"] = jax.random.uniform(
        keys[idx], (output_dim, hidden_dim), jnp.float32, -k, k); idx += 1
    params["fc_b"] = jax.random.uniform(
        keys[idx], (output_dim,), jnp.float32, -k, k)
    return params


if __name__ == "__main__":
    input_dim, hidden_dim, output_dim, num_layer = 16, 32, 8, 2
    batch, seq = 2, 8

    key = jax.random.PRNGKey(0)
    kx, kh, kp = jax.random.split(key, 3)

    x = jax.random.normal(kx, (batch, seq, input_dim), jnp.float32)
    h0 = jax.random.normal(kh, (num_layer, batch, hidden_dim), jnp.float32)
    params = init_params(kp, input_dim, hidden_dim, output_dim, num_layer)

    pred = rnn_forward(x, params, h0)
    jax.block_until_ready(pred)
    assert pred.shape == (batch, output_dim)
    print("KERNEL_OK")
</pallas_src>

<mosaic_0001>
module attributes {stable_mosaic.version = 11 : i64} {
  func.func @fused_gru_kernel(%arg0: memref<64x128xbf16, #tpu.memory_space<vmem>>, %arg1: memref<2x8x128xf32, #tpu.memory_space<vmem>>, %arg2: memref<2x128x384xbf16, #tpu.memory_space<vmem>>, %arg3: memref<2x128x384xbf16, #tpu.memory_space<vmem>>, %arg4: memref<2x1x384xf32, #tpu.memory_space<vmem>>, %arg5: memref<2x1x128xf32, #tpu.memory_space<vmem>>, %arg6: memref<128x128xbf16, #tpu.memory_space<vmem>>, %arg7: memref<1x128xf32, #tpu.memory_space<vmem>>, %arg8: memref<8x128xf32, #tpu.memory_space<vmem>>, %arg9: memref<64x384xf32, #tpu.memory_space<vmem>>) attributes {dimension_semantics = [], scalar_prefetch = 0 : i64, scratch_operands = 1 : i64, tpu.core_type = #tpu.core_type<tc>} {
    %c0 = arith.constant 0 : index
    %c0_0 = arith.constant 0 : index
    %0 = vector.load %arg0[%c0, %c0_0] : memref<64x128xbf16, #tpu.memory_space<vmem>>, vector<64x128xbf16>
    %c0_1 = arith.constant 0 : index
    %c0_2 = arith.constant 0 : index
    %c0_3 = arith.constant 0 : index
    %1 = vector.load %arg2[%c0_1, %c0_2, %c0_3] : memref<2x128x384xbf16, #tpu.memory_space<vmem>>, vector<1x128x384xbf16>
    %2 = vector.shape_cast %1 : vector<1x128x384xbf16> to vector<128x384xbf16>
    %cst = arith.constant dense<0.000000e+00> : vector<64x384xf32>
    %3 = tpu.matmul %0, %2, %cst {dimension_numbers = #tpu.dot_dimension_numbers<[1], [0], [0], [1], [0, 0, 1, 1], [], []>} : vector<64x128xbf16>, vector<128x384xbf16>, vector<64x384xf32> -> vector<64x384xf32>
    %c0_4 = arith.constant 0 : index
    %c0_5 = arith.constant 0 : index
    %c0_6 = arith.constant 0 : index
    %4 = vector.load %arg4[%c0_4, %c0_5, %c0_6] : memref<2x1x384xf32, #tpu.memory_space<vmem>>, vector<1x1x384xf32>
    %5 = vector.shape_cast %4 : vector<1x1x384xf32> to vector<1x384xf32>
    %6 = vector.broadcast %5 : vector<1x384xf32> to vector<64x384xf32>
    %7 = arith.addf %3, %6 : vector<64x384xf32>
    %c0_7 = arith.constant 0 : index
    %c0_8 = arith.constant 0 : index
    %8 = vector.load %arg9[%c0_7, %c0_8] : memref<64x384xf32, #tpu.memory_space<vmem>>, vector<64x384xf32>
    tpu.vector_store %arg9[%c0_7, %c0_8], %7 {strides = array<i32>} : memref<64x384xf32, #tpu.memory_space<vmem>>, vector<64x384xf32>,
    %c1 = arith.constant 1 : index
    %c0_9 = arith.constant 0 : index
    %c0_10 = arith.constant 0 : index
    %9 = vector.load %arg4[%c1, %c0_9, %c0_10] : memref<2x1x384xf32, #tpu.memory_space<vmem>>, vector<1x1x384xf32>
    %10 = vector.shape_cast %9 : vector<1x1x384xf32> to vector<1x384xf32>
    %11 = vector.shape_cast %10 : vector<1x384xf32> to vector<1x384xf32>
    %12 = vector.broadcast %11 : vector<1x384xf32> to vector<8x384xf32>
    %c0_11 = arith.constant 0 : index
    %c0_12 = arith.constant 0 : index
    %c0_13 = arith.constant 0 : index
    %13 = vector.load %arg5[%c0_11, %c0_12, %c0_13] : memref<2x1x128xf32, #tpu.memory_space<vmem>>, vector<1x1x128xf32>
    %14 = vector.shape_cast %13 : vector<1x1x128xf32> to vector<1x128xf32>
    %15 = vector.shape_cast %14 : vector<1x128xf32> to vector<1x128xf32>
    %16 = vector.broadcast %15 : vector<1x128xf32> to vector<8x128xf32>
    %c1_14 = arith.constant 1 : index
    %c0_15 = arith.constant 0 : index
    %c0_16 = arith.constant 0 : index
    %17 = vector.load %arg5[%c1_14, %c0_15, %c0_16] : memref<2x1x128xf32, #tpu.memory_space<vmem>>, vector<1x1x128xf32>
    %18 = vector.shape_cast %17 : vector<1x1x128xf32> to vector<1x128xf32>
    %19 = vector.shape_cast %18 : vector<1x128xf32> to vector<1x128xf32>
    %20 = vector.broadcast %19 : vector<1x128xf32> to vector<8x128xf32>
    %c0_17 = arith.constant 0 : index
    %c0_18 = arith.constant 0 : index
    %c0_19 = arith.constant 0 : index
    %21 = vector.load %arg1[%c0_17, %c0_18, %c0_19] : memref<2x8x128xf32, #tpu.memory_space<vmem>>, vector<1x8x128xf32>
    %22 = vector.shape_cast %21 : vector<1x8x128xf32> to vector<8x128xf32>
    %c1_20 = arith.constant 1 : index
    %c0_21 = arith.constant 0 : index
    %c0_22 = arith.constant 0 : index
    %23 = vector.load %arg1[%c1_20, %c0_21, %c0_22] : memref<2x8x128xf32, #tpu.memory_space<vmem>>, vector<1x8x128xf32>
    %24 = vector.shape_cast %23 : vector<1x8x128xf32> to vector<8x128xf32>
    %c0_23 = arith.constant 0 : index
    %c0_24 = arith.constant 0 : index
    %25 = vector.load %arg9[%c0_23, %c0_24] : memref<64x384xf32, #tpu.memory_space<vmem>>, vector<8x384xf32>
    %26 = arith.truncf %22 : vector<8x128xf32> to vector<8x128xbf16>
    %c0_25 = arith.constant 0 : index
    %c0_26 = arith.constant 0 : index
    %c0_27 = arith.constant 0 : index
    %27 = vector.load %arg3[%c0_25, %c0_26, %c0_27] : memref<2x128x384xbf16, #tpu.memory_space<vmem>>, vector<1x128x384xbf16>
    %28 = vector.shape_cast %27 : vector<1x128x384xbf16> to vector<128x384xbf16>
    %cst_28 = arith.constant dense<0.000000e+00> : vector<8x384xf32>
    %29 = tpu.matmul %26, %28, %cst_28 {dimension_numbers = #tpu.dot_dimension_numbers<[1], [0], [0], [1], [0, 0, 1, 1], [], []>} : vector<8x128xbf16>, vector<128x384xbf16>, vector<8x384xf32> -> vector<8x384xf32>
    %30 = vector.extract_strided_slice %25 {offsets = [0, 0], sizes = [8, 128], strides = [1, 1]} : vector<8x384xf32> to vector<8x128xf32>
    %31 = vector.extract_strided_slice %29 {offsets = [0, 0], sizes = [8, 128], strides = [1, 1]} : vector<8x384xf32> to vector<8x128xf32>
    %32 = arith.addf %30, %31 : vector<8x128xf32>
    %33 = arith.negf %32 : vector<8x128xf32>
    %34 = math.exp %33 : vector<8x128xf32>
    %cst_29 = arith.constant 1.000000e+00 : f32
    %35 = vector.broadcast %cst_29 : f32 to vector<8x128xf32>
    %36 = arith.addf %35, %34 : vector<8x128xf32>
    %37 = arith.divf %35, %36 : vector<8x128xf32>
    %38 = vector.extract_strided_slice %25 {offsets = [0, 128], sizes = [8, 128], strides = [1, 1]} : vector<8x384xf32> to vector<8x128xf32>
    %39 = vector.extract_strided_slice %29 {offsets = [0, 128], sizes = [8, 128], strides = [1, 1]} : vector<8x384xf32> to vector<8x128xf32>
    %40 = arith.addf %38, %39 : vector<8x128xf32>
    %41 = arith.negf %40 : vector<8x128xf32>
    %42 = math.exp %41 : vector<8x128xf32>
    %cst_30 = arith.constant 1.000000e+00 : f32
    %43 = vector.broadcast %cst_30 : f32 to vector<8x128xf32>
    %44 = arith.addf %43, %42 : vector<8x128xf32>
    %45 = arith.divf %43, %44 : vector<8x128xf32>
    %46 = vector.extract_strided_slice %25 {offsets = [0, 256], sizes = [8, 128], strides = [1, 1]} : vector<8x384xf32> to vector<8x128xf32>
    %47 = vector.extract_strided_slice %29 {offsets = [0, 256], sizes = [8, 128], strides = [1, 1]} : vector<8x384xf32> to vector<8x128xf32>
    %48 = arith.addf %47, %16 : vector<8x128xf32>
    %49 = arith.mulf %37, %48 : vector<8x128xf32>
    %50 = arith.addf %46, %49 : vector<8x128xf32>
    %51 = math.tanh %50 : vector<8x128xf32>
    %52 = arith.subf %22, %51 : vector<8x128xf32>
    %53 = arith.mulf %45, %52 : vector<8x128xf32>
    %54 = arith.addf %51, %53 : vector<8x128xf32>
    %c8 = arith.constant 8 : index
    %c0_31 = arith.constant 0 : index
    %55 = vector.load %arg9[%c8, %c0_31] : memref<64x384xf32, #tpu.memory_space<vmem>>, vector<8x384xf32>
    %56 = arith.truncf %54 : vector<8x128xf32> to vector<8x128xbf16>
    %c0_32 = arith.constant 0 : index
    %c0_33 = arith.constant 0 : index
    %c0_34 = arith.constant 0 : index
    %57 = vector.load %arg3[%c0_32, %c0_33, %c0_34] : memref<2x128x384xbf16, #tpu.memory_space<vmem>>, vector<1x128x384xbf16>
    %58 = vector.shape_cast %57 : vector<1x128x384xbf16> to vector<128x384xbf16>
    %cst_35 = arith.constant dense<0.000000e+00> : vector<8x384xf32>
    %59 = tpu.matmul %56, %58, %cst_35 {dimension_numbers = #tpu.dot_dimension_numbers<[1], [0], [0], [1], [0, 0, 1, 1], [], []>} : vector<8x128xbf16>, vector<128x384xbf16>, vector<8x384xf32> -> vector<8x384xf32>
    %60 = vector.extract_strided_slice %55 {offsets = [0, 0], sizes = [8, 128], strides = [1, 1]} : vector<8x384xf32> to vector<8x128xf32>
    %61 = vector.extract_strided_slice %59 {offsets = [0, 0], sizes = [8, 128], strides = [1, 1]} : vector<8x384xf32> to vector<8x128xf32>
    %62 = arith.addf %60, %61 : vector<8x128xf32>
    %63 = arith.negf %62 : vector<8x128xf32>
    %64 = math.exp %63 : vector<8x128xf32>
    %cst_36 = arith.constant 1.000000e+00 : f32
    %65 = vector.broadcast %cst_36 : f32 to vector<8x128xf32>
    %66 = arith.addf %65, %64 : vector<8x128xf32>
    %67 = arith.divf %65, %66 : vector<8x128xf32>
    %68 = vector.extract_strided_slice %55 {offsets = [0, 128], sizes = [8, 128], strides = [1, 1]} : vector<8x384xf32> to vector<8x128xf32>
    %69 = vector.extract_strided_slice %59 {offsets = [0, 128], sizes = [8, 128], strides = [1, 1]} : vector<8x384xf32> to vector<8x128xf32>
    %70 = arith.addf %68, %69 : vector<8x128xf32>
    %71 = arith.negf %70 : vector<8x128xf32>
    %72 = math.exp %71 : vector<8x128xf32>
    %cst_37 = arith.constant 1.000000e+00 : f32
    %73 = vector.broadcast %cst_37 : f32 to vector<8x128xf32>
    %74 = arith.addf %73, %72 : vector<8x128xf32>
    %75 = arith.divf %73, %74 : vector<8x128xf32>
    %76 = vector.extract_strided_slice %55 {offsets = [0, 256], sizes = [8, 128], strides = [1, 1]} : vector<8x384xf32> to vector<8x128xf32>
    %77 = vector.extract_strided_slice %59 {offsets = [0, 256], sizes = [8, 128], strides = [1, 1]} : vector<8x384xf32> to vector<8x128xf32>
    %78 = arith.addf %77, %16 : vector<8x128xf32>
    %79 = arith.mulf %67, %78 : vector<8x128xf32>
    %80 = arith.addf %76, %79 : vector<8x128xf32>
    %81 = math.tanh %80 : vector<8x128xf32>
    %82 = arith.subf %54, %81 : vector<8x128xf32>
    %83 = arith.mulf %75, %82 : vector<8x128xf32>
    %84 = arith.addf %81, %83 : vector<8x128xf32>
    %85 = arith.truncf %54 : vector<8x128xf32> to vector<8x128xbf16>
    %c1_38 = arith.constant 1 : index
    %c0_39 = arith.constant 0 : index
    %c0_40 = arith.constant 0 : index
    %86 = vector.load %arg2[%c1_38, %c0_39, %c0_40] : memref<2x128x384xbf16, #tpu.memory_space<vmem>>, vector<1x128x384xbf16>
    %87 = vector.shape_cast %86 : vector<1x128x384xbf16> to vector<128x384xbf16>
    %cst_41 = arith.constant dense<0.000000e+00> : vector<8x384xf32>
    %88 = tpu.matmul %85, %87, %cst_41 {dimension_numbers = #tpu.dot_dimension_numbers<[1], [0], [0], [1], [0, 0, 1, 1], [], []>} : vector<8x128xbf16>, vector<128x384xbf16>, vector<8x384xf32> -> vector<8x384xf32>
    %89 = arith.addf %88, %12 : vector<8x384xf32>
    %90 = arith.truncf %24 : vector<8x128xf32> to vector<8x128xbf16>
    %c1_42 = arith.constant 1 : index
    %c0_43 = arith.constant 0 : index
    %c0_44 = arith.constant 0 : index
    %91 = vector.load %arg3[%c1_42, %c0_43, %c0_44] : memref<2x128x384xbf16, #tpu.memory_space<vmem>>, vector<1x128x384xbf16>
    %92 = vector.shape_cast %91 : vector<1x128x384xbf16> to vector<128x384xbf16>
    %cst_45 = arith.constant dense<0.000000e+00> : vector<8x384xf32>
    %93 = tpu.matmul %90, %92, %cst_45 {dimension_numbers = #tpu.dot_dimension_numbers<[1], [0], [0], [1], [0, 0, 1, 1], [], []>} : vector<8x128xbf16>, vector<128x384xbf16>, vector<8x384xf32> -> vector<8x384xf32>
    %94 = vector.extract_strided_slice %89 {offsets = [0, 0], sizes = [8, 128], strides = [1, 1]} : vector<8x384xf32> to vector<8x128xf32>
    %95 = vector.extract_strided_slice %93 {offsets = [0, 0], sizes = [8, 128], strides = [1, 1]} : vector<8x384xf32> to vector<8x128xf32>
    %96 = arith.addf %94, %95 : vector<8x128xf32>
    %97 = arith.negf %96 : vector<8x128xf32>
    %98 = math.exp %97 : vector<8x128xf32>
    %cst_46 = arith.constant 1.000000e+00 : f32
    %99 = vector.broadcast %cst_46 : f32 to vector<8x128xf32>
    %100 = arith.addf %99, %98 : vector<8x128xf32>
    %101 = arith.divf %99, %100 : vector<8x128xf32>
    %102 = vector.extract_strided_slice %89 {offsets = [0, 128], sizes = [8, 128], strides = [1, 1]} : vector<8x384xf32> to vector<8x128xf32>
    %103 = vector.extract_strided_slice %93 {offsets = [0, 128], sizes = [8, 128], strides = [1, 1]} : vector<8x384xf32> to vector<8x128xf32>
    %104 = arith.addf %102, %103 : vector<8x128xf32>
    %105 = arith.negf %104 : vector<8x128xf32>
    %106 = math.exp %105 : vector<8x128xf32>
    %cst_47 = arith.constant 1.000000e+00 : f32
    %107 = vector.broadcast %cst_47 : f32 to vector<8x128xf32>
    %108 = arith.addf %107, %106 : vector<8x128xf32>
    %109 = arith.divf %107, %108 : vector<8x128xf32>
    %110 = vector.extract_strided_slice %89 {offsets = [0, 256], sizes = [8, 128], strides = [1, 1]} : vector<8x384xf32> to vector<8x128xf32>
    %111 = vector.extract_strided_slice %93 {offsets = [0, 256], sizes = [8, 128], strides = [1, 1]} : vector<8x384xf32> to vector<8x128xf32>
    %112 = arith.addf %111, %20 : vector<8x128xf32>
    %113 = arith.mulf %101, %112 : vector<8x128xf32>
    %114 = arith.addf %110, %113 : vector<8x128xf32>
    %115 = math.tanh %114 : vector<8x128xf32>
    %116 = arith.subf %24, %115 : vector<8x128xf32>
    %117 = arith.mulf %109, %116 : vector<8x128xf32>
    %118 = arith.addf %115, %117 : vector<8x128xf32>
    %c16 = arith.constant 16 : index
    %c0_48 = arith.constant 0 : index
    %119 = vector.load %arg9[%c16, %c0_48] : memref<64x384xf32, #tpu.memory_space<vmem>>, vector<8x384xf32>
    %120 = arith.truncf %84 : vector<8x128xf32> to vector<8x128xbf16>
    %c0_49 = arith.constant 0 : index
    %c0_50 = arith.constant 0 : index
    %c0_51 = arith.constant 0 : index
    %121 = vector.load %arg3[%c0_49, %c0_50, %c0_51] : memref<2x128x384xbf16, #tpu.memory_space<vmem>>, vector<1x128x384xbf16>
    %122 = vector.shape_cast %121 : vector<1x128x384xbf16> to vector<128x384xbf16>
    %cst_52 = arith.constant dense<0.000000e+00> : vector<8x384xf32>
    %123 = tpu.matmul %120, %122, %cst_52 {dimension_numbers = #tpu.dot_dimension_numbers<[1], [0], [0], [1], [0, 0, 1, 1], [], []>} : vector<8x128xbf16>, vector<128x384xbf16>, vector<8x384xf32> -> vector<8x384xf32>
    %124 = vector.extract_strided_slice %119 {offsets = [0, 0], sizes = [8, 128], strides = [1, 1]} : vector<8x384xf32> to vector<8x128xf32>
    %125 = vector.extract_strided_slice %123 {offsets = [0, 0], sizes = [8, 128], strides = [1, 1]} : vector<8x384xf32> to vector<8x128xf32>
    %126 = arith.addf %124, %125 : vector<8x128xf32>
    %127 = arith.negf %126 : vector<8x128xf32>
    %128 = math.exp %127 : vector<8x128xf32>
    %cst_53 = arith.constant 1.000000e+00 : f32
    %129 = vector.broadcast %cst_53 : f32 to vector<8x128xf32>
    %130 = arith.addf %129, %128 : vector<8x128xf32>
    %131 = arith.divf %129, %130 : vector<8x128xf32>
    %132 = vector.extract_strided_slice %119 {offsets = [0, 128], sizes = [8, 128], strides = [1, 1]} : vector<8x384xf32> to vector<8x128xf32>
    %133 = vector.extract_strided_slice %123 {offsets = [0, 128], sizes = [8, 128], strides = [1, 1]} : vector<8x384xf32> to vector<8x128xf32>
    %134 = arith.addf %132, %133 : vector<8x128xf32>
    %135 = arith.negf %134 : vector<8x128xf32>
    %136 = math.exp %135 : vector<8x128xf32>
    %cst_54 = arith.constant 1.000000e+00 : f32
    %137 = vector.broadcast %cst_54 : f32 to vector<8x128xf32>
    %138 = arith.addf %137, %136 : vector<8x128xf32>
    %139 = arith.divf %137, %138 : vector<8x128xf32>
    %140 = vector.extract_strided_slice %119 {offsets = [0, 256], sizes = [8, 128], strides = [1, 1]} : vector<8x384xf32> to vector<8x128xf32>
    %141 = vector.extract_strided_slice %123 {offsets = [0, 256], sizes = [8, 128], strides = [1, 1]} : vector<8x384xf32> to vector<8x128xf32>
    %142 = arith.addf %141, %16 : vector<8x128xf32>
    %143 = arith.mulf %131, %142 : vector<8x128xf32>
    %144 = arith.addf %140, %143 : vector<8x128xf32>
    %145 = math.tanh %144 : vector<8x128xf32>
    %146 = arith.subf %84, %145 : vector<8x128xf32>
    %147 = arith.mulf %139, %146 : vector<8x128xf32>
    %148 = arith.addf %145, %147 : vector<8x128xf32>
    %149 = arith.truncf %84 : vector<8x128xf32> to vector<8x128xbf16>
    %c1_55 = arith.constant 1 : index
    %c0_56 = arith.constant 0 : index
    %c0_57 = arith.constant 0 : index
    %150 = vector.load %arg2[%c1_55, %c0_56, %c0_57] : memref<2x128x384xbf16, #tpu.memory_space<vmem>>, vector<1x128x384xbf16>
    %151 = vector.shape_cast %150 : vector<1x128x384xbf16> to vector<128x384xbf16>
    %cst_58 = arith.constant dense<0.000000e+00> : vector<8x384xf32>
    %152 = tpu.matmul %149, %151, %cst_58 {dimension_numbers = #tpu.dot_dimension_numbers<[1], [0], [0], [1], [0, 0, 1, 1], [], []>} : vector<8x128xbf16>, vector<128x384xbf16>, vector<8x384xf32> -> vector<8x384xf32>
    %153 = arith.addf %152, %12 : vector<8x384xf32>
    %154 = arith.truncf %118 : vector<8x128xf32> to vector<8x128xbf16>
    %c1_59 = arith.constant 1 : index
    %c0_60 = arith.constant 0 : index
    %c0_61 = arith.constant 0 : index
    %155 = vector.load %arg3[%c1_59, %c0_60, %c0_61] : memref<2x128x384xbf16, #tpu.memory_space<vmem>>, vector<1x128x384xbf16>
    %156 = vector.shape_cast %155 : vector<1x128x384xbf16> to vector<128x384xbf16>
    %cst_62 = arith.constant dense<0.000000e+00> : vector<8x384xf32>
    %157 = tpu.matmul %154, %156, %cst_62 {dimension_numbers = #tpu.dot_dimension_numbers<[1], [0], [0], [1], [0, 0, 1, 1], [], []>} : vector<8x128xbf16>, vector<128x384xbf16>, vector<8x384xf32> -> vector<8x384xf32>
    %158 = vector.extract_strided_slice %153 {offsets = [0, 0], sizes = [8, 128], strides = [1, 1]} : vector<8x384xf32> to vector<8x128xf32>
    %159 = vector.extract_strided_slice %157 {offsets = [0, 0], sizes = [8, 128], strides = [1, 1]} : vector<8x384xf32> to vector<8x128xf32>
    %160 = arith.addf %158, %159 : vector<8x128xf32>
    %161 = arith.negf %160 : vector<8x128xf32>
    %162 = math.exp %161 : vector<8x128xf32>
    %cst_63 = arith.constant 1.000000e+00 : f32
    %163 = vector.broadcast %cst_63 : f32 to vector<8x128xf32>
    %164 = arith.addf %163, %162 : vector<8x128xf32>
    %165 = arith.divf %163, %164 : vector<8x128xf32>
    %166 = vector.extract_strided_slice %153 {offsets = [0, 128], sizes = [8, 128], strides = [1, 1]} : vector<8x384xf32> to vector<8x128xf32>
    %167 = vector.extract_strided_slice %157 {offsets = [0, 128], sizes = [8, 128], strides = [1, 1]} : vector<8x384xf32> to vector<8x128xf32>
    %168 = arith.addf %166, %167 : vector<8x128xf32>
    %169 = arith.negf %168 : vector<8x128xf32>
    %170 = math.exp %169 : vector<8x128xf32>
    %cst_64 = arith.constant 1.000000e+00 : f32
    %171 = vector.broadcast %cst_64 : f32 to vector<8x128xf32>
    %172 = arith.addf %171, %170 : vector<8x128xf32>
    %173 = arith.divf %171, %172 : vector<8x128xf32>
    %174 = vector.extract_strided_slice %153 {offsets = [0, 256], sizes = [8, 128], strides = [1, 1]} : vector<8x384xf32> to vector<8x128xf32>
    %175 = vector.extract_strided_slice %157 {offsets = [0, 256], sizes = [8, 128], strides = [1, 1]} : vector<8x384xf32> to vector<8x128xf32>
    %176 = arith.addf %175, %20 : vector<8x128xf32>
    %177 = arith.mulf %165, %176 : vector<8x128xf32>
    %178 = arith.addf %174, %177 : vector<8x128xf32>
    %179 = math.tanh %178 : vector<8x128xf32>
    %180 = arith.subf %118, %179 : vector<8x128xf32>
    %181 = arith.mulf %173, %180 : vector<8x128xf32>
    %182 = arith.addf %179, %181 : vector<8x128xf32>
    %c24 = arith.constant 24 : index
    %c0_65 = arith.constant 0 : index
    %183 = vector.load %arg9[%c24, %c0_65] : memref<64x384xf32, #tpu.memory_space<vmem>>, vector<8x384xf32>
    %184 = arith.truncf %148 : vector<8x128xf32> to vector<8x128xbf16>
    %c0_66 = arith.constant 0 : index
    %c0_67 = arith.constant 0 : index
    %c0_68 = arith.constant 0 : index
    %185 = vector.load %arg3[%c0_66, %c0_67, %c0_68] : memref<2x128x384xbf16, #tpu.memory_space<vmem>>, vector<1x128x384xbf16>
    %186 = vector.shape_cast %185 : vector<1x128x384xbf16> to vector<128x384xbf16>
    %cst_69 = arith.constant dense<0.000000e+00> : vector<8x384xf32>
    %187 = tpu.matmul %184, %186, %cst_69 {dimension_numbers = #tpu.dot_dimension_numbers<[1], [0], [0], [1], [0, 0, 1, 1], [], []>} : vector<8x128xbf16>, vector<128x384xbf16>, vector<8x384xf32> -> vector<8x384xf32>
    %188 = vector.extract_strided_slice %183 {offsets = [0, 0], sizes = [8, 128], strides = [1, 1]} : vector<8x384xf32> to vector<8x128xf32>
    %189 = vector.extract_strided_slice %187 {offsets = [0, 0], sizes = [8, 128], strides = [1, 1]} : vector<8x384xf32> to vector<8x128xf32>
    %190 = arith.addf %188, %189 : vector<8x128xf32>
    %191 = arith.negf %190 : vector<8x128xf32>
    %192 = math.exp %191 : vector<8x128xf32>
    %cst_70 = arith.constant 1.000000e+00 : f32
    %193 = vector.broadcast %cst_70 : f32 to vector<8x128xf32>
    %194 = arith.addf %193, %192 : vector<8x128xf32>
    %195 = arith.divf %193, %194 : vector<8x128xf32>
    %196 = vector.extract_strided_slice %183 {offsets = [0, 128], sizes = [8, 128], strides = [1, 1]} : vector<8x384xf32> to vector<8x128xf32>
    %197 = vector.extract_strided_slice %187 {offsets = [0, 128], sizes = [8, 128], strides = [1, 1]} : vector<8x384xf32> to vector<8x128xf32>
    %198 = arith.addf %196, %197 : vector<8x128xf32>
    %199 = arith.negf %198 : vector<8x128xf32>
    %200 = math.exp %199 : vector<8x128xf32>
    %cst_71 = arith.constant 1.000000e+00 : f32
    %201 = vector.broadcast %cst_71 : f32 to vector<8x128xf32>
    %202 = arith.addf %201, %200 : vector<8x128xf32>
    %203 = arith.divf %201, %202 : vector<8x128xf32>
    %204 = vector.extract_strided_slice %183 {offsets = [0, 256], sizes = [8, 128], strides = [1, 1]} : vector<8x384xf32> to vector<8x128xf32>
    %205 = vector.extract_strided_slice %187 {offsets = [0, 256], sizes = [8, 128], strides = [1, 1]} : vector<8x384xf32> to vector<8x128xf32>
    %206 = arith.addf %205, %16 : vector<8x128xf32>
    %207 = arith.mulf %195, %206 : vector<8x128xf32>
    %208 = arith.addf %204, %207 : vector<8x128xf32>
    %209 = math.tanh %208 : vector<8x128xf32>
    %210 = arith.subf %148, %209 : vector<8x128xf32>
    %211 = arith.mulf %203, %210 : vector<8x128xf32>
    %212 = arith.addf %209, %211 : vector<8x128xf32>
    %213 = arith.truncf %148 : vector<8x128xf32> to vector<8x128xbf16>
    %c1_72 = arith.constant 1 : index
    %c0_73 = arith.constant 0 : index
    %c0_74 = arith.constant 0 : index
    %214 = vector.load %arg2[%c1_72, %c0_73, %c0_74] : memref<2x128x384xbf16, #tpu.memory_space<vmem>>, vector<1x128x384xbf16>
    %215 = vector.shape_cast %214 : vector<1x128x384xbf16> to vector<128x384xbf16>
    %cst_75 = arith.constant dense<0.000000e+00> : vector<8x384xf32>
    %216 = tpu.matmul %213, %215, %cst_75 {dimension_numbers = #tpu.dot_dimension_numbers<[1], [0], [0], [1], [0, 0, 1, 1], [], []>} : vector<8x128xbf16>, vector<128x384xbf16>, vector<8x384xf32> -> vector<8x384xf32>
    %217 = arith.addf %216, %12 : vector<8x384xf32>
    %218 = arith.truncf %182 : vector<8x128xf32> to vector<8x128xbf16>
    %c1_76 = arith.constant 1 : index
    %c0_77 = arith.constant 0 : index
    %c0_78 = arith.constant 0 : index
    %219 = vector.load %arg3[%c1_76, %c0_77, %c0_78] : memref<2x128x384xbf16, #tpu.memory_space<vmem>>, vector<1x128x384xbf16>
    %220 = vector.shape_cast %219 : vector<1x128x384xbf16> to vector<128x384xbf16>
    %cst_79 = arith.constant dense<0.000000e+00> : vector<8x384xf32>
    %221 = tpu.matmul %218, %220, %cst_79 {dimension_numbers = #tpu.dot_dimension_numbers<[1], [0], [0], [1], [0, 0, 1, 1], [], []>} : vector<8x128xbf16>, vector<128x384xbf16>, vector<8x384xf32> -> vector<8x384xf32>
    %222 = vector.extract_strided_slice %217 {offsets = [0, 0], sizes = [8, 128], strides = [1, 1]} : vector<8x384xf32> to vector<8x128xf32>
    %223 = vector.extract_strided_slice %221 {offsets = [0, 0], sizes = [8, 128], strides = [1, 1]} : vector<8x384xf32> to vector<8x128xf32>
    %224 = arith.addf %222, %223 : vector<8x128xf32>
    %225 = arith.negf %224 : vector<8x128xf32>
    %226 = math.exp %225 : vector<8x128xf32>
    %cst_80 = arith.constant 1.000000e+00 : f32
    %227 = vector.broadcast %cst_80 : f32 to vector<8x128xf32>
    %228 = arith.addf %227, %226 : vector<8x128xf32>
    %229 = arith.divf %227, %228 : vector<8x128xf32>
    %230 = vector.extract_strided_slice %217 {offsets = [0, 128], sizes = [8, 128], strides = [1, 1]} : vector<8x384xf32> to vector<8x128xf32>
    %231 = vector.extract_strided_slice %221 {offsets = [0, 128], sizes = [8, 128], strides = [1, 1]} : vector<8x384xf32> to vector<8x128xf32>
    %232 = arith.addf %230, %231 : vector<8x128xf32>
    %233 = arith.negf %232 : vector<8x128xf32>
    %234 = math.exp %233 : vector<8x128xf32>
    %cst_81 = arith.constant 1.000000e+00 : f32
    %235 = vector.broadcast %cst_81 : f32 to vector<8x128xf32>
    %236 = arith.addf %235, %234 : vector<8x128xf32>
    %237 = arith.divf %235, %236 : vector<8x128xf32>
    %238 = vector.extract_strided_slice %217 {offsets = [0, 256], sizes = [8, 128], strides = [1, 1]} : vector<8x384xf32> to vector<8x128xf32>
    %239 = vector.extract_strided_slice %221 {offsets = [0, 256], sizes = [8, 128], strides = [1, 1]} : vector<8x384xf32> to vector<8x128xf32>
    %240 = arith.addf %239, %20 : vector<8x128xf32>
    %241 = arith.mulf %229, %240 : vector<8x128xf32>
    %242 = arith.addf %238, %241 : vector<8x128xf32>
    %243 = math.tanh %242 : vector<8x128xf32>
    %244 = arith.subf %182, %243 : vector<8x128xf32>
    %245 = arith.mulf %237, %244 : vector<8x128xf32>
    %246 = arith.addf %243, %245 : vector<8x128xf32>
    %c32 = arith.constant 32 : index
    %c0_82 = arith.constant 0 : index
    %247 = vector.load %arg9[%c32, %c0_82] : memref<64x384xf32, #tpu.memory_space<vmem>>, vector<8x384xf32>
    %248 = arith.truncf %212 : vector<8x128xf32> to vector<8x128xbf16>
    %c0_83 = arith.constant 0 : index
    %c0_84 = arith.constant 0 : index
    %c0_85 = arith.constant 0 : index
    %249 = vector.load %arg3[%c0_83, %c0_84, %c0_85] : memref<2x128x384xbf16, #tpu.memory_space<vmem>>, vector<1x128x384xbf16>
    %250 = vector.shape_cast %249 : vector<1x128x384xbf16> to vector<128x384xbf16>
    %cst_86 = arith.constant dense<0.000000e+00> : vector<8x384xf32>
    %251 = tpu.matmul %248, %250, %cst_86 {dimension_numbers = #tpu.dot_dimension_numbers<[1], [0], [0], [1], [0, 0, 1, 1], [], []>} : vector<8x128xbf16>, vector<128x384xbf16>, vector<8x384xf32> -> vector<8x384xf32>
    %252 = vector.extract_strided_slice %247 {offsets = [0, 0], sizes = [8, 128], strides = [1, 1]} : vector<8x384xf32> to vector<8x128xf32>
    %253 = vector.extract_strided_slice %251 {offsets = [0, 0], sizes = [8, 128], strides = [1, 1]} : vector<8x384xf32> to vector<8x128xf32>
    %254 = arith.addf %252, %253 : vector<8x128xf32>
    %255 = arith.negf %254 : vector<8x128xf32>
    %256 = math.exp %255 : vector<8x128xf32>
    %cst_87 = arith.constant 1.000000e+00 : f32
    %257 = vector.broadcast %cst_87 : f32 to vector<8x128xf32>
    %258 = arith.addf %257, %256 : vector<8x128xf32>
    %259 = arith.divf %257, %258 : vector<8x128xf32>
    %260 = vector.extract_strided_slice %247 {offsets = [0, 128], sizes = [8, 128], strides = [1, 1]} : vector<8x384xf32> to vector<8x128xf32>
    %261 = vector.extract_strided_slice %251 {offsets = [0, 128], sizes = [8, 128], strides = [1, 1]} : vector<8x384xf32> to vector<8x128xf32>
    %262 = arith.addf %260, %261 : vector<8x128xf32>
    %263 = arith.negf %262 : vector<8x128xf32>
    %264 = math.exp %263 : vector<8x128xf32>
    %cst_88 = arith.constant 1.000000e+00 : f32
    %265 = vector.broadcast %cst_88 : f32 to vector<8x128xf32>
    %266 = arith.addf %265, %264 : vector<8x128xf32>
    %267 = arith.divf %265, %266 : vector<8x128xf32>
    %268 = vector.extract_strided_slice %247 {offsets = [0, 256], sizes = [8, 128], strides = [1, 1]} : vector<8x384xf32> to vector<8x128xf32>
    %269 = vector.extract_strided_slice %251 {offsets = [0, 256], sizes = [8, 128], strides = [1, 1]} : vector<8x384xf32> to vector<8x128xf32>
    %270 = arith.addf %269, %16 : vector<8x128xf32>
    %271 = arith.mulf %259, %270 : vector<8x128xf32>
    %272 = arith.addf %268, %271 : vector<8x128xf32>
    %273 = math.tanh %272 : vector<8x128xf32>
    %274 = arith.subf %212, %273 : vector<8x128xf32>
    %275 = arith.mulf %267, %274 : vector<8x128xf32>
    %276 = arith.addf %273, %275 : vector<8x128xf32>
    %277 = arith.truncf %212 : vector<8x128xf32> to vector<8x128xbf16>
    %c1_89 = arith.constant 1 : index
    %c0_90 = arith.constant 0 : index
    %c0_91 = arith.constant 0 : index
    %278 = vector.load %arg2[%c1_89, %c0_90, %c0_91] : memref<2x128x384xbf16, #tpu.memory_space<vmem>>, vector<1x128x384xbf16>
    %279 = vector.shape_cast %278 : vector<1x128x384xbf16> to vector<128x384xbf16>
    %cst_92 = arith.constant dense<0.000000e+00> : vector<8x384xf32>
    %280 = tpu.matmul %277, %279, %cst_92 {dimension_numbers = #tpu.dot_dimension_numbers<[1], [0], [0], [1], [0, 0, 1, 1], [], []>} : vector<8x128xbf16>, vector<128x384xbf16>, vector<8x384xf32> -> vector<8x384xf32>
    %281 = arith.addf %280, %12 : vector<8x384xf32>
    %282 = arith.truncf %246 : vector<8x128xf32> to vector<8x128xbf16>
    %c1_93 = arith.constant 1 : index
    %c0_94 = arith.constant 0 : index
    %c0_95 = arith.constant 0 : index
    %283 = vector.load %arg3[%c1_93, %c0_94, %c0_95] : memref<2x128x384xbf16, #tpu.memory_space<vmem>>, vector<1x128x384xbf16>
    %284 = vector.shape_cast %283 : vector<1x128x384xbf16> to vector<128x384xbf16>
    %cst_96 = arith.constant dense<0.000000e+00> : vector<8x384xf32>
    %285 = tpu.matmul %282, %284, %cst_96 {dimension_numbers = #tpu.dot_dimension_numbers<[1], [0], [0], [1], [0, 0, 1, 1], [], []>} : vector<8x128xbf16>, vector<128x384xbf16>, vector<8x384xf32> -> vector<8x384xf32>
    %286 = vector.extract_strided_slice %281 {offsets = [0, 0], sizes = [8, 128], strides = [1, 1]} : vector<8x384xf32> to vector<8x128xf32>
    %287 = vector.extract_strided_slice %285 {offsets = [0, 0], sizes = [8, 128], strides = [1, 1]} : vector<8x384xf32> to vector<8x128xf32>
    %288 = arith.addf %286, %287 : vector<8x128xf32>
    %289 = arith.negf %288 : vector<8x128xf32>
    %290 = math.exp %289 : vector<8x128xf32>
    %cst_97 = arith.constant 1.000000e+00 : f32
    %291 = vector.broadcast %cst_97 : f32 to vector<8x128xf32>
    %292 = arith.addf %291, %290 : vector<8x128xf32>
    %293 = arith.divf %291, %292 : vector<8x128xf32>
    %294 = vector.extract_strided_slice %281 {offsets = [0, 128], sizes = [8, 128], strides = [1, 1]} : vector<8x384xf32> to vector<8x128xf32>
    %295 = vector.extract_strided_slice %285 {offsets = [0, 128], sizes = [8, 128], strides = [1, 1]} : vector<8x384xf32> to vector<8x128xf32>
    %296 = arith.addf %294, %295 : vector<8x128xf32>
    %297 = arith.negf %296 : vector<8x128xf32>
    %298 = math.exp %297 : vector<8x128xf32>
    %cst_98 = arith.constant 1.000000e+00 : f32
    %299 = vector.broadcast %cst_98 : f32 to vector<8x128xf32>
    %300 = arith.addf %299, %298 : vector<8x128xf32>
    %301 = arith.divf %299, %300 : vector<8x128xf32>
    %302 = vector.extract_strided_slice %281 {offsets = [0, 256], sizes = [8, 128], strides = [1, 1]} : vector<8x384xf32> to vector<8x128xf32>
    %303 = vector.extract_strided_slice %285 {offsets = [0, 256], sizes = [8, 128], strides = [1, 1]} : vector<8x384xf32> to vector<8x128xf32>
    %304 = arith.addf %303, %20 : vector<8x128xf32>
    %305 = arith.mulf %293, %304 : vector<8x128xf32>
    %306 = arith.addf %302, %305 : vector<8x128xf32>
    %307 = math.tanh %306 : vector<8x128xf32>
    %308 = arith.subf %246, %307 : vector<8x128xf32>
    %309 = arith.mulf %301, %308 : vector<8x128xf32>
    %310 = arith.addf %307, %309 : vector<8x128xf32>
    %c40 = arith.constant 40 : index
    %c0_99 = arith.constant 0 : index
    %311 = vector.load %arg9[%c40, %c0_99] : memref<64x384xf32, #tpu.memory_space<vmem>>, vector<8x384xf32>
    %312 = arith.truncf %276 : vector<8x128xf32> to vector<8x128xbf16>
    %c0_100 = arith.constant 0 : index
    %c0_101 = arith.constant 0 : index
    %c0_102 = arith.constant 0 : index
    %313 = vector.load %arg3[%c0_100, %c0_101, %c0_102] : memref<2x128x384xbf16, #tpu.memory_space<vmem>>, vector<1x128x384xbf16>
    %314 = vector.shape_cast %313 : vector<1x128x384xbf16> to vector<128x384xbf16>
    %cst_103 = arith.constant dense<0.000000e+00> : vector<8x384xf32>
    %315 = tpu.matmul %312, %314, %cst_103 {dimension_numbers = #tpu.dot_dimension_numbers<[1], [0], [0], [1], [0, 0, 1, 1], [], []>} : vector<8x128xbf16>, vector<128x384xbf16>, vector<8x384xf32> -> vector<8x384xf32>
    %316 = vector.extract_strided_slice %311 {offsets = [0, 0], sizes = [8, 128], strides = [1, 1]} : vector<8x384xf32> to vector<8x128xf32>
    %317 = vector.extract_strided_slice %315 {offsets = [0, 0], sizes = [8, 128], strides = [1, 1]} : vector<8x384xf32> to vector<8x128xf32>
    %318 = arith.addf %316, %317 : vector<8x128xf32>
    %319 = arith.negf %318 : vector<8x128xf32>
    %320 = math.exp %319 : vector<8x128xf32>
    %cst_104 = arith.constant 1.000000e+00 : f32
    %321 = vector.broadcast %cst_104 : f32 to vector<8x128xf32>
    %322 = arith.addf %321, %320 : vector<8x128xf32>
    %323 = arith.divf %321, %322 : vector<8x128xf32>
    %324 = vector.extract_strided_slice %311 {offsets = [0, 128], sizes = [8, 128], strides = [1, 1]} : vector<8x384xf32> to vector<8x128xf32>
    %325 = vector.extract_strided_slice %315 {offsets = [0, 128], sizes = [8, 128], strides = [1, 1]} : vector<8x384xf32> to vector<8x128xf32>
    %326 = arith.addf %324, %325 : vector<8x128xf32>
    %327 = arith.negf %326 : vector<8x128xf32>
    %328 = math.exp %327 : vector<8x128xf32>
    %cst_105 = arith.constant 1.000000e+00 : f32
    %329 = vector.broadcast %cst_105 : f32 to vector<8x128xf32>
    %330 = arith.addf %329, %328 : vector<8x128xf32>
    %331 = arith.divf %329, %330 : vector<8x128xf32>
    %332 = vector.extract_strided_slice %311 {offsets = [0, 256], sizes = [8, 128], strides = [1, 1]} : vector<8x384xf32> to vector<8x128xf32>
    %333 = vector.extract_strided_slice %315 {offsets = [0, 256], sizes = [8, 128], strides = [1, 1]} : vector<8x384xf32> to vector<8x128xf32>
    %334 = arith.addf %333, %16 : vector<8x128xf32>
    %335 = arith.mulf %323, %334 : vector<8x128xf32>
    %336 = arith.addf %332, %335 : vector<8x128xf32>
    %337 = math.tanh %336 : vector<8x128xf32>
    %338 = arith.subf %276, %337 : vector<8x128xf32>
    %339 = arith.mulf %331, %338 : vector<8x128xf32>
    %340 = arith.addf %337, %339 : vector<8x128xf32>
    %341 = arith.truncf %276 : vector<8x128xf32> to vector<8x128xbf16>
    %c1_106 = arith.constant 1 : index
    %c0_107 = arith.constant 0 : index
    %c0_108 = arith.constant 0 : index
    %342 = vector.load %arg2[%c1_106, %c0_107, %c0_108] : memref<2x128x384xbf16, #tpu.memory_space<vmem>>, vector<1x128x384xbf16>
    %343 = vector.shape_cast %342 : vector<1x128x384xbf16> to vector<128x384xbf16>
    %cst_109 = arith.constant dense<0.000000e+00> : vector<8x384xf32>
    %344 = tpu.matmul %341, %343, %cst_109 {dimension_numbers = #tpu.dot_dimension_numbers<[1], [0], [0], [1], [0, 0, 1, 1], [], []>} : vector<8x128xbf16>, vector<128x384xbf16>, vector<8x384xf32> -> vector<8x384xf32>
    %345 = arith.addf %344, %12 : vector<8x384xf32>
    %346 = arith.truncf %310 : vector<8x128xf32> to vector<8x128xbf16>
    %c1_110 = arith.constant 1 : index
    %c0_111 = arith.constant 0 : index
    %c0_112 = arith.constant 0 : index
    %347 = vector.load %arg3[%c1_110, %c0_111, %c0_112] : memref<2x128x384xbf16, #tpu.memory_space<vmem>>, vector<1x128x384xbf16>
    %348 = vector.shape_cast %347 : vector<1x128x384xbf16> to vector<128x384xbf16>
    %cst_113 = arith.constant dense<0.000000e+00> : vector<8x384xf32>
    %349 = tpu.matmul %346, %348, %cst_113 {dimension_numbers = #tpu.dot_dimension_numbers<[1], [0], [0], [1], [0, 0, 1, 1], [], []>} : vector<8x128xbf16>, vector<128x384xbf16>, vector<8x384xf32> -> vector<8x384xf32>
    %350 = vector.extract_strided_slice %345 {offsets = [0, 0], sizes = [8, 128], strides = [1, 1]} : vector<8x384xf32> to vector<8x128xf32>
    %351 = vector.extract_strided_slice %349 {offsets = [0, 0], sizes = [8, 128], strides = [1, 1]} : vector<8x384xf32> to vector<8x128xf32>
    %352 = arith.addf %350, %351 : vector<8x128xf32>
    %353 = arith.negf %352 : vector<8x128xf32>
    %354 = math.exp %353 : vector<8x128xf32>
    %cst_114 = arith.constant 1.000000e+00 : f32
    %355 = vector.broadcast %cst_114 : f32 to vector<8x128xf32>
    %356 = arith.addf %355, %354 : vector<8x128xf32>
    %357 = arith.divf %355, %356 : vector<8x128xf32>
    %358 = vector.extract_strided_slice %345 {offsets = [0, 128], sizes = [8, 128], strides = [1, 1]} : vector<8x384xf32> to vector<8x128xf32>
    %359 = vector.extract_strided_slice %349 {offsets = [0, 128], sizes = [8, 128], strides = [1, 1]} : vector<8x384xf32> to vector<8x128xf32>
    %360 = arith.addf %358, %359 : vector<8x128xf32>
    %361 = arith.negf %360 : vector<8x128xf32>
    %362 = math.exp %361 : vector<8x128xf32>
    %cst_115 = arith.constant 1.000000e+00 : f32
    %363 = vector.broadcast %cst_115 : f32 to vector<8x128xf32>
    %364 = arith.addf %363, %362 : vector<8x128xf32>
    %365 = arith.divf %363, %364 : vector<8x128xf32>
    %366 = vector.extract_strided_slice %345 {offsets = [0, 256], sizes = [8, 128], strides = [1, 1]} : vector<8x384xf32> to vector<8x128xf32>
    %367 = vector.extract_strided_slice %349 {offsets = [0, 256], sizes = [8, 128], strides = [1, 1]} : vector<8x384xf32> to vector<8x128xf32>
    %368 = arith.addf %367, %20 : vector<8x128xf32>
    %369 = arith.mulf %357, %368 : vector<8x128xf32>
    %370 = arith.addf %366, %369 : vector<8x128xf32>
    %371 = math.tanh %370 : vector<8x128xf32>
    %372 = arith.subf %310, %371 : vector<8x128xf32>
    %373 = arith.mulf %365, %372 : vector<8x128xf32>
    %374 = arith.addf %371, %373 : vector<8x128xf32>
    %c48 = arith.constant 48 : index
    %c0_116 = arith.constant 0 : index
    %375 = vector.load %arg9[%c48, %c0_116] : memref<64x384xf32, #tpu.memory_space<vmem>>, vector<8x384xf32>
    %376 = arith.truncf %340 : vector<8x128xf32> to vector<8x128xbf16>
    %c0_117 = arith.constant 0 : index
    %c0_118 = arith.constant 0 : index
    %c0_119 = arith.constant 0 : index
    %377 = vector.load %arg3[%c0_117, %c0_118, %c0_119] : memref<2x128x384xbf16, #tpu.memory_space<vmem>>, vector<1x128x384xbf16>
    %378 = vector.shape_cast %377 : vector<1x128x384xbf16> to vector<128x384xbf16>
    %cst_120 = arith.constant dense<0.000000e+00> : vector<8x384xf32>
    %379 = tpu.matmul %376, %378, %cst_120 {dimension_numbers = #tpu.dot_dimension_numbers<[1], [0], [0], [1], [0, 0, 1, 1], [], []>} : vector<8x128xbf16>, vector<128x384xbf16>, vector<8x384xf32> -> vector<8x384xf32>
    %380 = vector.extract_strided_slice %375 {offsets = [0, 0], sizes = [8, 128], strides = [1, 1]} : vector<8x384xf32> to vector<8x128xf32>
    %381 = vector.extract_strided_slice %379 {offsets = [0, 0], sizes = [8, 128], strides = [1, 1]} : vector<8x384xf32> to vector<8x128xf32>
    %382 = arith.addf %380, %381 : vector<8x128xf32>
    %383 = arith.negf %382 : vector<8x128xf32>
    %384 = math.exp %383 : vector<8x128xf32>
    %cst_121 = arith.constant 1.000000e+00 : f32
    %385 = vector.broadcast %cst_121 : f32 to vector<8x128xf32>
    %386 = arith.addf %385, %384 : vector<8x128xf32>
    %387 = arith.divf %385, %386 : vector<8x128xf32>
    %388 = vector.extract_strided_slice %375 {offsets = [0, 128], sizes = [8, 128], strides = [1, 1]} : vector<8x384xf32> to vector<8x128xf32>
    %389 = vector.extract_strided_slice %379 {offsets = [0, 128], sizes = [8, 128], strides = [1, 1]} : vector<8x384xf32> to vector<8x128xf32>
    %390 = arith.addf %388, %389 : vector<8x128xf32>
    %391 = arith.negf %390 : vector<8x128xf32>
    %392 = math.exp %391 : vector<8x128xf32>
    %cst_122 = arith.constant 1.000000e+00 : f32
    %393 = vector.broadcast %cst_122 : f32 to vector<8x128xf32>
    %394 = arith.addf %393, %392 : vector<8x128xf32>
    %395 = arith.divf %393, %394 : vector<8x128xf32>
    %396 = vector.extract_strided_slice %375 {offsets = [0, 256], sizes = [8, 128], strides = [1, 1]} : vector<8x384xf32> to vector<8x128xf32>
    %397 = vector.extract_strided_slice %379 {offsets = [0, 256], sizes = [8, 128], strides = [1, 1]} : vector<8x384xf32> to vector<8x128xf32>
    %398 = arith.addf %397, %16 : vector<8x128xf32>
    %399 = arith.mulf %387, %398 : vector<8x128xf32>
    %400 = arith.addf %396, %399 : vector<8x128xf32>
    %401 = math.tanh %400 : vector<8x128xf32>
    %402 = arith.subf %340, %401 : vector<8x128xf32>
    %403 = arith.mulf %395, %402 : vector<8x128xf32>
    %404 = arith.addf %401, %403 : vector<8x128xf32>
    %405 = arith.truncf %340 : vector<8x128xf32> to vector<8x128xbf16>
    %c1_123 = arith.constant 1 : index
    %c0_124 = arith.constant 0 : index
    %c0_125 = arith.constant 0 : index
    %406 = vector.load %arg2[%c1_123, %c0_124, %c0_125] : memref<2x128x384xbf16, #tpu.memory_space<vmem>>, vector<1x128x384xbf16>
    %407 = vector.shape_cast %406 : vector<1x128x384xbf16> to vector<128x384xbf16>
    %cst_126 = arith.constant dense<0.000000e+00> : vector<8x384xf32>
    %408 = tpu.matmul %405, %407, %cst_126 {dimension_numbers = #tpu.dot_dimension_numbers<[1], [0], [0], [1], [0, 0, 1, 1], [], []>} : vector<8x128xbf16>, vector<128x384xbf16>, vector<8x384xf32> -> vector<8x384xf32>
    %409 = arith.addf %408, %12 : vector<8x384xf32>
    %410 = arith.truncf %374 : vector<8x128xf32> to vector<8x128xbf16>
    %c1_127 = arith.constant 1 : index
    %c0_128 = arith.constant 0 : index
    %c0_129 = arith.constant 0 : index
    %411 = vector.load %arg3[%c1_127, %c0_128, %c0_129] : memref<2x128x384xbf16, #tpu.memory_space<vmem>>, vector<1x128x384xbf16>
    %412 = vector.shape_cast %411 : vector<1x128x384xbf16> to vector<128x384xbf16>
    %cst_130 = arith.constant dense<0.000000e+00> : vector<8x384xf32>
    %413 = tpu.matmul %410, %412, %cst_130 {dimension_numbers = #tpu.dot_dimension_numbers<[1], [0], [0], [1], [0, 0, 1, 1], [], []>} : vector<8x128xbf16>, vector<128x384xbf16>, vector<8x384xf32> -> vector<8x384xf32>
    %414 = vector.extract_strided_slice %409 {offsets = [0, 0], sizes = [8, 128], strides = [1, 1]} : vector<8x384xf32> to vector<8x128xf32>
    %415 = vector.extract_strided_slice %413 {offsets = [0, 0], sizes = [8, 128], strides = [1, 1]} : vector<8x384xf32> to vector<8x128xf32>
    %416 = arith.addf %414, %415 : vector<8x128xf32>
    %417 = arith.negf %416 : vector<8x128xf32>
    %418 = math.exp %417 : vector<8x128xf32>
    %cst_131 = arith.constant 1.000000e+00 : f32
    %419 = vector.broadcast %cst_131 : f32 to vector<8x128xf32>
    %420 = arith.addf %419, %418 : vector<8x128xf32>
    %421 = arith.divf %419, %420 : vector<8x128xf32>
    %422 = vector.extract_strided_slice %409 {offsets = [0, 128], sizes = [8, 128], strides = [1, 1]} : vector<8x384xf32> to vector<8x128xf32>
    %423 = vector.extract_strided_slice %413 {offsets = [0, 128], sizes = [8, 128], strides = [1, 1]} : vector<8x384xf32> to vector<8x128xf32>
    %424 = arith.addf %422, %423 : vector<8x128xf32>
    %425 = arith.negf %424 : vector<8x128xf32>
    %426 = math.exp %425 : vector<8x128xf32>
    %cst_132 = arith.constant 1.000000e+00 : f32
    %427 = vector.broadcast %cst_132 : f32 to vector<8x128xf32>
    %428 = arith.addf %427, %426 : vector<8x128xf32>
    %429 = arith.divf %427, %428 : vector<8x128xf32>
    %430 = vector.extract_strided_slice %409 {offsets = [0, 256], sizes = [8, 128], strides = [1, 1]} : vector<8x384xf32> to vector<8x128xf32>
    %431 = vector.extract_strided_slice %413 {offsets = [0, 256], sizes = [8, 128], strides = [1, 1]} : vector<8x384xf32> to vector<8x128xf32>
    %432 = arith.addf %431, %20 : vector<8x128xf32>
    %433 = arith.mulf %421, %432 : vector<8x128xf32>
    %434 = arith.addf %430, %433 : vector<8x128xf32>
    %435 = math.tanh %434 : vector<8x128xf32>
    %436 = arith.subf %374, %435 : vector<8x128xf32>
    %437 = arith.mulf %429, %436 : vector<8x128xf32>
    %438 = arith.addf %435, %437 : vector<8x128xf32>
    %c56 = arith.constant 56 : index
    %c0_133 = arith.constant 0 : index
    %439 = vector.load %arg9[%c56, %c0_133] : memref<64x384xf32, #tpu.memory_space<vmem>>, vector<8x384xf32>
    %440 = arith.truncf %404 : vector<8x128xf32> to vector<8x128xbf16>
    %c0_134 = arith.constant 0 : index
    %c0_135 = arith.constant 0 : index
    %c0_136 = arith.constant 0 : index
    %441 = vector.load %arg3[%c0_134, %c0_135, %c0_136] : memref<2x128x384xbf16, #tpu.memory_space<vmem>>, vector<1x128x384xbf16>
    %442 = vector.shape_cast %441 : vector<1x128x384xbf16> to vector<128x384xbf16>
    %cst_137 = arith.constant dense<0.000000e+00> : vector<8x384xf32>
    %443 = tpu.matmul %440, %442, %cst_137 {dimension_numbers = #tpu.dot_dimension_numbers<[1], [0], [0], [1], [0, 0, 1, 1], [], []>} : vector<8x128xbf16>, vector<128x384xbf16>, vector<8x384xf32> -> vector<8x384xf32>
    %444 = vector.extract_strided_slice %439 {offsets = [0, 0], sizes = [8, 128], strides = [1, 1]} : vector<8x384xf32> to vector<8x128xf32>
    %445 = vector.extract_strided_slice %443 {offsets = [0, 0], sizes = [8, 128], strides = [1, 1]} : vector<8x384xf32> to vector<8x128xf32>
    %446 = arith.addf %444, %445 : vector<8x128xf32>
    %447 = arith.negf %446 : vector<8x128xf32>
    %448 = math.exp %447 : vector<8x128xf32>
    %cst_138 = arith.constant 1.000000e+00 : f32
    %449 = vector.broadcast %cst_138 : f32 to vector<8x128xf32>
    %450 = arith.addf %449, %448 : vector<8x128xf32>
    %451 = arith.divf %449, %450 : vector<8x128xf32>
    %452 = vector.extract_strided_slice %439 {offsets = [0, 128], sizes = [8, 128], strides = [1, 1]} : vector<8x384xf32> to vector<8x128xf32>
    %453 = vector.extract_strided_slice %443 {offsets = [0, 128], sizes = [8, 128], strides = [1, 1]} : vector<8x384xf32> to vector<8x128xf32>
    %454 = arith.addf %452, %453 : vector<8x128xf32>
    %455 = arith.negf %454 : vector<8x128xf32>
    %456 = math.exp %455 : vector<8x128xf32>
    %cst_139 = arith.constant 1.000000e+00 : f32
    %457 = vector.broadcast %cst_139 : f32 to vector<8x128xf32>
    %458 = arith.addf %457, %456 : vector<8x128xf32>
    %459 = arith.divf %457, %458 : vector<8x128xf32>
    %460 = vector.extract_strided_slice %439 {offsets = [0, 256], sizes = [8, 128], strides = [1, 1]} : vector<8x384xf32> to vector<8x128xf32>
    %461 = vector.extract_strided_slice %443 {offsets = [0, 256], sizes = [8, 128], strides = [1, 1]} : vector<8x384xf32> to vector<8x128xf32>
    %462 = arith.addf %461, %16 : vector<8x128xf32>
    %463 = arith.mulf %451, %462 : vector<8x128xf32>
    %464 = arith.addf %460, %463 : vector<8x128xf32>
    %465 = math.tanh %464 : vector<8x128xf32>
    %466 = arith.subf %404, %465 : vector<8x128xf32>
    %467 = arith.mulf %459, %466 : vector<8x128xf32>
    %468 = arith.addf %465, %467 : vector<8x128xf32>
    %469 = arith.truncf %404 : vector<8x128xf32> to vector<8x128xbf16>
    %c1_140 = arith.constant 1 : index
    %c0_141 = arith.constant 0 : index
    %c0_142 = arith.constant 0 : index
    %470 = vector.load %arg2[%c1_140, %c0_141, %c0_142] : memref<2x128x384xbf16, #tpu.memory_space<vmem>>, vector<1x128x384xbf16>
    %471 = vector.shape_cast %470 : vector<1x128x384xbf16> to vector<128x384xbf16>
    %cst_143 = arith.constant dense<0.000000e+00> : vector<8x384xf32>
    %472 = tpu.matmul %469, %471, %cst_143 {dimension_numbers = #tpu.dot_dimension_numbers<[1], [0], [0], [1], [0, 0, 1, 1], [], []>} : vector<8x128xbf16>, vector<128x384xbf16>, vector<8x384xf32> -> vector<8x384xf32>
    %473 = arith.addf %472, %12 : vector<8x384xf32>
    %474 = arith.truncf %438 : vector<8x128xf32> to vector<8x128xbf16>
    %c1_144 = arith.constant 1 : index
    %c0_145 = arith.constant 0 : index
    %c0_146 = arith.constant 0 : index
    %475 = vector.load %arg3[%c1_144, %c0_145, %c0_146] : memref<2x128x384xbf16, #tpu.memory_space<vmem>>, vector<1x128x384xbf16>
    %476 = vector.shape_cast %475 : vector<1x128x384xbf16> to vector<128x384xbf16>
    %cst_147 = arith.constant dense<0.000000e+00> : vector<8x384xf32>
    %477 = tpu.matmul %474, %476, %cst_147 {dimension_numbers = #tpu.dot_dimension_numbers<[1], [0], [0], [1], [0, 0, 1, 1], [], []>} : vector<8x128xbf16>, vector<128x384xbf16>, vector<8x384xf32> -> vector<8x384xf32>
    %478 = vector.extract_strided_slice %473 {offsets = [0, 0], sizes = [8, 128], strides = [1, 1]} : vector<8x384xf32> to vector<8x128xf32>
    %479 = vector.extract_strided_slice %477 {offsets = [0, 0], sizes = [8, 128], strides = [1, 1]} : vector<8x384xf32> to vector<8x128xf32>
    %480 = arith.addf %478, %479 : vector<8x128xf32>
    %481 = arith.negf %480 : vector<8x128xf32>
    %482 = math.exp %481 : vector<8x128xf32>
    %cst_148 = arith.constant 1.000000e+00 : f32
    %483 = vector.broadcast %cst_148 : f32 to vector<8x128xf32>
    %484 = arith.addf %483, %482 : vector<8x128xf32>
    %485 = arith.divf %483, %484 : vector<8x128xf32>
    %486 = vector.extract_strided_slice %473 {offsets = [0, 128], sizes = [8, 128], strides = [1, 1]} : vector<8x384xf32> to vector<8x128xf32>
    %487 = vector.extract_strided_slice %477 {offsets = [0, 128], sizes = [8, 128], strides = [1, 1]} : vector<8x384xf32> to vector<8x128xf32>
    %488 = arith.addf %486, %487 : vector<8x128xf32>
    %489 = arith.negf %488 : vector<8x128xf32>
    %490 = math.exp %489 : vector<8x128xf32>
    %cst_149 = arith.constant 1.000000e+00 : f32
    %491 = vector.broadcast %cst_149 : f32 to vector<8x128xf32>
    %492 = arith.addf %491, %490 : vector<8x128xf32>
    %493 = arith.divf %491, %492 : vector<8x128xf32>
    %494 = vector.extract_strided_slice %473 {offsets = [0, 256], sizes = [8, 128], strides = [1, 1]} : vector<8x384xf32> to vector<8x128xf32>
    %495 = vector.extract_strided_slice %477 {offsets = [0, 256], sizes = [8, 128], strides = [1, 1]} : vector<8x384xf32> to vector<8x128xf32>
    %496 = arith.addf %495, %20 : vector<8x128xf32>
    %497 = arith.mulf %485, %496 : vector<8x128xf32>
    %498 = arith.addf %494, %497 : vector<8x128xf32>
    %499 = math.tanh %498 : vector<8x128xf32>
    %500 = arith.subf %438, %499 : vector<8x128xf32>
    %501 = arith.mulf %493, %500 : vector<8x128xf32>
    %502 = arith.addf %499, %501 : vector<8x128xf32>
    %503 = arith.truncf %468 : vector<8x128xf32> to vector<8x128xbf16>
    %c1_150 = arith.constant 1 : index
    %c0_151 = arith.constant 0 : index
    %c0_152 = arith.constant 0 : index
    %504 = vector.load %arg2[%c1_150, %c0_151, %c0_152] : memref<2x128x384xbf16, #tpu.memory_space<vmem>>, vector<1x128x384xbf16>
    %505 = vector.shape_cast %504 : vector<1x128x384xbf16> to vector<128x384xbf16>
    %cst_153 = arith.constant dense<0.000000e+00> : vector<8x384xf32>
    %506 = tpu.matmul %503, %505, %cst_153 {dimension_numbers = #tpu.dot_dimension_numbers<[1], [0], [0], [1], [0, 0, 1, 1], [], []>} : vector<8x128xbf16>, vector<128x384xbf16>, vector<8x384xf32> -> vector<8x384xf32>
    %507 = arith.addf %506, %12 : vector<8x384xf32>
    %508 = arith.truncf %502 : vector<8x128xf32> to vector<8x128xbf16>
    %c1_154 = arith.constant 1 : index
    %c0_155 = arith.constant 0 : index
    %c0_156 = arith.constant 0 : index
    %509 = vector.load %arg3[%c1_154, %c0_155, %c0_156] : memref<2x128x384xbf16, #tpu.memory_space<vmem>>, vector<1x128x384xbf16>
    %510 = vector.shape_cast %509 : vector<1x128x384xbf16> to vector<128x384xbf16>
    %cst_157 = arith.constant dense<0.000000e+00> : vector<8x384xf32>
    %511 = tpu.matmul %508, %510, %cst_157 {dimension_numbers = #tpu.dot_dimension_numbers<[1], [0], [0], [1], [0, 0, 1, 1], [], []>} : vector<8x128xbf16>, vector<128x384xbf16>, vector<8x384xf32> -> vector<8x384xf32>
    %512 = vector.extract_strided_slice %507 {offsets = [0, 0], sizes = [8, 128], strides = [1, 1]} : vector<8x384xf32> to vector<8x128xf32>
    %513 = vector.extract_strided_slice %511 {offsets = [0, 0], sizes = [8, 128], strides = [1, 1]} : vector<8x384xf32> to vector<8x128xf32>
    %514 = arith.addf %512, %513 : vector<8x128xf32>
    %515 = arith.negf %514 : vector<8x128xf32>
    %516 = math.exp %515 : vector<8x128xf32>
    %cst_158 = arith.constant 1.000000e+00 : f32
    %517 = vector.broadcast %cst_158 : f32 to vector<8x128xf32>
    %518 = arith.addf %517, %516 : vector<8x128xf32>
    %519 = arith.divf %517, %518 : vector<8x128xf32>
    %520 = vector.extract_strided_slice %507 {offsets = [0, 128], sizes = [8, 128], strides = [1, 1]} : vector<8x384xf32> to vector<8x128xf32>
    %521 = vector.extract_strided_slice %511 {offsets = [0, 128], sizes = [8, 128], strides = [1, 1]} : vector<8x384xf32> to vector<8x128xf32>
    %522 = arith.addf %520, %521 : vector<8x128xf32>
    %523 = arith.negf %522 : vector<8x128xf32>
    %524 = math.exp %523 : vector<8x128xf32>
    %cst_159 = arith.constant 1.000000e+00 : f32
    %525 = vector.broadcast %cst_159 : f32 to vector<8x128xf32>
    %526 = arith.addf %525, %524 : vector<8x128xf32>
    %527 = arith.divf %525, %526 : vector<8x128xf32>
    %528 = vector.extract_strided_slice %507 {offsets = [0, 256], sizes = [8, 128], strides = [1, 1]} : vector<8x384xf32> to vector<8x128xf32>
    %529 = vector.extract_strided_slice %511 {offsets = [0, 256], sizes = [8, 128], strides = [1, 1]} : vector<8x384xf32> to vector<8x128xf32>
    %530 = arith.addf %529, %20 : vector<8x128xf32>
    %531 = arith.mulf %519, %530 : vector<8x128xf32>
    %532 = arith.addf %528, %531 : vector<8x128xf32>
    %533 = math.tanh %532 : vector<8x128xf32>
    %534 = arith.subf %502, %533 : vector<8x128xf32>
    %535 = arith.mulf %527, %534 : vector<8x128xf32>
    %536 = arith.addf %533, %535 : vector<8x128xf32>
    %537 = arith.truncf %536 : vector<8x128xf32> to vector<8x128xbf16>
    %c0_160 = arith.constant 0 : index
    %c0_161 = arith.constant 0 : index
    %538 = vector.load %arg6[%c0_160, %c0_161] : memref<128x128xbf16, #tpu.memory_space<vmem>>, vector<128x128xbf16>
    %cst_162 = arith.constant dense<0.000000e+00> : vector<8x128xf32>
    %539 = tpu.matmul %537, %538, %cst_162 {dimension_numbers = #tpu.dot_dimension_numbers<[1], [0], [0], [1], [0, 0, 1, 1], [], []>} : vector<8x128xbf16>, vector<128x128xbf16>, vector<8x128xf32> -> vector<8x128xf32>
    %c0_163 = arith.constant 0 : index
    %c0_164 = arith.constant 0 : index
    %540 = vector.load %arg7[%c0_163, %c0_164] : memref<1x128xf32, #tpu.memory_space<vmem>>, vector<1x128xf32>
    %541 = vector.broadcast %540 : vector<1x128xf32> to vector<8x128xf32>
    %542 = arith.addf %539, %541 : vector<8x128xf32>
    %c0_165 = arith.constant 0 : index
    %c0_166 = arith.constant 0 : index
    %543 = vector.load %arg8[%c0_165, %c0_166] : memref<8x128xf32, #tpu.memory_space<vmem>>, vector<8x128xf32>
    tpu.vector_store %arg8[%c0_165, %c0_166], %542 {strides = array<i32>} : memref<8x128xf32, #tpu.memory_space<vmem>>, vector<8x128xf32>,
    return
  }
}

</mosaic_0001>

<bundles_post_ra>
// kernel: _rnn_forward.1
= control target key start
LH: loop header
LB: loop body
LE: loop exit
PB: predicated region body
PF: predicated region fallthrough
CT: control target
= control target key end

     0   :  { %v7217_v1 = vmov 0   ;;  %v7219_v36 = vmov 0.0   ;;  %vm4829_vm0 = vmmov 0   ;;  %v72_v57 = vlaneseq  ;;  %s7205_s2 = inlined_call_operand.vmem [shape: bf16[2,128,384], index: 2, kind: input, shape index: {}]   ;;  %s7206_s0 = inlined_call_operand.vmem [shape: bf16[64,128], index: 0, kind: input, shape index: {}]   ;;  %s7207_s3 = inlined_call_operand.vmem [shape: bf16[2,128,384], index: 3, kind: input, shape index: {}]   ;;  %s7208_s1 = inlined_call_operand.vmem [shape: f32[2,8,128], index: 1, kind: input, shape index: {}]   ;;  %s7209_s4 = inlined_call_operand.vmem [shape: f32[2,1,384], index: 4, kind: input, shape index: {}]   ;;  %s7210_s5 = inlined_call_operand.vmem [shape: f32[2,1,128], index: 5, kind: input, shape index: {}]   ;;  %s7211_s6 = inlined_call_operand.vmem [shape: bf16[128,128], index: 6, kind: input, shape index: {}]   ;;  %s7212_s7 = inlined_call_operand.vmem [shape: f32[1,128], index: 7, kind: input, shape index: {}]   ;;  %s7213_s8 = inlined_call_operand.vmem [shape: f32[8,128], index: 8, kind: output, shape index: {}]  }
   0x1   :  { %v4379_v0 = vld [vmem:[%s7205_s2 + $0x4] ss:$12 sps:$4 sm:$0xff]   ;;  %271 = vmatprep.mubr.bf16.mxu0 %v7217_v1  ;;  %v4381_v2 = vld [vmem:[%s7205_s2] ss:$12 sps:$4 sm:$0xff]   ;;  %v4382_v3 = vld [vmem:[%s7205_s2 + $0x1c] ss:$12 sps:$4 sm:$0xff]  }
   0x2   :  { %239 = vmatprep.subr.bf16.mxu0 %v4379_v0  ;;  %v4384_v4 = vld [vmem:[%s7205_s2 + $0x18] ss:$12 sps:$4 sm:$0xff]   ;;  %v4385_v5 = vld [vmem:[%s7205_s2 + $0x34] ss:$12 sps:$4 sm:$0xff]   ;;  %v4387_v6 = vld [vmem:[%s7205_s2 + $0x30] ss:$12 sps:$4 sm:$0xff]  }
   0x3   :  { %240 = vmatpush1.bf16.msra.mxu0 %v4381_v2  ;;  %v4388_v7 = vld [vmem:[%s7205_s2 + $0x4c] ss:$12 sps:$4 sm:$0xff]   ;;  %v4399_v8 = vld [vmem:[%s7205_s2 + $0x8] ss:$12 sps:$4 sm:$0xff]   ;;  %v4391_v10 = vld [vmem:[%s7205_s2 + $0x64] ss:$12 sps:$4 sm:$0xff]  }
   0x4   :  { %241 = vmatprep.subr.bf16.mxu0 %v4382_v3  ;;  %v4390_v9 = vld [vmem:[%s7205_s2 + $0x48] ss:$12 sps:$4 sm:$0xff]   ;;  %3804 = vmatprep.subr.bf16.mxu1 %v4399_v8  ;;  %v4403_v11 = vld [vmem:[%s7205_s2 + $0x20] ss:$12 sps:$4 sm:$0xff]   ;;  %v4406_v13 = vld [vmem:[%s7205_s2 + $0x38] ss:$12 sps:$4 sm:$0xff]  }
   0x5   :  { %3805 = vmatpush3.bf16.msra.mxu1 %v4399_v8  ;;  %v4405_v12 = vld [vmem:[%s7206_s0] sm:$0xff]   ;;  %v4394_v15 = vld [vmem:[%s7205_s2 + $0x7c] ss:$12 sps:$4 sm:$0xff]   ;;  %v4401_v21 = vld [vmem:[%s7205_s2 + $0xac] ss:$12 sps:$4 sm:$0xff]   ;;  %v5167_v58 = vshrl.u32 %v72_v57, 7 }
   0x6   :  { %3806 = vmatprep.subr.bf16.mxu1 %v4403_v11  ;;  %v4393_v14 = vld [vmem:[%s7205_s2 + $0x60] ss:$12 sps:$4 sm:$0xff]   ;;  %3820 = vmatprep.mubr.bf16.mxu1 %v4405_v12  ;;  %v4410_v16 = vld [vmem:[%s7205_s2 + $0x50] ss:$12 sps:$4 sm:$0xff]   ;;  %v4396_v17 = vld [vmem:[%s7205_s2 + $0x78] ss:$12 sps:$4 sm:$0xff]  }
   0x7   :  { %242 = vmatpush1.bf16.msra.mxu0 %v4384_v4  ;;  %v4397_v18 = vld [vmem:[%s7205_s2 + $0x94] ss:$12 sps:$4 sm:$0xff]   ;;  %v4400_v20 = vld [vmem:[%s7205_s2 + $0x90] ss:$12 sps:$4 sm:$0xff]   ;;  %v4424_v25 = vld [vmem:[%s7205_s2 + $0x98] ss:$12 sps:$4 sm:$0xff]  }
   0x8   :  { %243 = vmatprep.subr.bf16.mxu0 %v4385_v5  ;;  %v4415_v19 = vld [vmem:[%s7205_s2 + $0x68] ss:$12 sps:$4 sm:$0xff]   ;;  %v4419_v22 = vld [vmem:[%s7205_s2 + $0x80] ss:$12 sps:$4 sm:$0xff]   ;;  %v4948_v24 = vld [vmem:[%s7207_s3 + $0x4] ss:$12 sps:$4 sm:$0xff]  }
   0x9   :  { %3807 = vmatpush3.bf16.msra.mxu1 %v4403_v11  ;;  %v4404_v23 = vld [vmem:[%s7205_s2 + $0xa8] ss:$12 sps:$4 sm:$0xff]   ;;  %v4956_v26 = vld [vmem:[%s7207_s3] ss:$12 sps:$4 sm:$0xff]   ;;  %v4428_v28 = vld [vmem:[%s7205_s2 + $0xb0] ss:$12 sps:$4 sm:$0xff]  }
   0xa   :  { %3808 = vmatprep.subr.bf16.mxu1 %v4406_v13  ;;  %v4962_v27 = vld [vmem:[%s7207_s3 + $0x1c] ss:$12 sps:$4 sm:$0xff]   ;;  %v4971_v29 = vld [vmem:[%s7207_s3 + $0x18] ss:$12 sps:$4 sm:$0xff]   ;;  %v4978_v30 = vld [vmem:[%s7207_s3 + $0x34] ss:$12 sps:$4 sm:$0xff]  }
   0xb   :  { %244 = vmatpush1.bf16.msra.mxu0 %v4387_v6  ;;  %v4414_v31 = vld [vmem:[%s7206_s0 + $0x8] sm:$0xff]   ;;  %v4987_v32 = vld [vmem:[%s7207_s3 + $0x30] ss:$12 sps:$4 sm:$0xff]   ;;  %v5038_v42 = vld [vmem:[%s7207_s3 + $0x38] ss:$12 sps:$4 sm:$0xff]   ;;  %v7216_v59 = vsub.s32 0, %v5167_v58 }
   0xc   :  { %245 = vmatprep.subr.bf16.mxu0 %v4388_v7  ;;  %v4993_v33 = vld [vmem:[%s7207_s3 + $0x4c] ss:$12 sps:$4 sm:$0xff]   ;;  %v4998_v34 = vld [vmem:[%s7207_s3 + $0x48] ss:$12 sps:$4 sm:$0xff]   ;;  %v5012_v38 = vld [vmem:[%s7207_s3 + $0x64] ss:$12 sps:$4 sm:$0xff]  }
   0xd   :  { %3809 = vmatpush3.bf16.msra.mxu1 %v4406_v13  ;;  %v4423_v35 = vld [vmem:[%s7206_s0 + $0x10] sm:$0xff]   ;;  %v5019_v39 = vld [vmem:[%s7207_s3 + $0x20] ss:$12 sps:$4 sm:$0xff]   ;;  %v5031_v41 = vld [vmem:[%s7207_s3 + $0x7c] ss:$12 sps:$4 sm:$0xff]   ;;  %v7215_v61 = vsub.s32 1, %v5167_v58 }
   0xe   :  { %3810 = vmatprep.subr.bf16.mxu1 %v4410_v16  ;;  %v5007_v37 = vld [vmem:[%s7207_s3 + $0x8] ss:$12 sps:$4 sm:$0xff]   ;;  %v5025_v40 = vld [vmem:[%s7207_s3 + $0x60] ss:$12 sps:$4 sm:$0xff]   ;;  %v4432_v43 = vld [vmem:[%s7206_s0 + $0x18] sm:$0xff]   ;;  %v7214_v6 = vsub.s32 2, %v5167_v58 }
   0xf   :  { %246 = vmatpush1.bf16.msra.mxu0 %v4390_v9  ;;  %v5047_v44 = vld [vmem:[%s7207_s3 + $0x78] ss:$12 sps:$4 sm:$0xff]   ;;  %v5053_v45 = vld [vmem:[%s7207_s3 + $0x94] ss:$12 sps:$4 sm:$0xff]   ;;  %v5061_v46 = vld [vmem:[%s7207_s3 + $0x50] ss:$12 sps:$4 sm:$0xff]  }
  0x10   :  { %247 = vmatprep.subr.bf16.mxu0 %v4391_v10  ;;  %v5067_v47 = vld [vmem:[%s7207_s3 + $0x90] ss:$12 sps:$4 sm:$0xff]   ;;  %v5075_v48 = vld [vmem:[%s7207_s3 + $0xac] ss:$12 sps:$4 sm:$0xff]   ;;  %v5082_v49 = vld [vmem:[%s7207_s3 + $0x68] ss:$12 sps:$4 sm:$0xff]  }
  0x11   :  { %3811 = vmatpush3.bf16.msra.mxu1 %v4410_v16  ;;  %v5088_v50 = vld [vmem:[%s7207_s3 + $0xa8] ss:$12 sps:$4 sm:$0xff]   ;;  %v5093_v51 = vld [vmem:[%s7208_s1] sm:$0xff]  ;;  %v5125_v55 = vld [vmem:[%s7207_s3 + $0xb0] ss:$12 sps:$4 sm:$0xff]  }
  0x12   :  { %3812 = vmatprep.subr.bf16.mxu1 %v4415_v19  ;;  %v5102_v52 = vld [vmem:[%s7207_s3 + $0x80] ss:$12 sps:$4 sm:$0xff]   ;;  %v440_v53 = vpack.c.bf16 %v5093_v51, %v5093_v51  ;;  %v5115_v54 = vld [vmem:[%s7207_s3 + $0x98] ss:$12 sps:$4 sm:$0xff]  }
  0x13   :  { %248 = vmatpush1.bf16.msra.mxu0 %v4393_v14  ;;  %v5164_v56 = vld [vmem:[%s7205_s2 + $0xc4] ss:$12 sps:$4 sm:$0xff]   ;;  %v70_v60 = vld [vmem:[%s7209_s4] sm:$0x7] }
  0x14   :  { %249 = vmatprep.subr.bf16.mxu0 %v4394_v15  ;;  %v75_v63 = vrot.slane %v70_v60, %v7216_v59  ;;  %v79_v2 = vrot.slane %v70_v60, %v7215_v61  ;;  %v5185_v8 = vrot.slane %v70_v60, %v7214_v6 }
  0x15   :  { %3813 = vmatpush3.bf16.msra.mxu1 %v4415_v19 }
  0x16   :  { %3814 = vmatprep.subr.bf16.mxu1 %v4419_v22 }
  0x17   :  { %250 = vmatpush1.bf16.msra.mxu0 %v4396_v17 }
  0x18   :  { %251 = vmatprep.subr.bf16.mxu0 %v4397_v18 }
  0x19   :  { %3815 = vmatpush3.bf16.msra.mxu1 %v4419_v22 }
  0x1a   :  { %3816 = vmatprep.subr.bf16.mxu1 %v4424_v25 }
  0x1b   :  { %252 = vmatpush1.bf16.msra.mxu0 %v4400_v20 }
  0x1c   :  { %253 = vmatprep.subr.bf16.mxu0 %v4401_v21 }
  0x1d   :  { %3817 = vmatpush3.bf16.msra.mxu1 %v4424_v25 }
  0x1e   :  { %3818 = vmatprep.subr.bf16.mxu1 %v4428_v28 }
  0x1f   :  { %254 = vmatpush1.bf16.msra.mxu0 %v4404_v23 }
  0x20   :  { %601 = vmatprep.subr.bf16.mxu0 %v4948_v24 }
  0x21   :  { %3819 = vmatpush3.bf16.msra.mxu1 %v4428_v28 }
  0x22   :  { %272 = vmatmul.mubr.bf16.vlgmr.msra.gmra.mrb[0].mxu0 %v4405_v12  ;;  %3828 = vmatprep.subr.bf16.mxu1 %v7219_v36 }
  0x23   :  { %602 = vmatpush1.bf16.msra.mxu0 %v4956_v26  ;;  %281 = vmatprep.mubr.bf16.mxu0 %v7217_v1 }
  0x24   :  { %603 = vmatprep.subr.bf16.mxu0 %v4962_v27  ;;  %3821 = vmatmul.mubr.bf16.vlgmr.msra.gmra.mrb[0].mxu1 %v4414_v31 }
  0x25   :  { %3829 = vmatpush3.bf16.msra.mxu1 %v5007_v37  ;;  %3824 = vmatprep.mubr.bf16.mxu1 %v4423_v35 }
  0x26   :  { %3830 = vmatprep.subr.bf16.mxu1 %v7219_v36 }
  0x27   :  { %604 = vmatpush1.bf16.msra.mxu0 %v4971_v29 }
  0x28   :  { %605 = vmatprep.subr.bf16.mxu0 %v4978_v30 }
  0x29   :  { %3831 = vmatpush3.bf16.msra.mxu1 %v5019_v39 }
  0x2a   :  { %282 = vmatmul.mubr.bf16.gmra.mrb[4].mxu0 %v4414_v31  ;;  %3832 = vmatprep.subr.bf16.mxu1 %v7219_v36 }
  0x2b   :  { %606 = vmatpush1.bf16.msra.mxu0 %v4987_v32  ;;  %291 = vmatprep.mubr.bf16.mxu0 %v7217_v1 }
  0x2c   :  { %607 = vmatprep.subr.bf16.mxu0 %v4993_v33  ;;  %3825 = vmatmul.mubr.bf16.gmra.mrb[4].mxu1 %v4432_v43 }
  0x2d   :  { %3833 = vmatpush3.bf16.msra.mxu1 %v5038_v42  ;;  %3844 = vmatprep.mubr.msk.bf16.mxu1 %vm4829_vm0, %v7219_v36 }
  0x2e   :  { %3834 = vmatprep.subr.bf16.mxu1 %v7219_v36 }
  0x2f   :  { %608 = vmatpush1.bf16.msra.mxu0 %v4998_v34 }
  0x30   :  { %609 = vmatprep.subr.bf16.mxu0 %v5012_v38 }
  0x31   :  { %3835 = vmatpush3.bf16.msra.mxu1 %v5061_v46 }
  0x32   :  { %292 = vmatmul.mubr.bf16.gmra.mrb[8].mxu0 %v4423_v35  ;;  %3836 = vmatprep.subr.bf16.mxu1 %v7219_v36 }
  0x33   :  { %610 = vmatpush1.bf16.msra.mxu0 %v5025_v40  ;;  %301 = vmatprep.mubr.bf16.mxu0 %v7217_v1 }
  0x34   :  { %611 = vmatprep.subr.bf16.mxu0 %v5031_v41 }
  0x35   :  { %3837 = vmatpush3.bf16.msra.mxu1 %v5082_v49 }
  0x36   :  { %3838 = vmatprep.subr.bf16.mxu1 %v7219_v36 }
  0x37   :  { %612 = vmatpush1.bf16.msra.mxu0 %v5047_v44 }
  0x38   :  { %613 = vmatprep.subr.bf16.mxu0 %v5053_v45 }
  0x39   :  { %3839 = vmatpush3.bf16.msra.mxu1 %v5102_v52 }
  0x3a   :  { %302 = vmatmul.mubr.bf16.gmra.mrb[12].mxu0 %v4432_v43  ;;  %3840 = vmatprep.subr.bf16.mxu1 %v7219_v36 }
  0x3b   :  { %614 = vmatpush1.bf16.msra.mxu0 %v5067_v47  ;;  %633 = vmatprep.mubr.bf16.mxu0 %v7217_v1 }
  0x3c   :  { %615 = vmatprep.subr.bf16.mxu0 %v5075_v48 }
  0x3d   :  { %3841 = vmatpush3.bf16.msra.mxu1 %v5115_v54 }
  0x3e   :  { %3842 = vmatprep.subr.bf16.mxu1 %v7219_v36 }
  0x3f   :  { %616 = vmatpush1.bf16.msra.mxu0 %v5088_v50 }
  0x40   :  { %707 = vmatprep.subr.bf16.mxu0 %v4948_v24 }
  0x41   :  { %3843 = vmatpush3.bf16.msra.mxu1 %v5125_v55 }
  0x42   :  { %634 = vmatmul.mubr.bf16.vlgmr.msra.gmra.mrb[16].mxu0 %v440_v53  ;;  %3848 = vmatprep.subr.bf16.mxu1 %v7219_v36 }
  0x43   :  { %708 = vmatpush1.bf16.msra.mxu0 %v4956_v26  ;;  %739 = vmatprep.mubr.bf16.mxu0 %v7217_v1 }
  0x44   :  { %709 = vmatprep.subr.bf16.mxu0 %v4962_v27  ;;  %3845 = vmatmul.mubr.bf16.vlgmr.msra.gmra.mrb[8].mxu1 %v440_v53 }
  0x45   :  { %3849 = vmatpush3.bf16.msra.mxu1 %v5007_v37  ;;  %3864 = vmatprep.mubr.msk.bf16.mxu1 %vm4829_vm0, %v7219_v36 }
  0x46   :  { %3850 = vmatprep.subr.bf16.mxu1 %v7219_v36 }
  0x47   :  { %710 = vmatpush1.bf16.msra.mxu0 %v4971_v29 }
  0x48   :  { %711 = vmatprep.subr.bf16.mxu0 %v4978_v30 }
  0x49   :  { %3851 = vmatpush3.bf16.msra.mxu1 %v5019_v39 }
  0x4a   :  { %3852 = vmatprep.subr.bf16.mxu1 %v7219_v36 }
  0x4b   :  { %712 = vmatpush1.bf16.msra.mxu0 %v4987_v32 }
  0x4c   :  { %713 = vmatprep.subr.bf16.mxu0 %v4993_v33 }
  0x4d   :  { %3853 = vmatpush3.bf16.msra.mxu1 %v5038_v42 }
  0x4e   :  { %3854 = vmatprep.subr.bf16.mxu1 %v7219_v36 }
  0x4f   :  { %714 = vmatpush1.bf16.msra.mxu0 %v4998_v34 }
  0x50   :  { %715 = vmatprep.subr.bf16.mxu0 %v5012_v38 }
  0x51   :  { %3855 = vmatpush3.bf16.msra.mxu1 %v5061_v46 }
  0x52   :  { %3856 = vmatprep.subr.bf16.mxu1 %v7219_v36 }
  0x53   :  { %716 = vmatpush1.bf16.msra.mxu0 %v5025_v40 }
  0x54   :  { %717 = vmatprep.subr.bf16.mxu0 %v5031_v41 }
  0x55   :  { %3857 = vmatpush3.bf16.msra.mxu1 %v5082_v49 }
  0x56   :  { %3858 = vmatprep.subr.bf16.mxu1 %v7219_v36 }
  0x57   :  { %718 = vmatpush1.bf16.msra.mxu0 %v5047_v44 }
  0x58   :  { %719 = vmatprep.subr.bf16.mxu0 %v5053_v45 }
  0x59   :  { %3859 = vmatpush3.bf16.msra.mxu1 %v5102_v52 }
  0x5a   :  { %3860 = vmatprep.subr.bf16.mxu1 %v7219_v36 }
  0x5b   :  { %720 = vmatpush1.bf16.msra.mxu0 %v5067_v47 }
  0x5c   :  { %721 = vmatprep.subr.bf16.mxu0 %v5075_v48 }
  0x5d   :  { %3861 = vmatpush3.bf16.msra.mxu1 %v5115_v54 }
  0x5e   :  { %3862 = vmatprep.subr.bf16.mxu1 %v7219_v36 }
  0x5f   :  { %722 = vmatpush1.bf16.msra.mxu0 %v5088_v50 }
  0x60   :  { %970 = vmatprep.subr.bf16.mxu0 %v5164_v56 }
  0x61   :  { %3863 = vmatpush3.bf16.msra.mxu1 %v5125_v55 }
  0x62   :  { %3868 = vmatprep.subr.bf16.mxu1 %v7219_v36 }
  0xf5   :  { %v273_v62 = vpop.f32.mrb[0].mxu0 }
  0xf6   :  { %v275_v0 = vpop.f32.mrb[1].mxu0  ;;  %v274_v61 = vadd.f32 %v273_v62, %v75_v63  ;;  %v5235_v62 = vld [vmem:[%s7210_s5] ss:$0 sm:$0xff] }
  0xf7   :  { %v277_v3 = vpop.f32.mrb[2].mxu0  ;;  %v3822_v14 = vpop.f32.mrb[0].mxu1  ;;  %v276_v59 = vadd.f32 %v275_v0, %v79_v2 }
  0xf8   :  { %v5178_v4 = vadd.f32 %v277_v3, %v75_v63  ;;  %v279_v5 = vpop.f32.mrb[3].mxu0  ;;  %v5194_v17 = vadd.f32 %v3822_v14, %v5185_v8  ;;  %v346_v18 = vpop.f32.mrb[1].mxu1 }
  0xf9   :  { %v5181_v7 = vadd.f32 %v279_v5, %v79_v2  ;;  %v3823_v20 = vpop.f32.mrb[2].mxu1 }
  0xfa   :  { %7367 = vst [vmem:[#allocation6_spill] sm:$0xff] %v5194_v17  ;;  %v5199_v21 = vadd.f32 %v3823_v20, %v5185_v8  ;;  %v349_v22 = vpop.f32.mrb[3].mxu1  ;;  %v5418_v17 = vld [vmem:[%s7207_s3 + $0xd8] ss:$12 sps:$4 sm:$0xff]  }
  0xfb   :  { %v5202_v23 = vadd.f32 %v349_v22, %v5185_v8  ;;  %7386 = vst [vmem:[#allocation23_spill] sm:$0xff] %v5418_v17 }
  0xfc   :  { %7369 = vst [vmem:[#allocation8_spill] sm:$0xff] %v5199_v21  ;;  %v5400_v21 = vld [vmem:[%s7207_s3 + $0xc0] ss:$12 sps:$4 sm:$0xff]  }
  0xfd   :  { %v283_v9 = vpop.f32.mrb[4].mxu0 }
  0xfe   :  { %v5187_v10 = vadd.f32 %v283_v9, %v75_v63  ;;  %v285_v11 = vpop.f32.mrb[5].mxu0 }
  0xff   :  { %v5189_v12 = vadd.f32 %v285_v11, %v79_v2  ;;  %v287_v13 = vpop.f32.mrb[6].mxu0  ;;  %v3826_v53 = vpop.f32.mrb[4].mxu1 }
 0x100   :  { %7364 = vst [vmem:[#allocation3_spill] sm:$0xff] %v5187_v10  ;;  %v5191_v15 = vadd.f32 %v287_v13, %v75_v63  ;;  %v289_v16 = vpop.f32.mrb[7].mxu0  ;;  %v5211_v3 = vadd.f32 %v3826_v53, %v5185_v8  ;;  %v362_v5 = vpop.f32.mrb[5].mxu1  ;;  %v5440_v10 = vld [vmem:[%s7207_s3 + $0xf0] ss:$12 sps:$4 sm:$0xff]  }
 0x101   :  { %7365 = vst [vmem:[#allocation4_spill] sm:$0xff] %v5189_v12  ;;  %v5196_v19 = vadd.f32 %v289_v16, %v79_v2  ;;  %v5216_v11 = vadd.f32 %v362_v5, %v5185_v8  ;;  %v3827_v13 = vpop.f32.mrb[6].mxu1  ;;  %v5424_v12 = vld [vmem:[%s7207_s3 + $0xe0] ss:$12 sps:$4 sm:$0xff]   ;;  %7389 = vst [vmem:[#allocation26_spill] sm:$0xff] %v5440_v10 }
 0x102   :  { %7366 = vst [vmem:[#allocation5_spill] sm:$0xff] %v5191_v15  ;;  %7373 = vst [vmem:[#allocation12_spill] sm:$0xff] %v5211_v3  ;;  %v5219_v14 = vadd.f32 %v3827_v13, %v5185_v8  ;;  %v365_v16 = vpop.f32.mrb[7].mxu1  ;;  %v5411_v15 = vld [vmem:[%s7207_s3 + $0xdc] ss:$12 sps:$4 sm:$0xff]  }
 0x103   :  { %7368 = vst [vmem:[#allocation7_spill] sm:$0xff] %v5196_v19  ;;  %7375 = vst [vmem:[#allocation14_spill] sm:$0xff] %v5216_v11  ;;  %v5222_v20 = vadd.f32 %v365_v16, %v5185_v8  ;;  %v5381_v11 = vld [vmem:[%s7205_s2 + $0x168] ss:$12 sps:$4 sm:$0xff]  }
 0x104   :  { %7376 = vst [vmem:[#allocation15_spill] sm:$0xff] %v5219_v14  ;;  %v5405_v19 = vld [vmem:[%s7207_s3 + $0xc8] ss:$12 sps:$4 sm:$0xff]   ;;  %7385 = vst [vmem:[#allocation22_spill] sm:$0xff] %v5411_v15 }
 0x105   :  { %v293_v25 = vpop.f32.mrb[8].mxu0  ;;  %7377 = vst [vmem:[#allocation16_spill] sm:$0xff] %v5222_v20  ;;  %7384 = vst [vmem:[#allocation21_spill] sm:$0xff] %v5405_v19 }
 0x106   :  { %v5204_v28 = vadd.f32 %v293_v25, %v75_v63  ;;  %v295_v31 = vpop.f32.mrb[9].mxu0  ;;  %7387 = vst [vmem:[#allocation24_spill] sm:$0xff] %v5424_v12 }
 0x107   :  { %v5206_v35 = vadd.f32 %v295_v31, %v79_v2  ;;  %v297_v43 = vpop.f32.mrb[10].mxu0 }
 0x108   :  { %7370 = vst [vmem:[#allocation9_spill] sm:$0xff] %v5204_v28  ;;  %v5208_v57 = vadd.f32 %v297_v43, %v75_v63  ;;  %v299_v60 = vpop.f32.mrb[11].mxu0  ;;  %v5393_v28 = vld [vmem:[%s7207_s3 + $0xc4] ss:$12 sps:$4 sm:$0xff]  }
 0x109   :  { %7371 = vst [vmem:[#allocation10_spill] sm:$0xff] %v5206_v35  ;;  %v5213_v9 = vadd.f32 %v299_v60, %v79_v2  ;;  %v5386_v35 = vld [vmem:[%s7205_s2 + $0x170] ss:$12 sps:$4 sm:$0xff]  }
 0x10a   :  { %7372 = vst [vmem:[#allocation11_spill] sm:$0xff] %v5208_v57  ;;  %v5374_v57 = vld [vmem:[%s7205_s2 + $0x16c] ss:$12 sps:$4 sm:$0xff]  }
 0x10b   :  { %7374 = vst [vmem:[#allocation13_spill] sm:$0xff] %v5213_v9 }
 0x10d   :  { %v303_v22 = vpop.f32.mrb[12].mxu0 }
 0x10e   :  { %v5224_v25 = vadd.f32 %v303_v22, %v75_v63  ;;  %v305_v31 = vpop.f32.mrb[13].mxu0 }
 0x10f   :  { %v5226_v43 = vadd.f32 %v305_v31, %v79_v2  ;;  %v307_v53 = vpop.f32.mrb[14].mxu0 }
 0x110   :  { %7378 = vst [vmem:[#allocation17_spill] sm:$0xff] %v5224_v25  ;;  %v5228_v60 = vadd.f32 %v307_v53, %v75_v63  ;;  %v309_v6 = vpop.f32.mrb[15].mxu0 }
 0x111   :  { %7379 = vst [vmem:[#allocation18_spill] sm:$0xff] %v5226_v43  ;;  %v5230_v5 = vadd.f32 %v309_v6, %v79_v2 }
 0x112   :  { %7380 = vst [vmem:[#allocation19_spill] sm:$0xff] %v5228_v60 }
 0x113   :  { %7381 = vst [vmem:[#allocation20_spill] sm:$0xff] %v5230_v5  ;;  %v5367_v5 = vld [vmem:[%s7205_s2 + $0x158] ss:$12 sps:$4 sm:$0xff]  }
 0x115   :  { %v635_v13 = vpop.f32.mrb[16].mxu0 }
 0x116   :  { %v682_v1 = vadd.f32 %v635_v13, %v274_v61  ;;  %v637_v36 = vpop.f32.mrb[17].mxu0  ;;  %v347_v61 = vadd.f32 %v346_v18, %v5185_v8  ;;  %v5250_v8 = vld [vmem:[%s7205_s2 + $0xc8] ss:$12 sps:$4 sm:$0xff]   ;;  %v7382_v13 = vmov 0.0  }
 0x117   :  { %v689_v14 = vadd.f32 %v637_v36, %v276_v59  ;;  %v639_v16 = vpop.f32.mrb[18].mxu0  ;;  %v676_v22 = vpop.f32.mrb[8].mxu1 }
 0x118   :  { %v3414_v3 = vmul.f32 -1.442695, %v682_v1  ;;  %v640_v20 = vpop.f32.mrb[19].mxu0  ;;  %v3846_v25 = vpop.f32.mrb[9].mxu1  ;;  %v696_v36 = vadd.f32 %v5235_v62, %v676_v22  ;;  %v5276_v16 = vld [vmem:[%s7205_s2 + $0xf4] ss:$12 sps:$4 sm:$0xff]  }
 0x119   :  { %v679_v31 = vpop.f32.mrb[10].mxu1  ;;  %v3415_v43 = vmul.f32 -1.442695, %v689_v14  ;;  %v5245_v25 = vld [vmem:[%s7205_s2 + $0xc0] ss:$12 sps:$4 sm:$0xff]   ;;  %v7383_v22 = vmov 0  }
 0x11a   :  { %4519 = vpow2.f32 %v3414_v3  ;;  %v3847_v9 = vpop.f32.mrb[11].mxu1  ;;  %v5286_v31 = vld [vmem:[%s7205_s2 + $0xf0] ss:$12 sps:$4 sm:$0xff]  }
 0x11b   :  { %4521 = vpow2.f32 %v3415_v43  ;;  %v5264_v43 = vld [vmem:[%s7205_s2 + $0xd8] ss:$12 sps:$4 sm:$0xff]  }
 0x124   :  { %v4520_v53 = vpop.eup %4519 }
 0x125   :  { %v686_v60 = vadd.f32 1.0, %v4520_v53  ;;  %v4522_v59 = vpop.eup %4521  ;;  %v5291_v53 = vld [vmem:[%s7205_s2 + $0xf8] ss:$12 sps:$4 sm:$0xff]  }
 0x126   :  { %v693_v0 = vadd.f32 1.0, %v4522_v59  ;;  %v5305_v59 = vld [vmem:[%s7205_s2 + $0x108] ss:$12 sps:$4 sm:$0xff]  }
 0x127   :  { %4523 = vrcp.f32 %v686_v60  ;;  %v5269_v60 = vld [vmem:[%s7205_s2 + $0xe0] ss:$12 sps:$4 sm:$0xff]  }
 0x131   :  { %v4524_v1 = vpop.eup %4523 }
 0x132   :  { %v697_v63 = vmul.f32 %v4524_v1, %v696_v36  ;;  %v5298_v36 = vld [vmem:[%s7205_s2 + $0x10c] ss:$12 sps:$4 sm:$0xff]   ;;  %v5310_v1 = vld [vmem:[%s7205_s2 + $0x110] ss:$12 sps:$4 sm:$0xff]  }
 0x134   :  { %v698_v2 = vadd.f32 %v697_v63, %v347_v61  ;;  %v5317_v61 = vld [vmem:[%s7205_s2 + $0x124] ss:$12 sps:$4 sm:$0xff]   ;;  %v5324_v63 = vld [vmem:[%s7205_s2 + $0x120] ss:$12 sps:$4 sm:$0xff]  }
 0x136   :  { %4525 = vtanh.f32 %v698_v2  ;;  %v5336_v2 = vld [vmem:[%s7205_s2 + $0x13c] ss:$12 sps:$4 sm:$0xff]  }
 0x137   :  { %4527 = vrcp.f32 %v693_v0  ;;  %v5329_v0 = vld [vmem:[%s7205_s2 + $0x128] ss:$12 sps:$4 sm:$0xff]  }
 0x140   :  { %v4526_v6 = vpop.eup %4525 }
 0x141   :  { %v700_v3 = vsub.f32 %v5093_v51, %v4526_v6  ;;  %v4528_v9 = vpop.eup %4527  ;;  %v5257_v51 = vld [vmem:[%s7205_s2 + $0xdc] ss:$12 sps:$4 sm:$0xff]  }
 0x143   :  { %v701_v14 = vmul.f32 %v4528_v9, %v700_v3  ;;  %v5348_v3 = vld [vmem:[%s7205_s2 + $0x140] ss:$12 sps:$4 sm:$0xff]  }
 0x144   :  { %v5355_v9 = vld [vmem:[%s7205_s2 + $0x154] ss:$12 sps:$4 sm:$0xff]  }
 0x145   :  { %v5240_v20 = vadd.f32 %v4526_v6, %v701_v14  ;;  %v5343_v6 = vld [vmem:[%s7205_s2 + $0x138] ss:$12 sps:$4 sm:$0xff]   ;;  %v5362_v14 = vld [vmem:[%s7205_s2 + $0x150] ss:$12 sps:$4 sm:$0xff]  }
 0x147   :  { %v706_v18 = vpack.c.bf16 %v5240_v20, %v5240_v20 }
 0x149   :  { %740 = vmatmul.mubr.bf16.vlgmr.msra.gmra.mrb[20].mxu0 %v706_v18  ;;  %3865 = vmatmul.mubr.bf16.vlgmr.msra.gmra.mrb[12].mxu1 %v706_v18 }
 0x14a   :  { %971 = vmatpush1.bf16.msra.mxu0 %v5245_v25  ;;  %3869 = vmatpush3.bf16.msra.mxu1 %v5250_v8 }
 0x14b   :  { %972 = vmatprep.subr.bf16.mxu0 %v5257_v51  ;;  %3870 = vmatprep.subr.bf16.mxu1 %v7382_v13 }
 0x14c   :  { %1002 = vmatprep.mubr.bf16.mxu0 %v7383_v22  ;;  %3884 = vmatprep.mubr.msk.bf16.mxu1 %vm4829_vm0, %v7382_v13 }
 0x14e   :  { %973 = vmatpush1.bf16.msra.mxu0 %v5264_v43  ;;  %3871 = vmatpush3.bf16.msra.mxu1 %v5269_v60 }
 0x14f   :  { %974 = vmatprep.subr.bf16.mxu0 %v5276_v16  ;;  %3872 = vmatprep.subr.bf16.mxu1 %v7382_v13 }
 0x152   :  { %975 = vmatpush1.bf16.msra.mxu0 %v5286_v31  ;;  %3873 = vmatpush3.bf16.msra.mxu1 %v5291_v53 }
 0x153   :  { %976 = vmatprep.subr.bf16.mxu0 %v5298_v36  ;;  %3874 = vmatprep.subr.bf16.mxu1 %v7382_v13 }
 0x156   :  { %977 = vmatpush1.bf16.msra.mxu0 %v5305_v59  ;;  %3875 = vmatpush3.bf16.msra.mxu1 %v5310_v1 }
 0x157   :  { %978 = vmatprep.subr.bf16.mxu0 %v5317_v61  ;;  %3876 = vmatprep.subr.bf16.mxu1 %v7382_v13 }
 0x15a   :  { %979 = vmatpush1.bf16.msra.mxu0 %v5324_v63  ;;  %3877 = vmatpush3.bf16.msra.mxu1 %v5329_v0 }
 0x15b   :  { %980 = vmatprep.subr.bf16.mxu0 %v5336_v2  ;;  %3878 = vmatprep.subr.bf16.mxu1 %v7382_v13 }
 0x15e   :  { %981 = vmatpush1.bf16.msra.mxu0 %v5343_v6  ;;  %3879 = vmatpush3.bf16.msra.mxu1 %v5348_v3 }
 0x15f   :  { %982 = vmatprep.subr.bf16.mxu0 %v5355_v9  ;;  %3880 = vmatprep.subr.bf16.mxu1 %v7382_v13 }
 0x162   :  { %983 = vmatpush1.bf16.msra.mxu0 %v5362_v14  ;;  %3881 = vmatpush3.bf16.msra.mxu1 %v5367_v5 }
 0x163   :  { %984 = vmatprep.subr.bf16.mxu0 %v5374_v57  ;;  %3882 = vmatprep.subr.bf16.mxu1 %v7382_v13 }
 0x166   :  { %985 = vmatpush1.bf16.msra.mxu0 %v5381_v11  ;;  %3883 = vmatpush3.bf16.msra.mxu1 %v5386_v35 }
 0x167   :  { %1213 = vmatprep.subr.bf16.mxu0 %v5393_v28  ;;  %3888 = vmatprep.subr.bf16.mxu1 %v7382_v13 }
 0x169   :  { %1003 = vmatmul.mubr.bf16.vlgmr.msra.gmra.mrb[24].mxu0 %v706_v18  ;;  %3885 = vmatmul.mubr.bf16.vlgmr.msra.gmra.mrb[16].mxu1 %v706_v18  ;;  %v5430_v18 = vld [vmem:[%s7207_s3 + $0xf4] ss:$12 sps:$4 sm:$0xff]  }
 0x16a   :  { %1214 = vmatpush1.bf16.msra.mxu0 %v5400_v21  ;;  %3889 = vmatpush3.bf16.msra.mxu1 %v5405_v19  ;;  %7388 = vst [vmem:[#allocation25_spill] sm:$0xff] %v5430_v18  ;;  %v5452_v19 = vld [vmem:[%s7207_s3 + $0x10c] ss:$12 sps:$4 sm:$0xff]  }
 0x16b   :  { %1215 = vmatprep.subr.bf16.mxu0 %v5411_v15  ;;  %3890 = vmatprep.subr.bf16.mxu1 %v7382_v13  ;;  %v5446_v15 = vld [vmem:[%s7207_s3 + $0xf8] ss:$12 sps:$4 sm:$0xff]   ;;  %7391 = vst [vmem:[#allocation28_spill] sm:$0xff] %v5452_v19 }
 0x16c   :  { %1245 = vmatprep.mubr.bf16.mxu0 %v7383_v22  ;;  %3904 = vmatprep.mubr.msk.bf16.mxu1 %vm4829_vm0, %v7382_v13  ;;  %7390 = vst [vmem:[#allocation27_spill] sm:$0xff] %v5446_v15 }
 0x16e   :  { %1216 = vmatpush1.bf16.msra.mxu0 %v5418_v17  ;;  %3891 = vmatpush3.bf16.msra.mxu1 %v5424_v12  ;;  %v5459_v12 = vld [vmem:[%s7207_s3 + $0x108] ss:$12 sps:$4 sm:$0xff]   ;;  %v5471_v17 = vld [vmem:[%s7207_s3 + $0x124] ss:$12 sps:$4 sm:$0xff]  }
 0x16f   :  { %1217 = vmatprep.subr.bf16.mxu0 %v5430_v18  ;;  %3892 = vmatprep.subr.bf16.mxu1 %v7382_v13  ;;  %7392 = vst [vmem:[#allocation29_spill] sm:$0xff] %v5459_v12  ;;  %v5465_v18 = vld [vmem:[%s7207_s3 + $0x110] ss:$12 sps:$4 sm:$0xff]   ;;  %7394 = vst [vmem:[#allocation31_spill] sm:$0xff] %v5471_v17 }
 0x170   :  { %7393 = vst [vmem:[#allocation30_spill] sm:$0xff] %v5465_v18 }
 0x172   :  { %1218 = vmatpush1.bf16.msra.mxu0 %v5440_v10  ;;  %3893 = vmatpush3.bf16.msra.mxu1 %v5446_v15  ;;  %v5478_v15 = vld [vmem:[%s7207_s3 + $0x120] ss:$12 sps:$4 sm:$0xff]   ;;  %v5490_v10 = vld [vmem:[%s7207_s3 + $0x13c] ss:$12 sps:$4 sm:$0xff]  }
 0x173   :  { %1219 = vmatprep.subr.bf16.mxu0 %v5452_v19  ;;  %3894 = vmatprep.subr.bf16.mxu1 %v7382_v13  ;;  %7395 = vst [vmem:[#allocation32_spill] sm:$0xff] %v5478_v15  ;;  %v5484_v19 = vld [vmem:[%s7207_s3 + $0x128] ss:$12 sps:$4 sm:$0xff]   ;;  %7397 = vst [vmem:[#allocation34_spill] sm:$0xff] %v5490_v10 }
 0x174   :  { %7396 = vst [vmem:[#allocation33_spill] sm:$0xff] %v5484_v19 }
 0x176   :  { %1220 = vmatpush1.bf16.msra.mxu0 %v5459_v12  ;;  %3895 = vmatpush3.bf16.msra.mxu1 %v5465_v18  ;;  %v5497_v18 = vld [vmem:[%s7207_s3 + $0x138] ss:$12 sps:$4 sm:$0xff]   ;;  %v5509_v12 = vld [vmem:[%s7207_s3 + $0x154] ss:$12 sps:$4 sm:$0xff]  }
 0x177   :  { %1221 = vmatprep.subr.bf16.mxu0 %v5471_v17  ;;  %3896 = vmatprep.subr.bf16.mxu1 %v7382_v13  ;;  %7398 = vst [vmem:[#allocation35_spill] sm:$0xff] %v5497_v18  ;;  %v5503_v17 = vld [vmem:[%s7207_s3 + $0x140] ss:$12 sps:$4 sm:$0xff]   ;;  %7400 = vst [vmem:[#allocation37_spill] sm:$0xff] %v5509_v12 }
 0x178   :  { %7399 = vst [vmem:[#allocation36_spill] sm:$0xff] %v5503_v17 }
 0x17a   :  { %1222 = vmatpush1.bf16.msra.mxu0 %v5478_v15  ;;  %3897 = vmatpush3.bf16.msra.mxu1 %v5484_v19  ;;  %v5516_v19 = vld [vmem:[%s7207_s3 + $0x150] ss:$12 sps:$4 sm:$0xff]   ;;  %v5528_v15 = vld [vmem:[%s7207_s3 + $0x16c] ss:$12 sps:$4 sm:$0xff]  }
 0x17b   :  { %1223 = vmatprep.subr.bf16.mxu0 %v5490_v10  ;;  %3898 = vmatprep.subr.bf16.mxu1 %v7382_v13  ;;  %7401 = vst [vmem:[#allocation38_spill] sm:$0xff] %v5516_v19  ;;  %v5522_v10 = vld [vmem:[%s7207_s3 + $0x158] ss:$12 sps:$4 sm:$0xff]   ;;  %7403 = vst [vmem:[#allocation40_spill] sm:$0xff] %v5528_v15 }
 0x17c   :  { %7402 = vst [vmem:[#allocation39_spill] sm:$0xff] %v5522_v10 }
 0x17e   :  { %1224 = vmatpush1.bf16.msra.mxu0 %v5497_v18  ;;  %3899 = vmatpush3.bf16.msra.mxu1 %v5503_v17  ;;  %v5535_v17 = vld [vmem:[%s7207_s3 + $0x168] ss:$12 sps:$4 sm:$0xff]  }
 0x17f   :  { %1225 = vmatprep.subr.bf16.mxu0 %v5509_v12  ;;  %3900 = vmatprep.subr.bf16.mxu1 %v7382_v13  ;;  %7404 = vst [vmem:[#allocation41_spill] sm:$0xff] %v5535_v17  ;;  %v5540_v18 = vld [vmem:[%s7208_s1 + $0x8] sm:$0xff]  ;;  %v5546_v12 = vld [vmem:[%s7207_s3 + $0x170] ss:$12 sps:$4 sm:$0xff]  }
 0x180   :  { %7405 = vst [vmem:[#allocation42_spill] sm:$0xff] %v5546_v12 }
 0x182   :  { %1226 = vmatpush1.bf16.msra.mxu0 %v5516_v19  ;;  %3901 = vmatpush3.bf16.msra.mxu1 %v5522_v10  ;;  %v1051_v19 = vpack.c.bf16 %v5540_v18, %v5540_v18 }
 0x183   :  { %1227 = vmatprep.subr.bf16.mxu0 %v5528_v15  ;;  %3902 = vmatprep.subr.bf16.mxu1 %v7382_v13 }
 0x186   :  { %1228 = vmatpush1.bf16.msra.mxu0 %v5535_v17  ;;  %3903 = vmatpush3.bf16.msra.mxu1 %v5546_v12 }
 0x187   :  { %1319 = vmatprep.subr.bf16.mxu0 %v4948_v24  ;;  %3908 = vmatprep.subr.bf16.mxu1 %v7382_v13 }
 0x189   :  { %1246 = vmatmul.mubr.bf16.vlgmr.msra.gmra.mrb[24].mxu0 %v1051_v19  ;;  %3905 = vmatmul.mubr.bf16.vlgmr.msra.gmra.mrb[20].mxu1 %v1051_v19 }
 0x18a   :  { %1320 = vmatpush1.bf16.msra.mxu0 %v4956_v26  ;;  %3909 = vmatpush3.bf16.msra.mxu1 %v5007_v37 }
 0x18b   :  { %1321 = vmatprep.subr.bf16.mxu0 %v4962_v27  ;;  %3910 = vmatprep.subr.bf16.mxu1 %v7382_v13 }
 0x18c   :  { %1351 = vmatprep.mubr.bf16.mxu0 %v7383_v22  ;;  %3924 = vmatprep.mubr.msk.bf16.mxu1 %vm4829_vm0, %v7382_v13 }
 0x18e   :  { %1322 = vmatpush1.bf16.msra.mxu0 %v4971_v29  ;;  %3911 = vmatpush3.bf16.msra.mxu1 %v5019_v39 }
 0x18f   :  { %1323 = vmatprep.subr.bf16.mxu0 %v4978_v30  ;;  %3912 = vmatprep.subr.bf16.mxu1 %v7382_v13 }
 0x192   :  { %1324 = vmatpush1.bf16.msra.mxu0 %v4987_v32  ;;  %3913 = vmatpush3.bf16.msra.mxu1 %v5038_v42 }
 0x193   :  { %1325 = vmatprep.subr.bf16.mxu0 %v4993_v33  ;;  %3914 = vmatprep.subr.bf16.mxu1 %v7382_v13 }
 0x196   :  { %1326 = vmatpush1.bf16.msra.mxu0 %v4998_v34  ;;  %3915 = vmatpush3.bf16.msra.mxu1 %v5061_v46 }
 0x197   :  { %1327 = vmatprep.subr.bf16.mxu0 %v5012_v38  ;;  %3916 = vmatprep.subr.bf16.mxu1 %v7382_v13 }
 0x19a   :  { %1328 = vmatpush1.bf16.msra.mxu0 %v5025_v40  ;;  %3917 = vmatpush3.bf16.msra.mxu1 %v5082_v49 }
 0x19b   :  { %1329 = vmatprep.subr.bf16.mxu0 %v5031_v41  ;;  %3918 = vmatprep.subr.bf16.mxu1 %v7382_v13 }
 0x19e   :  { %1330 = vmatpush1.bf16.msra.mxu0 %v5047_v44  ;;  %3919 = vmatpush3.bf16.msra.mxu1 %v5102_v52 }
 0x19f   :  { %1331 = vmatprep.subr.bf16.mxu0 %v5053_v45  ;;  %3920 = vmatprep.subr.bf16.mxu1 %v7382_v13 }
 0x1a2   :  { %1332 = vmatpush1.bf16.msra.mxu0 %v5067_v47  ;;  %3921 = vmatpush3.bf16.msra.mxu1 %v5115_v54 }
 0x1a3   :  { %1333 = vmatprep.subr.bf16.mxu0 %v5075_v48  ;;  %3922 = vmatprep.subr.bf16.mxu1 %v7382_v13 }
 0x1a6   :  { %1334 = vmatpush1.bf16.msra.mxu0 %v5088_v50  ;;  %3923 = vmatpush3.bf16.msra.mxu1 %v5125_v55 }
 0x1a7   :  { %1421 = vmatprep.subr.bf16.mxu0 %v5164_v56  ;;  %3928 = vmatprep.subr.bf16.mxu1 %v7382_v13 }
 0x21c   :  { %v741_v24 = vpop.f32.mrb[20].mxu0  ;;  %v782_v26 = vpop.f32.mrb[12].mxu1 }
 0x21d   :  { %v788_v27 = vadd.f32 %v741_v24, %v5178_v4  ;;  %v743_v29 = vpop.f32.mrb[21].mxu0  ;;  %v3866_v30 = vpop.f32.mrb[13].mxu1  ;;  %v802_v45 = vadd.f32 %v5235_v62, %v782_v26 }
 0x21e   :  { %v795_v32 = vadd.f32 %v743_v29, %v5181_v7  ;;  %v745_v33 = vpop.f32.mrb[22].mxu0  ;;  %v785_v34 = vpop.f32.mrb[14].mxu1 }
 0x21f   :  { %v3416_v37 = vmul.f32 -1.442695, %v788_v27  ;;  %v746_v38 = vpop.f32.mrb[23].mxu0  ;;  %v3867_v39 = vpop.f32.mrb[15].mxu1 }
 0x220   :  { %v3417_v40 = vmul.f32 -1.442695, %v795_v32 }
 0x221   :  { %4529 = vpow2.f32 %v3416_v37 }
 0x222   :  { %4531 = vpow2.f32 %v3417_v40 }
 0x22b   :  { %v4530_v41 = vpop.eup %4529 }
 0x22c   :  { %v792_v42 = vadd.f32 1.0, %v4530_v41  ;;  %v4532_v44 = vpop.eup %4531 }
 0x22d   :  { %v799_v4 = vadd.f32 1.0, %v4532_v44 }
 0x22e   :  { %4533 = vrcp.f32 %v792_v42 }
 0x238   :  { %v4534_v46 = vpop.eup %4533 }
 0x239   :  { %v803_v47 = vmul.f32 %v4534_v46, %v802_v45 }
 0x23b   :  { %v804_v48 = vadd.f32 %v803_v47, %v5202_v23  ;;  %v3385_v23 = vld [vmem:[%s7209_s4 + $0x3] sm:$0x7] }
 0x23c   :  { %v5595_v7 = vpop.f32.mrb[16].mxu1 }
 0x23d   :  { %4535 = vtanh.f32 %v804_v48  ;;  %v3886_v19 = vpop.f32.mrb[17].mxu1 }
 0x23e   :  { %v1048_v24 = vpop.f32.mrb[18].mxu1  ;;  %4537 = vrcp.f32 %v799_v4  ;;  %v7407_v4 = vsub.s32 1, %v5167_v58 }
 0x23f   :  { %v3887_v27 = vpop.f32.mrb[19].mxu1 }
 0x240   :  { %v5631_v19 = vrot.slane %v3385_v23, %v7407_v4  ;;  %v7414_v4 = vld [vmem:[#allocation26_spill] sm:$0xff] }
 0x247   :  { %v4536_v29 = vpop.eup %4535 }
 0x248   :  { %v806_v30 = vsub.f32 %v5240_v20, %v4536_v29  ;;  %v4538_v32 = vpop.eup %4537  ;;  %v7406_v20 = vsub.s32 0, %v5167_v58 }
 0x24a   :  { %v807_v33 = vmul.f32 %v4538_v32, %v806_v30  ;;  %v5620_v37 = vrot.slane %v3385_v23, %v7406_v20  ;;  %v7408_v32 = vld [vmem:[#allocation21_spill] sm:$0xff]  ;;  %v7409_v20 = vld [vmem:[#allocation22_spill] sm:$0xff] }
 0x24c   :  { %v5598_v34 = vadd.f32 %v4536_v29, %v807_v33  ;;  %v5655_v33 = vld [vmem:[%s7210_s5 + $0x1] ss:$0 sm:$0xff] }
 0x24e   :  { %v1318_v26 = vpack.c.bf16 %v5598_v34, %v5598_v34 }
 0x250   :  { %1352 = vmatmul.mubr.bf16.vlgmr.msra.gmra.mrb[28].mxu0 %v1318_v26  ;;  %3925 = vmatmul.mubr.bf16.vlgmr.msra.gmra.mrb[24].mxu1 %v1318_v26 }
 0x251   :  { %1422 = vmatpush1.bf16.msra.mxu0 %v5245_v25  ;;  %3929 = vmatpush3.bf16.msra.mxu1 %v5250_v8 }
 0x252   :  { %1423 = vmatprep.subr.bf16.mxu0 %v5257_v51  ;;  %3930 = vmatprep.subr.bf16.mxu1 %v7382_v13 }
 0x253   :  { %1453 = vmatprep.mubr.bf16.mxu0 %v7383_v22  ;;  %3944 = vmatprep.mubr.msk.bf16.mxu1 %vm4829_vm0, %v7382_v13 }
 0x255   :  { %1424 = vmatpush1.bf16.msra.mxu0 %v5264_v43  ;;  %3931 = vmatpush3.bf16.msra.mxu1 %v5269_v60 }
 0x256   :  { %1425 = vmatprep.subr.bf16.mxu0 %v5276_v16  ;;  %3932 = vmatprep.subr.bf16.mxu1 %v7382_v13 }
 0x259   :  { %1426 = vmatpush1.bf16.msra.mxu0 %v5286_v31  ;;  %3933 = vmatpush3.bf16.msra.mxu1 %v5291_v53 }
 0x25a   :  { %1427 = vmatprep.subr.bf16.mxu0 %v5298_v36  ;;  %3934 = vmatprep.subr.bf16.mxu1 %v7382_v13 }
 0x25c   :  { %v1247_v38 = vpop.f32.mrb[24].mxu0  ;;  %v1288_v39 = vpop.f32.mrb[20].mxu1 }
 0x25d   :  { %v4328_v40 = vadd.f32 %v1247_v38, %v5620_v37  ;;  %v1249_v41 = vpop.f32.mrb[25].mxu0  ;;  %1428 = vmatpush1.bf16.msra.mxu0 %v5305_v59  ;;  %3935 = vmatpush3.bf16.msra.mxu1 %v5310_v1  ;;  %v3906_v42 = vpop.f32.mrb[21].mxu1 }
 0x25e   :  { %v1251_v44 = vpop.f32.mrb[26].mxu0  ;;  %1429 = vmatprep.subr.bf16.mxu0 %v5317_v61  ;;  %3936 = vmatprep.subr.bf16.mxu1 %v7382_v13  ;;  %v1291_v45 = vpop.f32.mrb[22].mxu1  ;;  %v4329_v24 = vadd.f32 %v1249_v41, %v5631_v19  ;;  %v7411_v41 = vld [vmem:[#allocation23_spill] sm:$0xff]  ;;  %v7412_v42 = vld [vmem:[#allocation24_spill] sm:$0xff] }
 0x25f   :  { %v3530_v46 = vmul.f32 -1.442695, %v4328_v40  ;;  %v1252_v47 = vpop.f32.mrb[27].mxu0  ;;  %v3907_v48 = vpop.f32.mrb[23].mxu1  ;;  %v1308_v40 = vadd.f32 %v5655_v33, %v1288_v39  ;;  %v7413_v44 = vld [vmem:[#allocation25_spill] sm:$0xff] }
 0x260   :  { %v3531_v27 = vmul.f32 -1.442695, %v4329_v24 }
 0x261   :  { %4539 = vpow2.f32 %v3530_v46  ;;  %1430 = vmatpush1.bf16.msra.mxu0 %v5324_v63  ;;  %3937 = vmatpush3.bf16.msra.mxu1 %v5329_v0 }
 0x262   :  { %1431 = vmatprep.subr.bf16.mxu0 %v5336_v2  ;;  %3938 = vmatprep.subr.bf16.mxu1 %v7382_v13  ;;  %4541 = vpow2.f32 %v3531_v27  ;;  %v7417_v27 = vld [vmem:[#allocation29_spill] sm:$0xff] }
 0x265   :  { %1432 = vmatpush1.bf16.msra.mxu0 %v5343_v6  ;;  %3939 = vmatpush3.bf16.msra.mxu1 %v5348_v3 }
 0x266   :  { %1433 = vmatprep.subr.bf16.mxu0 %v5355_v9  ;;  %3940 = vmatprep.subr.bf16.mxu1 %v7382_v13 }
 0x269   :  { %1434 = vmatpush1.bf16.msra.mxu0 %v5362_v14  ;;  %3941 = vmatpush3.bf16.msra.mxu1 %v5367_v5 }
 0x26a   :  { %1435 = vmatprep.subr.bf16.mxu0 %v5374_v57  ;;  %3942 = vmatprep.subr.bf16.mxu1 %v7382_v13 }
 0x26b   :  { %v4540_v29 = vpop.eup %4539 }
 0x26c   :  { %v1298_v30 = vadd.f32 1.0, %v4540_v29  ;;  %v4542_v45 = vpop.eup %4541  ;;  %v7418_v29 = vld [vmem:[#allocation30_spill] sm:$0xff] }
 0x26d   :  { %1436 = vmatpush1.bf16.msra.mxu0 %v5381_v11  ;;  %3943 = vmatpush3.bf16.msra.mxu1 %v5386_v35  ;;  %v1305_v39 = vadd.f32 1.0, %v4542_v45  ;;  %v7423_v45 = vld [vmem:[#allocation35_spill] sm:$0xff] }
 0x26e   :  { %4543 = vrcp.f32 %v1298_v30  ;;  %1503 = vmatprep.subr.bf16.mxu0 %v5393_v28  ;;  %3948 = vmatprep.subr.bf16.mxu1 %v7382_v13  ;;  %v7419_v30 = vld [vmem:[#allocation31_spill] sm:$0xff] }
 0x270   :  { %1454 = vmatmul.mubr.bf16.vlgmr.msra.gmra.mrb[32].mxu0 %v1318_v26  ;;  %3945 = vmatmul.mubr.bf16.vlgmr.msra.gmra.mrb[28].mxu1 %v1318_v26  ;;  %v7410_v26 = vsub.s32 2, %v5167_v58  ;;  %v7415_v58 = vld [vmem:[#allocation27_spill] sm:$0xff] }
 0x271   :  { %1504 = vmatpush1.bf16.msra.mxu0 %v5400_v21  ;;  %3949 = vmatpush3.bf16.msra.mxu1 %v7408_v32 }
 0x272   :  { %1505 = vmatprep.subr.bf16.mxu0 %v7409_v20  ;;  %3950 = vmatprep.subr.bf16.mxu1 %v7382_v13  ;;  %v5664_v38 = vrot.slane %v3385_v23, %v7410_v26  ;;  %v7416_v23 = vld [vmem:[#allocation28_spill] sm:$0xff]  ;;  %v7421_v26 = vld [vmem:[#allocation33_spill] sm:$0xff] }
 0x273   :  { %1535 = vmatprep.mubr.bf16.mxu0 %v7383_v22  ;;  %3964 = vmatprep.mubr.msk.bf16.mxu1 %vm4829_vm0, %v7382_v13 }
 0x274   :  { %v1046_v47 = vadd.f32 %v5595_v7, %v5664_v38  ;;  %v7420_v7 = vld [vmem:[#allocation32_spill] sm:$0xff] }
 0x275   :  { %1506 = vmatpush1.bf16.msra.mxu0 %v7411_v41  ;;  %3951 = vmatpush3.bf16.msra.mxu1 %v7412_v42 }
 0x276   :  { %1507 = vmatprep.subr.bf16.mxu0 %v7413_v44  ;;  %3952 = vmatprep.subr.bf16.mxu1 %v7382_v13 }
 0x278   :  { %v4544_v46 = vpop.eup %4543 }
 0x279   :  { %v1309_v48 = vmul.f32 %v4544_v46, %v1308_v40  ;;  %1508 = vmatpush1.bf16.msra.mxu0 %v7414_v4  ;;  %3953 = vmatpush3.bf16.msra.mxu1 %v7415_v58  ;;  %v7422_v40 = vld [vmem:[#allocation34_spill] sm:$0xff]  ;;  %v7424_v46 = vld [vmem:[#allocation36_spill] sm:$0xff] }
 0x27a   :  { %1509 = vmatprep.subr.bf16.mxu0 %v7416_v23  ;;  %3954 = vmatprep.subr.bf16.mxu1 %v7382_v13 }
 0x27b   :  { %v1310_v24 = vadd.f32 %v1309_v48, %v1046_v47  ;;  %v7425_v47 = vld [vmem:[#allocation37_spill] sm:$0xff] }
 0x27d   :  { %4545 = vtanh.f32 %v1310_v24  ;;  %1510 = vmatpush1.bf16.msra.mxu0 %v7417_v27  ;;  %3955 = vmatpush3.bf16.msra.mxu1 %v7418_v29 }
 0x27e   :  { %1511 = vmatprep.subr.bf16.mxu0 %v7419_v30  ;;  %3956 = vmatprep.subr.bf16.mxu1 %v7382_v13  ;;  %4547 = vrcp.f32 %v1305_v39  ;;  %v7426_v30 = vld [vmem:[#allocation38_spill] sm:$0xff] }
 0x281   :  { %1512 = vmatpush1.bf16.msra.mxu0 %v7420_v7  ;;  %3957 = vmatpush3.bf16.msra.mxu1 %v7421_v26 }
 0x282   :  { %1513 = vmatprep.subr.bf16.mxu0 %v7422_v40  ;;  %3958 = vmatprep.subr.bf16.mxu1 %v7382_v13 }
 0x285   :  { %1514 = vmatpush1.bf16.msra.mxu0 %v7423_v45  ;;  %3959 = vmatpush3.bf16.msra.mxu1 %v7424_v46 }
 0x286   :  { %1515 = vmatprep.subr.bf16.mxu0 %v7425_v47  ;;  %3960 = vmatprep.subr.bf16.mxu1 %v7382_v13 }
 0x287   :  { %v4546_v48 = vpop.eup %4545 }
 0x288   :  { %v1312_v24 = vsub.f32 %v5540_v18, %v4546_v48  ;;  %v4548_v39 = vpop.eup %4547  ;;  %v5703_v18 = vld [vmem:[%s7207_s3 + $0x4] ss:$12 sps:$4 sm:$0xff]  }
 0x289   :  { %1516 = vmatpush1.bf16.msra.mxu0 %v7426_v30  ;;  %3961 = vmatpush3.bf16.msra.mxu1 %v5522_v10  ;;  %7428 = vst [vmem:[#allocation22_spill] sm:$0xff] %v5703_v18 }
 0x28a   :  { %1517 = vmatprep.subr.bf16.mxu0 %v5528_v15  ;;  %3962 = vmatprep.subr.bf16.mxu1 %v7382_v13  ;;  %v1313_v40 = vmul.f32 %v4548_v39, %v1312_v24  ;;  %v5722_v24 = vld [vmem:[%s7207_s3 + $0x1c] ss:$12 sps:$4 sm:$0xff]   ;;  %v5738_v39 = vld [vmem:[%s7207_s3 + $0x20] ss:$12 sps:$4 sm:$0xff]  }
 0x28b   :  { %7431 = vst [vmem:[#allocation25_spill] sm:$0xff] %v5722_v24  ;;  %7433 = vst [vmem:[#allocation27_spill] sm:$0xff] %v5738_v39 }
 0x28c   :  { %v5694_v45 = vadd.f32 %v4546_v48, %v1313_v40  ;;  %v5710_v40 = vld [vmem:[%s7207_s3] ss:$12 sps:$4 sm:$0xff]   ;;  %v5716_v48 = vld [vmem:[%s7207_s3 + $0x8] ss:$12 sps:$4 sm:$0xff]  }
 0x28d   :  { %1518 = vmatpush1.bf16.msra.mxu0 %v5535_v17  ;;  %3963 = vmatpush3.bf16.msra.mxu1 %v5546_v12  ;;  %7429 = vst [vmem:[#allocation23_spill] sm:$0xff] %v5710_v40  ;;  %7430 = vst [vmem:[#allocation24_spill] sm:$0xff] %v5716_v48 }
 0x28e   :  { %7427 = vst [vmem:[#allocation21_spill] sm:$0xff] %v5694_v45  ;;  %v1502_v47 = vpack.c.bf16 %v5694_v45, %v5694_v45  ;;  %1609 = vmatprep.subr.bf16.mxu0 %v5703_v18  ;;  %3968 = vmatprep.subr.bf16.mxu1 %v7382_v13 }
 0x290   :  { %1536 = vmatmul.mubr.bf16.vlgmr.msra.gmra.mrb[32].mxu0 %v1502_v47  ;;  %3965 = vmatmul.mubr.bf16.vlgmr.msra.gmra.mrb[32].mxu1 %v1502_v47  ;;  %v5732_v47 = vld [vmem:[%s7207_s3 + $0x18] ss:$12 sps:$4 sm:$0xff]  }
 0x291   :  { %1610 = vmatpush1.bf16.msra.mxu0 %v5710_v40  ;;  %3969 = vmatpush3.bf16.msra.mxu1 %v5716_v48  ;;  %7432 = vst [vmem:[#allocation26_spill] sm:$0xff] %v5732_v47  ;;  %v7448_v40 = vld [vmem:[#allocation4_spill] sm:$0xff] }
 0x292   :  { %1611 = vmatprep.subr.bf16.mxu0 %v5722_v24  ;;  %3970 = vmatprep.subr.bf16.mxu1 %v7382_v13  ;;  %v5744_v24 = vld [vmem:[%s7207_s3 + $0x34] ss:$12 sps:$4 sm:$0xff]  }
 0x293   :  { %1641 = vmatprep.mubr.bf16.mxu0 %v7383_v22  ;;  %3984 = vmatprep.mubr.msk.bf16.mxu1 %vm4829_vm0, %v7382_v13  ;;  %7434 = vst [vmem:[#allocation28_spill] sm:$0xff] %v5744_v24 }
 0x295   :  { %1612 = vmatpush1.bf16.msra.mxu0 %v5732_v47  ;;  %3971 = vmatpush3.bf16.msra.mxu1 %v5738_v39  ;;  %v5751_v47 = vld [vmem:[%s7207_s3 + $0x30] ss:$12 sps:$4 sm:$0xff]   ;;  %v5757_v39 = vld [vmem:[%s7207_s3 + $0x38] ss:$12 sps:$4 sm:$0xff]  }
 0x296   :  { %1613 = vmatprep.subr.bf16.mxu0 %v5744_v24  ;;  %3972 = vmatprep.subr.bf16.mxu1 %v7382_v13  ;;  %7435 = vst [vmem:[#allocation29_spill] sm:$0xff] %v5751_v47  ;;  %7436 = vst [vmem:[#allocation30_spill] sm:$0xff] %v5757_v39  ;;  %v5763_v24 = vld [vmem:[%s7207_s3 + $0x4c] ss:$12 sps:$4 sm:$0xff]  }
 0x297   :  { %7437 = vst [vmem:[#allocation32_spill] sm:$0xff] %v5763_v24 }
 0x299   :  { %1614 = vmatpush1.bf16.msra.mxu0 %v5751_v47  ;;  %3973 = vmatpush3.bf16.msra.mxu1 %v5757_v39  ;;  %v5770_v47 = vld [vmem:[%s7207_s3 + $0x48] ss:$12 sps:$4 sm:$0xff]   ;;  %v5776_v39 = vld [vmem:[%s7207_s3 + $0x50] ss:$12 sps:$4 sm:$0xff]  }
 0x29a   :  { %1615 = vmatprep.subr.bf16.mxu0 %v5763_v24  ;;  %3974 = vmatprep.subr.bf16.mxu1 %v7382_v13  ;;  %7438 = vst [vmem:[#allocation43_spill] sm:$0xff] %v5770_v47  ;;  %7439 = vst [vmem:[#allocation44_spill] sm:$0xff] %v5776_v39  ;;  %v5782_v24 = vld [vmem:[%s7207_s3 + $0x64] ss:$12 sps:$4 sm:$0xff]  }
 0x29b   :  { %7440 = vst [vmem:[#allocation45_spill] sm:$0xff] %v5782_v24 }
 0x29d   :  { %1616 = vmatpush1.bf16.msra.mxu0 %v5770_v47  ;;  %3975 = vmatpush3.bf16.msra.mxu1 %v5776_v39  ;;  %v5789_v47 = vld [vmem:[%s7207_s3 + $0x60] ss:$12 sps:$4 sm:$0xff]   ;;  %v5796_v39 = vld [vmem:[%s7207_s3 + $0x7c] ss:$12 sps:$4 sm:$0xff]  }
 0x29e   :  { %1617 = vmatprep.subr.bf16.mxu0 %v5782_v24  ;;  %3976 = vmatprep.subr.bf16.mxu1 %v7382_v13  ;;  %7441 = vst [vmem:[#allocation46_spill] sm:$0xff] %v5789_v47  ;;  %7442 = vst [vmem:[#allocation47_spill] sm:$0xff] %v5796_v39  ;;  %v5803_v24 = vld [vmem:[%s7207_s3 + $0x78] ss:$12 sps:$4 sm:$0xff]  }
 0x29f   :  { %7443 = vst [vmem:[#allocation48_spill] sm:$0xff] %v5803_v24 }
 0x2a1   :  { %1618 = vmatpush1.bf16.msra.mxu0 %v5789_v47  ;;  %3977 = vmatpush3.bf16.msra.mxu1 %v5082_v49  ;;  %v5810_v49 = vld [vmem:[%s7207_s3 + $0x94] ss:$12 sps:$4 sm:$0xff]  }
 0x2a2   :  { %1619 = vmatprep.subr.bf16.mxu0 %v5796_v39  ;;  %3978 = vmatprep.subr.bf16.mxu1 %v7382_v13  ;;  %7444 = vst [vmem:[#allocation49_spill] sm:$0xff] %v5810_v49  ;;  %v5817_v39 = vld [vmem:[%s7207_s3 + $0x90] ss:$12 sps:$4 sm:$0xff]  }
 0x2a3   :  { %7445 = vst [vmem:[#allocation50_spill] sm:$0xff] %v5817_v39 }
 0x2a5   :  { %1620 = vmatpush1.bf16.msra.mxu0 %v5803_v24  ;;  %3979 = vmatpush3.bf16.msra.mxu1 %v5102_v52  ;;  %v5824_v52 = vld [vmem:[%s7207_s3 + $0xac] ss:$12 sps:$4 sm:$0xff]  }
 0x2a6   :  { %1621 = vmatprep.subr.bf16.mxu0 %v5810_v49  ;;  %3980 = vmatprep.subr.bf16.mxu1 %v7382_v13  ;;  %7446 = vst [vmem:[#allocation51_spill] sm:$0xff] %v5824_v52 }
 0x2a9   :  { %1622 = vmatpush1.bf16.msra.mxu0 %v5817_v39  ;;  %3981 = vmatpush3.bf16.msra.mxu1 %v5115_v54  ;;  %v7447_v54 = vld [vmem:[#allocation3_spill] sm:$0xff] }
 0x2aa   :  { %1623 = vmatprep.subr.bf16.mxu0 %v5824_v52  ;;  %3982 = vmatprep.subr.bf16.mxu1 %v7382_v13 }
 0x2ad   :  { %1624 = vmatpush1.bf16.msra.mxu0 %v5088_v50  ;;  %3983 = vmatpush3.bf16.msra.mxu1 %v5125_v55 }
 0x2ae   :  { %1711 = vmatprep.subr.bf16.mxu0 %v5164_v56  ;;  %3988 = vmatprep.subr.bf16.mxu1 %v7382_v13 }
 0x323   :  { %v1353_v39 = vpop.f32.mrb[28].mxu0  ;;  %v1394_v49 = vpop.f32.mrb[24].mxu1 }
 0x324   :  { %v1400_v24 = vadd.f32 %v1353_v39, %v7447_v54  ;;  %v1355_v47 = vpop.f32.mrb[29].mxu0  ;;  %v3926_v48 = vpop.f32.mrb[25].mxu1  ;;  %v1414_v45 = vadd.f32 %v5235_v62, %v1394_v49  ;;  %v7449_v54 = vld [vmem:[#allocation6_spill] sm:$0xff]  ;;  %v7463_v49 = vld [vmem:[#allocation23_spill] sm:$0xff] }
 0x325   :  { %v1407_v18 = vadd.f32 %v1355_v47, %v7448_v40  ;;  %v1357_v12 = vpop.f32.mrb[30].mxu0  ;;  %v1397_v52 = vpop.f32.mrb[26].mxu1 }
 0x326   :  { %v3532_v17 = vmul.f32 -1.442695, %v1400_v24  ;;  %v1358_v15 = vpop.f32.mrb[31].mxu0  ;;  %v3927_v10 = vpop.f32.mrb[27].mxu1  ;;  %v7464_v52 = vld [vmem:[#allocation24_spill] sm:$0xff] }
 0x327   :  { %v3533_v50 = vmul.f32 -1.442695, %v1407_v18 }
 0x328   :  { %4549 = vpow2.f32 %v3532_v17 }
 0x329   :  { %4551 = vpow2.f32 %v3533_v50  ;;  %v7465_v50 = vld [vmem:[#allocation25_spill] sm:$0xff] }
 0x332   :  { %v4550_v55 = vpop.eup %4549 }
 0x333   :  { %v1404_v30 = vadd.f32 1.0, %v4550_v55  ;;  %v4552_v56 = vpop.eup %4551  ;;  %v7466_v55 = vld [vmem:[#allocation26_spill] sm:$0xff] }
 0x334   :  { %v1411_v26 = vadd.f32 1.0, %v4552_v56  ;;  %v7467_v56 = vld [vmem:[#allocation27_spill] sm:$0xff] }
 0x335   :  { %4553 = vrcp.f32 %v1404_v30 }
 0x33f   :  { %v4554_v46 = vpop.eup %4553 }
 0x340   :  { %v1415_v39 = vmul.f32 %v4554_v46, %v1414_v45  ;;  %v7462_v46 = vld [vmem:[#allocation22_spill] sm:$0xff] }
 0x342   :  { %v1416_v48 = vadd.f32 %v1415_v39, %v7449_v54  ;;  %v7468_v39 = vld [vmem:[#allocation28_spill] sm:$0xff]  ;;  %v7469_v54 = vld [vmem:[#allocation29_spill] sm:$0xff] }
 0x343   :  { %v5836_v40 = vpop.f32.mrb[28].mxu1 }
 0x344   :  { %4555 = vtanh.f32 %v1416_v48  ;;  %v3946_v12 = vpop.f32.mrb[29].mxu1  ;;  %v7470_v48 = vld [vmem:[#allocation30_spill] sm:$0xff] }
 0x345   :  { %v1499_v15 = vpop.f32.mrb[30].mxu1  ;;  %4557 = vrcp.f32 %v1411_v26  ;;  %v7461_v26 = vld [vmem:[#allocation42_spill] sm:$0xff]  ;;  %v7472_v12 = vld [vmem:[#allocation43_spill] sm:$0xff] }
 0x346   :  { %v3947_v10 = vpop.f32.mrb[31].mxu1  ;;  %v7473_v15 = vld [vmem:[#allocation44_spill] sm:$0xff] }
 0x347   :  { %v7474_v10 = vld [vmem:[#allocation45_spill] sm:$0xff] }
 0x34e   :  { %v4556_v17 = vpop.eup %4555 }
 0x34f   :  { %v1418_v18 = vsub.f32 %v5598_v34, %v4556_v17  ;;  %v4558_v24 = vpop.eup %4557 }
 0x351   :  { %v1419_v30 = vmul.f32 %v4558_v24, %v1418_v18  ;;  %v5946_v18 = vld [vmem:[%s7207_s3 + $0x68] ss:$12 sps:$4 sm:$0xff]   ;;  %v7476_v24 = vld [vmem:[#allocation47_spill] sm:$0xff] }
 0x353   :  { %v5839_v47 = vadd.f32 %v4556_v17, %v1419_v30  ;;  %v7475_v17 = vld [vmem:[#allocation46_spill] sm:$0xff]  ;;  %v7477_v30 = vld [vmem:[#allocation48_spill] sm:$0xff] }
 0x355   :  { %v1608_v62 = vpack.c.bf16 %v5839_v47, %v5839_v47 }
 0x357   :  { %1642 = vmatmul.mubr.bf16.vlgmr.msra.gmra.mrb[36].mxu0 %v1608_v62  ;;  %3985 = vmatmul.mubr.bf16.vlgmr.msra.gmra.mrb[36].mxu1 %v1608_v62 }
 0x358   :  { %1712 = vmatpush1.bf16.msra.mxu0 %v5245_v25  ;;  %3989 = vmatpush3.bf16.msra.mxu1 %v5250_v8 }
 0x359   :  { %1713 = vmatprep.subr.bf16.mxu0 %v5257_v51  ;;  %3990 = vmatprep.subr.bf16.mxu1 %v7382_v13 }
 0x35a   :  { %1743 = vmatprep.mubr.bf16.mxu0 %v7383_v22  ;;  %4004 = vmatprep.mubr.msk.bf16.mxu1 %vm4829_vm0, %v7382_v13 }
 0x35c   :  { %1714 = vmatpush1.bf16.msra.mxu0 %v5264_v43  ;;  %3991 = vmatpush3.bf16.msra.mxu1 %v5269_v60 }
 0x35d   :  { %1715 = vmatprep.subr.bf16.mxu0 %v5276_v16  ;;  %3992 = vmatprep.subr.bf16.mxu1 %v7382_v13 }
 0x360   :  { %1716 = vmatpush1.bf16.msra.mxu0 %v5286_v31  ;;  %3993 = vmatpush3.bf16.msra.mxu1 %v5291_v53 }
 0x361   :  { %1717 = vmatprep.subr.bf16.mxu0 %v5298_v36  ;;  %3994 = vmatprep.subr.bf16.mxu1 %v7382_v13 }
 0x363   :  { %v1537_v25 = vpop.f32.mrb[32].mxu0  ;;  %v1578_v8 = vpop.f32.mrb[32].mxu1 }
 0x364   :  { %v4330_v51 = vadd.f32 %v1537_v25, %v5620_v37  ;;  %v1539_v34 = vpop.f32.mrb[33].mxu0  ;;  %v3966_v43 = vpop.f32.mrb[33].mxu1  ;;  %1718 = vmatpush1.bf16.msra.mxu0 %v5305_v59  ;;  %3995 = vmatpush3.bf16.msra.mxu1 %v5310_v1  ;;  %v7478_v25 = vld [vmem:[#allocation49_spill] sm:$0xff] }
 0x365   :  { %v1541_v60 = vpop.f32.mrb[34].mxu0  ;;  %v1581_v16 = vpop.f32.mrb[34].mxu1  ;;  %1719 = vmatprep.subr.bf16.mxu0 %v5317_v61  ;;  %3996 = vmatprep.subr.bf16.mxu1 %v7382_v13  ;;  %v4331_v59 = vadd.f32 %v1539_v34, %v5631_v19  ;;  %v7480_v34 = vld [vmem:[#allocation51_spill] sm:$0xff]  ;;  %v5972_v43 = vld [vmem:[%s7207_s3 + $0xa8] ss:$12 sps:$4 sm:$0xff]  }
 0x366   :  { %v3534_v31 = vmul.f32 -1.442695, %v4330_v51  ;;  %v1542_v53 = vpop.f32.mrb[35].mxu0  ;;  %v3967_v36 = vpop.f32.mrb[35].mxu1  ;;  %v5964_v51 = vld [vmem:[%s7207_s3 + $0x98] ss:$12 sps:$4 sm:$0xff]  }
 0x367   :  { %v3535_v1 = vmul.f32 -1.442695, %v4331_v59  ;;  %v5978_v60 = vld [vmem:[%s7207_s3 + $0xb0] ss:$12 sps:$4 sm:$0xff]  }
 0x368   :  { %4559 = vpow2.f32 %v3534_v31  ;;  %1720 = vmatpush1.bf16.msra.mxu0 %v5324_v63  ;;  %3997 = vmatpush3.bf16.msra.mxu1 %v5329_v0  ;;  %v5984_v16 = vld [vmem:[%s7205_s2 + $0xc4] ss:$12 sps:$4 sm:$0xff]  }
 0x369   :  { %1721 = vmatprep.subr.bf16.mxu0 %v5336_v2  ;;  %3998 = vmatprep.subr.bf16.mxu1 %v7382_v13  ;;  %4561 = vpow2.f32 %v3535_v1  ;;  %v7450_v2 = vld [vmem:[#allocation31_spill] sm:$0xff]  ;;  %v7481_v36 = vld [vmem:[#allocation5_spill] sm:$0xff] }
 0x36c   :  { %1722 = vmatpush1.bf16.msra.mxu0 %v5343_v6  ;;  %3999 = vmatpush3.bf16.msra.mxu1 %v5348_v3  ;;  %v7451_v6 = vld [vmem:[#allocation33_spill] sm:$0xff]  ;;  %v7452_v3 = vld [vmem:[#allocation34_spill] sm:$0xff] }
 0x36d   :  { %1723 = vmatprep.subr.bf16.mxu0 %v5355_v9  ;;  %4000 = vmatprep.subr.bf16.mxu1 %v7382_v13  ;;  %v7453_v9 = vld [vmem:[#allocation35_spill] sm:$0xff] }
 0x370   :  { %1724 = vmatpush1.bf16.msra.mxu0 %v5362_v14  ;;  %4001 = vmatpush3.bf16.msra.mxu1 %v5367_v5  ;;  %v7454_v14 = vld [vmem:[#allocation36_spill] sm:$0xff] }
 0x371   :  { %1725 = vmatprep.subr.bf16.mxu0 %v5374_v57  ;;  %4002 = vmatprep.subr.bf16.mxu1 %v7382_v13  ;;  %v1497_v57 = vadd.f32 %v5836_v40, %v5664_v38  ;;  %v7471_v40 = vld [vmem:[#allocation32_spill] sm:$0xff] }
 0x372   :  { %v4560_v61 = vpop.eup %4559 }
 0x373   :  { %v1588_v63 = vadd.f32 1.0, %v4560_v61 }
 0x374   :  { %1726 = vmatpush1.bf16.msra.mxu0 %v5381_v11  ;;  %4003 = vmatpush3.bf16.msra.mxu1 %v5386_v35 }
 0x375   :  { %4563 = vrcp.f32 %v1588_v63  ;;  %1793 = vmatprep.subr.bf16.mxu0 %v5393_v28  ;;  %4008 = vmatprep.subr.bf16.mxu1 %v7382_v13  ;;  %v1598_v28 = vadd.f32 %v5655_v33, %v1578_v8  ;;  %v7479_v8 = vld [vmem:[#allocation50_spill] sm:$0xff]  ;;  %v7482_v63 = vld [vmem:[#allocation7_spill] sm:$0xff] }
 0x377   :  { %1744 = vmatmul.mubr.bf16.vlgmr.msra.gmra.mrb[40].mxu0 %v1608_v62  ;;  %4005 = vmatmul.mubr.bf16.vlgmr.msra.gmra.mrb[40].mxu1 %v1608_v62  ;;  %v5955_v62 = vld [vmem:[%s7207_s3 + $0x80] ss:$12 sps:$4 sm:$0xff]  }
 0x378   :  { %1794 = vmatpush1.bf16.msra.mxu0 %v5400_v21  ;;  %4009 = vmatpush3.bf16.msra.mxu1 %v7408_v32  ;;  %v4562_v21 = vpop.eup %4561  ;;  %v7455_v32 = vld [vmem:[#allocation37_spill] sm:$0xff] }
 0x379   :  { %1795 = vmatprep.subr.bf16.mxu0 %v7409_v20  ;;  %4010 = vmatprep.subr.bf16.mxu1 %v7382_v13  ;;  %v1595_v0 = vadd.f32 1.0, %v4562_v21 }
 0x37a   :  { %1825 = vmatprep.mubr.bf16.mxu0 %v7383_v22  ;;  %4024 = vmatprep.mubr.msk.bf16.mxu1 %vm4829_vm0, %v7382_v13 }
 0x37c   :  { %1796 = vmatpush1.bf16.msra.mxu0 %v7411_v41  ;;  %4011 = vmatpush3.bf16.msra.mxu1 %v7412_v42  ;;  %v7456_v41 = vld [vmem:[#allocation21_spill] sm:$0xff] }
 0x37d   :  { %1797 = vmatprep.subr.bf16.mxu0 %v7413_v44  ;;  %4012 = vmatprep.subr.bf16.mxu1 %v7382_v13 }
 0x37f   :  { %v4564_v35 = vpop.eup %4563 }
 0x380   :  { %v1599_v11 = vmul.f32 %v4564_v35, %v1598_v28  ;;  %1798 = vmatpush1.bf16.msra.mxu0 %v7414_v4  ;;  %4013 = vmatpush3.bf16.msra.mxu1 %v7415_v58  ;;  %v7457_v4 = vld [vmem:[#allocation38_spill] sm:$0xff]  ;;  %v7458_v58 = vld [vmem:[#allocation39_spill] sm:$0xff] }
 0x381   :  { %1799 = vmatprep.subr.bf16.mxu0 %v7416_v23  ;;  %4014 = vmatprep.subr.bf16.mxu1 %v7382_v13  ;;  %v7459_v23 = vld [vmem:[#allocation40_spill] sm:$0xff] }
 0x382   :  { %v1600_v5 = vadd.f32 %v1599_v11, %v1497_v57 }
 0x384   :  { %4565 = vtanh.f32 %v1600_v5  ;;  %1800 = vmatpush1.bf16.msra.mxu0 %v7417_v27  ;;  %4015 = vmatpush3.bf16.msra.mxu1 %v7418_v29 }
 0x385   :  { %1801 = vmatprep.subr.bf16.mxu0 %v7450_v2  ;;  %4016 = vmatprep.subr.bf16.mxu1 %v7382_v13  ;;  %4567 = vrcp.f32 %v1595_v0 }
 0x388   :  { %1802 = vmatpush1.bf16.msra.mxu0 %v7420_v7  ;;  %4017 = vmatpush3.bf16.msra.mxu1 %v7451_v6  ;;  %v7460_v7 = vld [vmem:[#allocation41_spill] sm:$0xff] }
 0x389   :  { %1803 = vmatprep.subr.bf16.mxu0 %v7452_v3  ;;  %4018 = vmatprep.subr.bf16.mxu1 %v7382_v13 }
 0x38c   :  { %1804 = vmatpush1.bf16.msra.mxu0 %v7453_v9  ;;  %4019 = vmatpush3.bf16.msra.mxu1 %v7454_v14  ;;  %v5993_v9 = vld [vmem:[%s7210_s5] ss:$0 sm:$0xff] }
 0x38d   :  { %1805 = vmatprep.subr.bf16.mxu0 %v7455_v32  ;;  %4020 = vmatprep.subr.bf16.mxu1 %v7382_v13 }
 0x38e   :  { %v4566_v20 = vpop.eup %4565 }
 0x38f   :  { %v1602_v42 = vsub.f32 %v7456_v41, %v4566_v20  ;;  %v4568_v44 = vpop.eup %4567  ;;  %v7483_v41 = vld [vmem:[#allocation8_spill] sm:$0xff] }
 0x390   :  { %1806 = vmatpush1.bf16.msra.mxu0 %v7457_v4  ;;  %4021 = vmatpush3.bf16.msra.mxu1 %v7458_v58 }
 0x391   :  { %1807 = vmatprep.subr.bf16.mxu0 %v7459_v23  ;;  %4022 = vmatprep.subr.bf16.mxu1 %v7382_v13  ;;  %v1603_v27 = vmul.f32 %v4568_v44, %v1602_v42 }
 0x393   :  { %v5915_v29 = vadd.f32 %v4566_v20, %v1603_v27 }
 0x394   :  { %1808 = vmatpush1.bf16.msra.mxu0 %v7460_v7  ;;  %4023 = vmatpush3.bf16.msra.mxu1 %v7461_v26 }
 0x395   :  { %v1792_v45 = vpack.c.bf16 %v5915_v29, %v5915_v29  ;;  %1899 = vmatprep.subr.bf16.mxu0 %v7462_v46  ;;  %4028 = vmatprep.subr.bf16.mxu1 %v7382_v13 }
 0x397   :  { %1826 = vmatmul.mubr.bf16.vlgmr.msra.gmra.mrb[40].mxu0 %v1792_v45  ;;  %4025 = vmatmul.mubr.bf16.vlgmr.msra.gmra.mrb[44].mxu1 %v1792_v45 }
 0x398   :  { %1900 = vmatpush1.bf16.msra.mxu0 %v7463_v49  ;;  %4029 = vmatpush3.bf16.msra.mxu1 %v7464_v52 }
 0x399   :  { %1901 = vmatprep.subr.bf16.mxu0 %v7465_v50  ;;  %4030 = vmatprep.subr.bf16.mxu1 %v7382_v13 }
 0x39a   :  { %1931 = vmatprep.mubr.bf16.mxu0 %v7383_v22  ;;  %4044 = vmatprep.mubr.msk.bf16.mxu1 %vm4829_vm0, %v7382_v13 }
 0x39c   :  { %1902 = vmatpush1.bf16.msra.mxu0 %v7466_v55  ;;  %4031 = vmatpush3.bf16.msra.mxu1 %v7467_v56 }
 0x39d   :  { %1903 = vmatprep.subr.bf16.mxu0 %v7468_v39  ;;  %4032 = vmatprep.subr.bf16.mxu1 %v7382_v13 }
 0x3a0   :  { %1904 = vmatpush1.bf16.msra.mxu0 %v7469_v54  ;;  %4033 = vmatpush3.bf16.msra.mxu1 %v7470_v48 }
 0x3a1   :  { %1905 = vmatprep.subr.bf16.mxu0 %v7471_v40  ;;  %4034 = vmatprep.subr.bf16.mxu1 %v7382_v13 }
 0x3a4   :  { %1906 = vmatpush1.bf16.msra.mxu0 %v7472_v12  ;;  %4035 = vmatpush3.bf16.msra.mxu1 %v7473_v15 }
 0x3a5   :  { %1907 = vmatprep.subr.bf16.mxu0 %v7474_v10  ;;  %4036 = vmatprep.subr.bf16.mxu1 %v7382_v13 }
 0x3a8   :  { %1908 = vmatpush1.bf16.msra.mxu0 %v7475_v17  ;;  %4037 = vmatpush3.bf16.msra.mxu1 %v5946_v18 }
 0x3a9   :  { %1909 = vmatprep.subr.bf16.mxu0 %v7476_v24  ;;  %4038 = vmatprep.subr.bf16.mxu1 %v7382_v13 }
 0x3ac   :  { %1910 = vmatpush1.bf16.msra.mxu0 %v7477_v30  ;;  %4039 = vmatpush3.bf16.msra.mxu1 %v5955_v62 }
 0x3ad   :  { %1911 = vmatprep.subr.bf16.mxu0 %v7478_v25  ;;  %4040 = vmatprep.subr.bf16.mxu1 %v7382_v13 }
 0x3b0   :  { %1912 = vmatpush1.bf16.msra.mxu0 %v7479_v8  ;;  %4041 = vmatpush3.bf16.msra.mxu1 %v5964_v51 }
 0x3b1   :  { %1913 = vmatprep.subr.bf16.mxu0 %v7480_v34  ;;  %4042 = vmatprep.subr.bf16.mxu1 %v7382_v13 }
 0x3b4   :  { %1914 = vmatpush1.bf16.msra.mxu0 %v5972_v43  ;;  %4043 = vmatpush3.bf16.msra.mxu1 %v5978_v60 }
 0x3b5   :  { %2001 = vmatprep.subr.bf16.mxu0 %v5984_v16  ;;  %4048 = vmatprep.subr.bf16.mxu1 %v7382_v13 }
 0x42a   :  { %v1643_v31 = vpop.f32.mrb[36].mxu0  ;;  %v1684_v53 = vpop.f32.mrb[36].mxu1 }
 0x42b   :  { %v1690_v59 = vadd.f32 %v1643_v31, %v7481_v36  ;;  %v1645_v1 = vpop.f32.mrb[37].mxu0  ;;  %v3986_v61 = vpop.f32.mrb[37].mxu1  ;;  %v1704_v14 = vadd.f32 %v5993_v9, %v1684_v53 }
 0x42c   :  { %v1697_v21 = vadd.f32 %v1645_v1, %v7482_v63  ;;  %v1647_v28 = vpop.f32.mrb[38].mxu0  ;;  %v1687_v35 = vpop.f32.mrb[38].mxu1  ;;  %v6023_v1 = vld [vmem:[%s7205_s2 + $0xdc] ss:$12 sps:$4 sm:$0xff]   ;;  %v6033_v61 = vld [vmem:[%s7205_s2 + $0xd8] ss:$12 sps:$4 sm:$0xff]  }
 0x42d   :  { %v3536_v57 = vmul.f32 -1.442695, %v1690_v59  ;;  %v1648_v11 = vpop.f32.mrb[39].mxu0  ;;  %v3987_v5 = vpop.f32.mrb[39].mxu1  ;;  %v6011_v59 = vld [vmem:[%s7205_s2 + $0xc0] ss:$12 sps:$4 sm:$0xff]  }
 0x42e   :  { %v3537_v0 = vmul.f32 -1.442695, %v1697_v21  ;;  %v6039_v63 = vld [vmem:[%s7205_s2 + $0xe0] ss:$12 sps:$4 sm:$0xff]   ;;  %v6052_v28 = vld [vmem:[%s7205_s2 + $0xf0] ss:$12 sps:$4 sm:$0xff]  }
 0x42f   :  { %4569 = vpow2.f32 %v3536_v57  ;;  %v6045_v21 = vld [vmem:[%s7205_s2 + $0xf4] ss:$12 sps:$4 sm:$0xff]   ;;  %v6058_v35 = vld [vmem:[%s7205_s2 + $0xf8] ss:$12 sps:$4 sm:$0xff]  }
 0x430   :  { %4571 = vpow2.f32 %v3537_v0  ;;  %v6064_v57 = vld [vmem:[%s7205_s2 + $0x10c] ss:$12 sps:$4 sm:$0xff]  }
 0x439   :  { %v4570_v2 = vpop.eup %4569 }
 0x43a   :  { %v1694_v6 = vadd.f32 1.0, %v4570_v2  ;;  %v4572_v3 = vpop.eup %4571 }
 0x43b   :  { %v1701_v44 = vadd.f32 1.0, %v4572_v3  ;;  %v6074_v3 = vld [vmem:[%s7205_s2 + $0x108] ss:$12 sps:$4 sm:$0xff]  }
 0x43c   :  { %4573 = vrcp.f32 %v1694_v6 }
 0x446   :  { %v4574_v32 = vpop.eup %4573 }
 0x447   :  { %v1705_v20 = vmul.f32 %v4574_v32, %v1704_v14  ;;  %v6080_v14 = vld [vmem:[%s7205_s2 + $0x110] ss:$12 sps:$4 sm:$0xff]  }
 0x449   :  { %v1706_v42 = vadd.f32 %v1705_v20, %v7483_v41  ;;  %v6086_v41 = vld [vmem:[%s7205_s2 + $0x124] ss:$12 sps:$4 sm:$0xff]  }
 0x44a   :  { %v5997_v4 = vpop.f32.mrb[40].mxu1 }
 0x44b   :  { %4575 = vtanh.f32 %v1706_v42  ;;  %v4006_v58 = vpop.f32.mrb[41].mxu1 }
 0x44c   :  { %v1789_v23 = vpop.f32.mrb[42].mxu1  ;;  %4577 = vrcp.f32 %v1701_v44 }
 0x44d   :  { %v4007_v27 = vpop.f32.mrb[43].mxu1  ;;  %v6093_v23 = vld [vmem:[%s7205_s2 + $0x120] ss:$12 sps:$4 sm:$0xff]  }
 0x44e   :  { %v6099_v27 = vld [vmem:[%s7205_s2 + $0x128] ss:$12 sps:$4 sm:$0xff]  }
 0x455   :  { %v4576_v7 = vpop.eup %4575 }
 0x456   :  { %v1708_v26 = vsub.f32 %v5839_v47, %v4576_v7  ;;  %v4578_v45 = vpop.eup %4577  ;;  %v6017_v47 = vld [vmem:[%s7205_s2 + $0xc8] ss:$12 sps:$4 sm:$0xff]  }
 0x458   :  { %v1709_v31 = vmul.f32 %v4578_v45, %v1708_v26  ;;  %v6113_v45 = vld [vmem:[%s7205_s2 + $0x138] ss:$12 sps:$4 sm:$0xff]  }
 0x45a   :  { %v6000_v36 = vadd.f32 %v4576_v7, %v1709_v31  ;;  %v6105_v7 = vld [vmem:[%s7205_s2 + $0x13c] ss:$12 sps:$4 sm:$0xff]   ;;  %v6119_v31 = vld [vmem:[%s7205_s2 + $0x140] ss:$12 sps:$4 sm:$0xff]  }
 0x45c   :  { %v6004_v53 = vpack.c.bf16 %v6000_v36, %v6000_v36 }
 0x45e   :  { %1932 = vmatmul.mubr.bf16.vlgmr.msra.gmra.mrb[44].mxu0 %v6004_v53  ;;  %4045 = vmatmul.mubr.bf16.vlgmr.msra.gmra.mrb[48].mxu1 %v6004_v53 }
 0x45f   :  { %2002 = vmatpush1.bf16.msra.mxu0 %v6011_v59  ;;  %4049 = vmatpush3.bf16.msra.mxu1 %v6017_v47 }
 0x460   :  { %2003 = vmatprep.subr.bf16.mxu0 %v6023_v1  ;;  %4050 = vmatprep.subr.bf16.mxu1 %v7382_v13 }
 0x461   :  { %2033 = vmatprep.mubr.bf16.mxu0 %v7383_v22  ;;  %4064 = vmatprep.mubr.msk.bf16.mxu1 %vm4829_vm0, %v7382_v13 }
 0x463   :  { %2004 = vmatpush1.bf16.msra.mxu0 %v6033_v61  ;;  %4051 = vmatpush3.bf16.msra.mxu1 %v6039_v63 }
 0x464   :  { %2005 = vmatprep.subr.bf16.mxu0 %v6045_v21  ;;  %4052 = vmatprep.subr.bf16.mxu1 %v7382_v13 }
 0x467   :  { %2006 = vmatpush1.bf16.msra.mxu0 %v6052_v28  ;;  %4053 = vmatpush3.bf16.msra.mxu1 %v6058_v35 }
 0x468   :  { %2007 = vmatprep.subr.bf16.mxu0 %v6064_v57  ;;  %4054 = vmatprep.subr.bf16.mxu1 %v7382_v13 }
 0x46a   :  { %v1827_v11 = vpop.f32.mrb[40].mxu0  ;;  %v6068_v5 = vpop.f32.mrb[44].mxu1 }
 0x46b   :  { %v4332_v0 = vadd.f32 %v1827_v11, %v5620_v37  ;;  %v1829_v2 = vpop.f32.mrb[41].mxu0  ;;  %v4026_v6 = vpop.f32.mrb[45].mxu1  ;;  %2008 = vmatpush1.bf16.msra.mxu0 %v6074_v3  ;;  %4055 = vmatpush3.bf16.msra.mxu1 %v6080_v14  ;;  %v6125_v11 = vld [vmem:[%s7205_s2 + $0x154] ss:$12 sps:$4 sm:$0xff]  }
 0x46c   :  { %v1831_v32 = vpop.f32.mrb[42].mxu0  ;;  %v1871_v20 = vpop.f32.mrb[46].mxu1  ;;  %2009 = vmatprep.subr.bf16.mxu0 %v6086_v41  ;;  %4056 = vmatprep.subr.bf16.mxu1 %v7382_v13  ;;  %v4333_v26 = vadd.f32 %v1829_v2, %v5631_v19  ;;  %v6132_v2 = vld [vmem:[%s7205_s2 + $0x150] ss:$12 sps:$4 sm:$0xff]   ;;  %v6138_v6 = vld [vmem:[%s7205_s2 + $0x158] ss:$12 sps:$4 sm:$0xff]  }
 0x46d   :  { %v3538_v42 = vmul.f32 -1.442695, %v4332_v0  ;;  %v1832_v44 = vpop.f32.mrb[43].mxu0  ;;  %v4027_v58 = vpop.f32.mrb[47].mxu1  ;;  %v6144_v32 = vld [vmem:[%s7205_s2 + $0x16c] ss:$12 sps:$4 sm:$0xff]  }
 0x46e   :  { %v3539_v0 = vmul.f32 -1.442695, %v4333_v26  ;;  %v6151_v44 = vld [vmem:[%s7205_s2 + $0x168] ss:$12 sps:$4 sm:$0xff]   ;;  %v6157_v58 = vld [vmem:[%s7205_s2 + $0x170] ss:$12 sps:$4 sm:$0xff]  }
 0x46f   :  { %4579 = vpow2.f32 %v3538_v42  ;;  %2010 = vmatpush1.bf16.msra.mxu0 %v6093_v23  ;;  %4057 = vmatpush3.bf16.msra.mxu1 %v6099_v27  ;;  %7484 = vst [vmem:[#allocation3_spill] sm:$0xff] %v6151_v44  ;;  %7485 = vst [vmem:[#allocation4_spill] sm:$0xff] %v6157_v58  ;;  %v6163_v26 = vld [vmem:[%s7207_s3 + $0xc4] ss:$12 sps:$4 sm:$0xff]  }
 0x470   :  { %2011 = vmatprep.subr.bf16.mxu0 %v6105_v7  ;;  %4058 = vmatprep.subr.bf16.mxu1 %v7382_v13  ;;  %4581 = vpow2.f32 %v3539_v0  ;;  %7486 = vst [vmem:[#allocation6_spill] sm:$0xff] %v6163_v26  ;;  %v6172_v0 = vld [vmem:[%s7207_s3 + $0xc0] ss:$12 sps:$4 sm:$0xff]  }
 0x471   :  { %7487 = vst [vmem:[#allocation31_spill] sm:$0xff] %v6172_v0 }
 0x473   :  { %2012 = vmatpush1.bf16.msra.mxu0 %v6113_v45  ;;  %4059 = vmatpush3.bf16.msra.mxu1 %v6119_v31 }
 0x474   :  { %2013 = vmatprep.subr.bf16.mxu0 %v6125_v11  ;;  %4060 = vmatprep.subr.bf16.mxu1 %v7382_v13 }
 0x477   :  { %2014 = vmatpush1.bf16.msra.mxu0 %v6132_v2  ;;  %4061 = vmatpush3.bf16.msra.mxu1 %v6138_v6 }
 0x478   :  { %2015 = vmatprep.subr.bf16.mxu0 %v6144_v32  ;;  %4062 = vmatprep.subr.bf16.mxu1 %v7382_v13 }
 0x479   :  { %v4580_v20 = vpop.eup %4579 }
 0x47a   :  { %v1878_v42 = vadd.f32 1.0, %v4580_v20  ;;  %v6178_v20 = vld [vmem:[%s7207_s3 + $0xc8] ss:$12 sps:$4 sm:$0xff]  }
 0x47b   :  { %2016 = vmatpush1.bf16.msra.mxu0 %v6151_v44  ;;  %4063 = vmatpush3.bf16.msra.mxu1 %v6157_v58  ;;  %7488 = vst [vmem:[#allocation33_spill] sm:$0xff] %v6178_v20  ;;  %v1787_v58 = vadd.f32 %v5997_v4, %v5664_v38 }
 0x47c   :  { %4583 = vrcp.f32 %v1878_v42  ;;  %2083 = vmatprep.subr.bf16.mxu0 %v6163_v26  ;;  %4068 = vmatprep.subr.bf16.mxu1 %v7382_v13  ;;  %v6184_v42 = vld [vmem:[%s7207_s3 + $0xdc] ss:$12 sps:$4 sm:$0xff]  }
 0x47d   :  { %7489 = vst [vmem:[#allocation34_spill] sm:$0xff] %v6184_v42 }
 0x47e   :  { %2034 = vmatmul.mubr.bf16.vlgmr.msra.gmra.mrb[48].mxu0 %v6004_v53  ;;  %4065 = vmatmul.mubr.bf16.vlgmr.msra.gmra.mrb[52].mxu1 %v6004_v53  ;;  %v6194_v53 = vld [vmem:[%s7207_s3 + $0xd8] ss:$12 sps:$4 sm:$0xff]  }
 0x47f   :  { %2084 = vmatpush1.bf16.msra.mxu0 %v6172_v0  ;;  %4069 = vmatpush3.bf16.msra.mxu1 %v6178_v20  ;;  %7490 = vst [vmem:[#allocation35_spill] sm:$0xff] %v6194_v53  ;;  %v6200_v20 = vld [vmem:[%s7207_s3 + $0xe0] ss:$12 sps:$4 sm:$0xff]   ;;  %v4582_v0 = vpop.eup %4581 }
 0x480   :  { %2085 = vmatprep.subr.bf16.mxu0 %v6184_v42  ;;  %4070 = vmatprep.subr.bf16.mxu1 %v7382_v13  ;;  %7491 = vst [vmem:[#allocation36_spill] sm:$0xff] %v6200_v20  ;;  %v6206_v42 = vld [vmem:[%s7207_s3 + $0xf4] ss:$12 sps:$4 sm:$0xff]  }
 0x481   :  { %2115 = vmatprep.mubr.bf16.mxu0 %v7383_v22  ;;  %4084 = vmatprep.mubr.msk.bf16.mxu1 %vm4829_vm0, %v7382_v13  ;;  %7492 = vst [vmem:[#allocation37_spill] sm:$0xff] %v6206_v42 }
 0x483   :  { %2086 = vmatpush1.bf16.msra.mxu0 %v6194_v53  ;;  %4071 = vmatpush3.bf16.msra.mxu1 %v6200_v20  ;;  %v1888_v53 = vadd.f32 %v5655_v33, %v6068_v5  ;;  %v6217_v20 = vld [vmem:[%s7207_s3 + $0xf0] ss:$12 sps:$4 sm:$0xff]   ;;  %v6229_v33 = vld [vmem:[%s7207_s3 + $0x10c] ss:$12 sps:$4 sm:$0xff]   ;;  %v1885_v5 = vadd.f32 1.0, %v4582_v0 }
 0x484   :  { %2087 = vmatprep.subr.bf16.mxu0 %v6206_v42  ;;  %4072 = vmatprep.subr.bf16.mxu1 %v7382_v13  ;;  %v6223_v42 = vld [vmem:[%s7207_s3 + $0xf8] ss:$12 sps:$4 sm:$0xff]   ;;  %v6261_v0 = vld [vmem:[%s7207_s3 + $0x128] ss:$12 sps:$4 sm:$0xff]  }
 0x485   :  { %7497 = vst [vmem:[#allocation41_spill] sm:$0xff] %v6261_v0 }
 0x486   :  { %v4584_v26 = vpop.eup %4583 }
 0x487   :  { %v1889_v44 = vmul.f32 %v4584_v26, %v1888_v53  ;;  %2088 = vmatpush1.bf16.msra.mxu0 %v6217_v20  ;;  %4073 = vmatpush3.bf16.msra.mxu1 %v6223_v42  ;;  %v6236_v26 = vld [vmem:[%s7207_s3 + $0x108] ss:$12 sps:$4 sm:$0xff]   ;;  %v6242_v53 = vld [vmem:[%s7207_s3 + $0x110] ss:$12 sps:$4 sm:$0xff]  }
 0x488   :  { %2089 = vmatprep.subr.bf16.mxu0 %v6229_v33  ;;  %4074 = vmatprep.subr.bf16.mxu1 %v7382_v13  ;;  %7493 = vst [vmem:[#allocation21_spill] sm:$0xff] %v6236_v26  ;;  %7494 = vst [vmem:[#allocation38_spill] sm:$0xff] %v6242_v53 }
 0x489   :  { %v1890_v4 = vadd.f32 %v1889_v44, %v1787_v58  ;;  %v6248_v44 = vld [vmem:[%s7207_s3 + $0x124] ss:$12 sps:$4 sm:$0xff]   ;;  %v6255_v58 = vld [vmem:[%s7207_s3 + $0x120] ss:$12 sps:$4 sm:$0xff]  }
 0x48a   :  { %7495 = vst [vmem:[#allocation39_spill] sm:$0xff] %v6248_v44  ;;  %7496 = vst [vmem:[#allocation40_spill] sm:$0xff] %v6255_v58 }
 0x48b   :  { %4585 = vtanh.f32 %v1890_v4  ;;  %2090 = vmatpush1.bf16.msra.mxu0 %v6236_v26  ;;  %4075 = vmatpush3.bf16.msra.mxu1 %v6242_v53  ;;  %v6267_v4 = vld [vmem:[%s7207_s3 + $0x13c] ss:$12 sps:$4 sm:$0xff]  }
 0x48c   :  { %2091 = vmatprep.subr.bf16.mxu0 %v6248_v44  ;;  %4076 = vmatprep.subr.bf16.mxu1 %v7382_v13  ;;  %4587 = vrcp.f32 %v1885_v5  ;;  %7498 = vst [vmem:[#allocation42_spill] sm:$0xff] %v6267_v4  ;;  %v6274_v5 = vld [vmem:[%s7207_s3 + $0x138] ss:$12 sps:$4 sm:$0xff]   ;;  %v6294_v53 = vld [vmem:[%s7207_s3 + $0x150] ss:$12 sps:$4 sm:$0xff]  }
 0x48d   :  { %7499 = vst [vmem:[#allocation22_spill] sm:$0xff] %v6274_v5  ;;  %7502 = vst [vmem:[#allocation25_spill] sm:$0xff] %v6294_v53 }
 0x48f   :  { %2092 = vmatpush1.bf16.msra.mxu0 %v6255_v58  ;;  %4077 = vmatpush3.bf16.msra.mxu1 %v6261_v0  ;;  %v6280_v0 = vld [vmem:[%s7207_s3 + $0x140] ss:$12 sps:$4 sm:$0xff]  }
 0x490   :  { %2093 = vmatprep.subr.bf16.mxu0 %v6267_v4  ;;  %4078 = vmatprep.subr.bf16.mxu1 %v7382_v13  ;;  %7500 = vst [vmem:[#allocation23_spill] sm:$0xff] %v6280_v0  ;;  %v6286_v4 = vld [vmem:[%s7207_s3 + $0x154] ss:$12 sps:$4 sm:$0xff]  }
 0x491   :  { %7501 = vst [vmem:[#allocation24_spill] sm:$0xff] %v6286_v4 }
 0x493   :  { %2094 = vmatpush1.bf16.msra.mxu0 %v6274_v5  ;;  %4079 = vmatpush3.bf16.msra.mxu1 %v6280_v0  ;;  %v6300_v0 = vld [vmem:[%s7207_s3 + $0x158] ss:$12 sps:$4 sm:$0xff]  }
 0x494   :  { %2095 = vmatprep.subr.bf16.mxu0 %v6286_v4  ;;  %4080 = vmatprep.subr.bf16.mxu1 %v7382_v13  ;;  %7503 = vst [vmem:[#allocation26_spill] sm:$0xff] %v6300_v0  ;;  %v6306_v4 = vld [vmem:[%s7207_s3 + $0x16c] ss:$12 sps:$4 sm:$0xff]  }
 0x495   :  { %v4586_v58 = vpop.eup %4585  ;;  %7504 = vst [vmem:[#allocation27_spill] sm:$0xff] %v6306_v4 }
 0x496   :  { %v1892_v44 = vsub.f32 %v5915_v29, %v4586_v58  ;;  %v4588_v5 = vpop.eup %4587 }
 0x497   :  { %2096 = vmatpush1.bf16.msra.mxu0 %v6294_v53  ;;  %4081 = vmatpush3.bf16.msra.mxu1 %v6300_v0  ;;  %v6315_v53 = vld [vmem:[%s7207_s3 + $0x168] ss:$12 sps:$4 sm:$0xff]   ;;  %v6321_v0 = vld [vmem:[%s7207_s3 + $0x170] ss:$12 sps:$4 sm:$0xff]  }
 0x498   :  { %2097 = vmatprep.subr.bf16.mxu0 %v6306_v4  ;;  %4082 = vmatprep.subr.bf16.mxu1 %v7382_v13  ;;  %v1893_v29 = vmul.f32 %v4588_v5, %v1892_v44  ;;  %7505 = vst [vmem:[#allocation28_spill] sm:$0xff] %v6315_v53  ;;  %7506 = vst [vmem:[#allocation29_spill] sm:$0xff] %v6321_v0 }
 0x49a   :  { %v6310_v26 = vadd.f32 %v4586_v58, %v1893_v29  ;;  %v7509_v58 = vld [vmem:[#allocation14_spill] sm:$0xff] }
 0x49b   :  { %2098 = vmatpush1.bf16.msra.mxu0 %v6315_v53  ;;  %4083 = vmatpush3.bf16.msra.mxu1 %v6321_v0 }
 0x49c   :  { %v2082_v4 = vpack.c.bf16 %v6310_v26, %v6310_v26  ;;  %2189 = vmatprep.subr.bf16.mxu0 %v7462_v46  ;;  %4088 = vmatprep.subr.bf16.mxu1 %v7382_v13 }
 0x49e   :  { %2116 = vmatmul.mubr.bf16.vlgmr.msra.gmra.mrb[48].mxu0 %v2082_v4  ;;  %4085 = vmatmul.mubr.bf16.vlgmr.msra.gmra.mrb[56].mxu1 %v2082_v4 }
 0x49f   :  { %2190 = vmatpush1.bf16.msra.mxu0 %v7463_v49  ;;  %4089 = vmatpush3.bf16.msra.mxu1 %v7464_v52  ;;  %v7507_v52 = vld [vmem:[#allocation9_spill] sm:$0xff] }
 0x4a0   :  { %2191 = vmatprep.subr.bf16.mxu0 %v7465_v50  ;;  %4090 = vmatprep.subr.bf16.mxu1 %v7382_v13 }
 0x4a1   :  { %2221 = vmatprep.mubr.bf16.mxu0 %v7383_v22  ;;  %4104 = vmatprep.mubr.msk.bf16.mxu1 %vm4829_vm0, %v7382_v13 }
 0x4a3   :  { %2192 = vmatpush1.bf16.msra.mxu0 %v7466_v55  ;;  %4091 = vmatpush3.bf16.msra.mxu1 %v7467_v56 }
 0x4a4   :  { %2193 = vmatprep.subr.bf16.mxu0 %v7468_v39  ;;  %4092 = vmatprep.subr.bf16.mxu1 %v7382_v13  ;;  %v7508_v39 = vld [vmem:[#allocation10_spill] sm:$0xff] }
 0x4a7   :  { %2194 = vmatpush1.bf16.msra.mxu0 %v7469_v54  ;;  %4093 = vmatpush3.bf16.msra.mxu1 %v7470_v48 }
 0x4a8   :  { %2195 = vmatprep.subr.bf16.mxu0 %v7471_v40  ;;  %4094 = vmatprep.subr.bf16.mxu1 %v7382_v13 }
 0x4ab   :  { %2196 = vmatpush1.bf16.msra.mxu0 %v7472_v12  ;;  %4095 = vmatpush3.bf16.msra.mxu1 %v7473_v15 }
 0x4ac   :  { %2197 = vmatprep.subr.bf16.mxu0 %v7474_v10  ;;  %4096 = vmatprep.subr.bf16.mxu1 %v7382_v13 }
 0x4af   :  { %2198 = vmatpush1.bf16.msra.mxu0 %v7475_v17  ;;  %4097 = vmatpush3.bf16.msra.mxu1 %v5946_v18 }
 0x4b0   :  { %2199 = vmatprep.subr.bf16.mxu0 %v7476_v24  ;;  %4098 = vmatprep.subr.bf16.mxu1 %v7382_v13 }
 0x4b3   :  { %2200 = vmatpush1.bf16.msra.mxu0 %v7477_v30  ;;  %4099 = vmatpush3.bf16.msra.mxu1 %v5955_v62 }
 0x4b4   :  { %2201 = vmatprep.subr.bf16.mxu0 %v7478_v25  ;;  %4100 = vmatprep.subr.bf16.mxu1 %v7382_v13 }
 0x4b7   :  { %2202 = vmatpush1.bf16.msra.mxu0 %v7479_v8  ;;  %4101 = vmatpush3.bf16.msra.mxu1 %v5964_v51 }
 0x4b8   :  { %2203 = vmatprep.subr.bf16.mxu0 %v7480_v34  ;;  %4102 = vmatprep.subr.bf16.mxu1 %v7382_v13 }
 0x4bb   :  { %2204 = vmatpush1.bf16.msra.mxu0 %v5972_v43  ;;  %4103 = vmatpush3.bf16.msra.mxu1 %v5978_v60 }
 0x4bc   :  { %2291 = vmatprep.subr.bf16.mxu0 %v5984_v16  ;;  %4108 = vmatprep.subr.bf16.mxu1 %v7382_v13 }
 0x531   :  { %v1933_v46 = vpop.f32.mrb[44].mxu0  ;;  %v1974_v49 = vpop.f32.mrb[48].mxu1 }
 0x532   :  { %v1980_v50 = vadd.f32 %v1933_v46, %v7507_v52  ;;  %v1935_v55 = vpop.f32.mrb[45].mxu0  ;;  %v4046_v56 = vpop.f32.mrb[49].mxu1  ;;  %v1994_v8 = vadd.f32 %v5993_v9, %v1974_v49 }
 0x533   :  { %v1987_v54 = vadd.f32 %v1935_v55, %v7508_v39  ;;  %v1937_v48 = vpop.f32.mrb[46].mxu0  ;;  %v1977_v40 = vpop.f32.mrb[50].mxu1 }
 0x534   :  { %v3540_v12 = vmul.f32 -1.442695, %v1980_v50  ;;  %v1938_v15 = vpop.f32.mrb[47].mxu0  ;;  %v4047_v10 = vpop.f32.mrb[51].mxu1 }
 0x535   :  { %v3541_v17 = vmul.f32 -1.442695, %v1987_v54 }
 0x536   :  { %4589 = vpow2.f32 %v3540_v12 }
 0x537   :  { %4591 = vpow2.f32 %v3541_v17 }
 0x540   :  { %v4590_v24 = vpop.eup %4589 }
 0x541   :  { %v1984_v30 = vadd.f32 1.0, %v4590_v24  ;;  %v4592_v25 = vpop.eup %4591 }
 0x542   :  { %v1991_v5 = vadd.f32 1.0, %v4592_v25 }
 0x543   :  { %4593 = vrcp.f32 %v1984_v30 }
 0x54d   :  { %v4594_v34 = vpop.eup %4593 }
 0x54e   :  { %v1995_v44 = vmul.f32 %v4594_v34, %v1994_v8 }
 0x550   :  { %v1996_v4 = vadd.f32 %v1995_v44, %v7509_v58 }
 0x551   :  { %v6367_v29 = vpop.f32.mrb[52].mxu1 }
 0x552   :  { %4595 = vtanh.f32 %v1996_v4  ;;  %v4066_v46 = vpop.f32.mrb[53].mxu1 }
 0x553   :  { %v2079_v52 = vpop.f32.mrb[54].mxu1  ;;  %4597 = vrcp.f32 %v1991_v5  ;;  %v7510_v5 = vld [vmem:[#allocation3_spill] sm:$0xff]  ;;  %v7511_v46 = vld [vmem:[#allocation4_spill] sm:$0xff] }
 0x554   :  { %v4067_v50 = vpop.f32.mrb[55].mxu1  ;;  %v7512_v52 = vld [vmem:[#allocation6_spill] sm:$0xff] }
 0x555   :  { %v7513_v50 = vld [vmem:[#allocation31_spill] sm:$0xff] }
 0x55c   :  { %v4596_v55 = vpop.eup %4595 }
 0x55d   :  { %v1998_v56 = vsub.f32 %v6000_v36, %v4596_v55  ;;  %v4598_v39 = vpop.eup %4597 }
 0x55f   :  { %v1999_v54 = vmul.f32 %v4598_v39, %v1998_v56  ;;  %v7515_v56 = vld [vmem:[#allocation34_spill] sm:$0xff]  ;;  %v7516_v39 = vld [vmem:[#allocation35_spill] sm:$0xff] }
 0x561   :  { %v6370_v48 = vadd.f32 %v4596_v55, %v1999_v54  ;;  %v7514_v55 = vld [vmem:[#allocation33_spill] sm:$0xff]  ;;  %v7517_v54 = vld [vmem:[#allocation36_spill] sm:$0xff] }
 0x563   :  { %v2188_v49 = vpack.c.bf16 %v6370_v48, %v6370_v48 }
 0x565   :  { %2222 = vmatmul.mubr.bf16.vlgmr.msra.gmra.mrb[52].mxu0 %v2188_v49  ;;  %4105 = vmatmul.mubr.bf16.vlgmr.msra.gmra.mrb[60].mxu1 %v2188_v49 }
 0x566   :  { %2292 = vmatpush1.bf16.msra.mxu0 %v6011_v59  ;;  %4109 = vmatpush3.bf16.msra.mxu1 %v6017_v47 }
 0x567   :  { %2293 = vmatprep.subr.bf16.mxu0 %v6023_v1  ;;  %4110 = vmatprep.subr.bf16.mxu1 %v7382_v13 }
 0x568   :  { %2323 = vmatprep.mubr.bf16.mxu0 %v7383_v22  ;;  %4124 = vmatprep.mubr.msk.bf16.mxu1 %vm4829_vm0, %v7382_v13 }
 0x56a   :  { %2294 = vmatpush1.bf16.msra.mxu0 %v6033_v61  ;;  %4111 = vmatpush3.bf16.msra.mxu1 %v6039_v63 }
 0x56b   :  { %2295 = vmatprep.subr.bf16.mxu0 %v6045_v21  ;;  %4112 = vmatprep.subr.bf16.mxu1 %v7382_v13 }
 0x56e   :  { %2296 = vmatpush1.bf16.msra.mxu0 %v6052_v28  ;;  %4113 = vmatpush3.bf16.msra.mxu1 %v6058_v35 }
 0x56f   :  { %2297 = vmatprep.subr.bf16.mxu0 %v6064_v57  ;;  %4114 = vmatprep.subr.bf16.mxu1 %v7382_v13 }
 0x571   :  { %v2117_v36 = vpop.f32.mrb[48].mxu0  ;;  %v2158_v40 = vpop.f32.mrb[56].mxu1 }
 0x572   :  { %v4334_v12 = vadd.f32 %v2117_v36, %v5620_v37  ;;  %v2119_v15 = vpop.f32.mrb[49].mxu0  ;;  %v4086_v10 = vpop.f32.mrb[57].mxu1  ;;  %2298 = vmatpush1.bf16.msra.mxu0 %v6074_v3  ;;  %4115 = vmatpush3.bf16.msra.mxu1 %v6080_v14  ;;  %v7518_v36 = vld [vmem:[#allocation37_spill] sm:$0xff] }
 0x573   :  { %v2121_v17 = vpop.f32.mrb[50].mxu0  ;;  %v2161_v24 = vpop.f32.mrb[58].mxu1  ;;  %2299 = vmatprep.subr.bf16.mxu0 %v6086_v41  ;;  %4116 = vmatprep.subr.bf16.mxu1 %v7382_v13  ;;  %v4335_v34 = vadd.f32 %v2119_v15, %v5631_v19 }
 0x574   :  { %v3542_v30 = vmul.f32 -1.442695, %v4334_v12  ;;  %v2122_v25 = vpop.f32.mrb[51].mxu0  ;;  %v4087_v8 = vpop.f32.mrb[59].mxu1  ;;  %v6425_v12 = vld [vmem:[%s7210_s5 + $0x1] ss:$0 sm:$0xff]  ;;  %v2077_v17 = vadd.f32 %v6367_v29, %v5664_v38 }
 0x575   :  { %v3543_v44 = vmul.f32 -1.442695, %v4335_v34  ;;  %v2178_v15 = vadd.f32 %v6425_v12, %v2158_v40  ;;  %v7519_v8 = vld [vmem:[#allocation21_spill] sm:$0xff]  ;;  %v7520_v34 = vld [vmem:[#allocation38_spill] sm:$0xff]  ;;  %v7521_v40 = vld [vmem:[#allocation39_spill] sm:$0xff] }
 0x576   :  { %4599 = vpow2.f32 %v3542_v30  ;;  %2300 = vmatpush1.bf16.msra.mxu0 %v6093_v23  ;;  %4117 = vmatpush3.bf16.msra.mxu1 %v6099_v27  ;;  %v7522_v29 = vld [vmem:[#allocation40_spill] sm:$0xff] }
 0x577   :  { %2301 = vmatprep.subr.bf16.mxu0 %v6105_v7  ;;  %4118 = vmatprep.subr.bf16.mxu1 %v7382_v13  ;;  %4601 = vpow2.f32 %v3543_v44  ;;  %v7523_v44 = vld [vmem:[#allocation41_spill] sm:$0xff] }
 0x57a   :  { %2302 = vmatpush1.bf16.msra.mxu0 %v6113_v45  ;;  %4119 = vmatpush3.bf16.msra.mxu1 %v6119_v31 }
 0x57b   :  { %2303 = vmatprep.subr.bf16.mxu0 %v6125_v11  ;;  %4120 = vmatprep.subr.bf16.mxu1 %v7382_v13 }
 0x57e   :  { %2304 = vmatpush1.bf16.msra.mxu0 %v6132_v2  ;;  %4121 = vmatpush3.bf16.msra.mxu1 %v6138_v6 }
 0x57f   :  { %2305 = vmatprep.subr.bf16.mxu0 %v6144_v32  ;;  %4122 = vmatprep.subr.bf16.mxu1 %v7382_v13 }
 0x580   :  { %v4600_v58 = vpop.eup %4599 }
 0x581   :  { %v2168_v4 = vadd.f32 1.0, %v4600_v58  ;;  %v7524_v58 = vld [vmem:[#allocation42_spill] sm:$0xff] }
 0x582   :  { %2306 = vmatpush1.bf16.msra.mxu0 %v7510_v5  ;;  %4123 = vmatpush3.bf16.msra.mxu1 %v7511_v46 }
 0x583   :  { %4603 = vrcp.f32 %v2168_v4  ;;  %2373 = vmatprep.subr.bf16.mxu0 %v7512_v52  ;;  %4128 = vmatprep.subr.bf16.mxu1 %v7382_v13  ;;  %v7525_v4 = vld [vmem:[#allocation22_spill] sm:$0xff] }
 0x585   :  { %2324 = vmatmul.mubr.bf16.vlgmr.msra.gmra.mrb[56].mxu0 %v2188_v49  ;;  %4125 = vmatmul.mubr.bf16.vlgmr.msra.gmra.mrb[64].mxu1 %v2188_v49  ;;  %v4602_v49 = vpop.eup %4601 }
 0x586   :  { %2374 = vmatpush1.bf16.msra.mxu0 %v7513_v50  ;;  %4129 = vmatpush3.bf16.msra.mxu1 %v7514_v55  ;;  %v2175_v25 = vadd.f32 1.0, %v4602_v49  ;;  %v7526_v49 = vld [vmem:[#allocation23_spill] sm:$0xff] }
 0x587   :  { %2375 = vmatprep.subr.bf16.mxu0 %v7515_v56  ;;  %4130 = vmatprep.subr.bf16.mxu1 %v7382_v13 }
 0x588   :  { %2405 = vmatprep.mubr.bf16.mxu0 %v7383_v22  ;;  %4144 = vmatprep.mubr.msk.bf16.mxu1 %vm4829_vm0, %v7382_v13 }
 0x58a   :  { %2376 = vmatpush1.bf16.msra.mxu0 %v7516_v39  ;;  %4131 = vmatpush3.bf16.msra.mxu1 %v7517_v54 }
 0x58b   :  { %2377 = vmatprep.subr.bf16.mxu0 %v7518_v36  ;;  %4132 = vmatprep.subr.bf16.mxu1 %v7382_v13 }
 0x58d   :  { %v4604_v10 = vpop.eup %4603 }
 0x58e   :  { %v2179_v24 = vmul.f32 %v4604_v10, %v2178_v15  ;;  %2378 = vmatpush1.bf16.msra.mxu0 %v6217_v20  ;;  %4133 = vmatpush3.bf16.msra.mxu1 %v6223_v42  ;;  %v7527_v15 = vld [vmem:[#allocation24_spill] sm:$0xff] }
 0x58f   :  { %2379 = vmatprep.subr.bf16.mxu0 %v6229_v33  ;;  %4134 = vmatprep.subr.bf16.mxu1 %v7382_v13 }
 0x590   :  { %v2180_v30 = vadd.f32 %v2179_v24, %v2077_v17 }
 0x592   :  { %4605 = vtanh.f32 %v2180_v30  ;;  %2380 = vmatpush1.bf16.msra.mxu0 %v7519_v8  ;;  %4135 = vmatpush3.bf16.msra.mxu1 %v7520_v34  ;;  %v7528_v30 = vld [vmem:[#allocation25_spill] sm:$0xff] }
 0x593   :  { %2381 = vmatprep.subr.bf16.mxu0 %v7521_v40  ;;  %4136 = vmatprep.subr.bf16.mxu1 %v7382_v13  ;;  %4607 = vrcp.f32 %v2175_v25  ;;  %v7529_v25 = vld [vmem:[#allocation26_spill] sm:$0xff] }
 0x596   :  { %2382 = vmatpush1.bf16.msra.mxu0 %v7522_v29  ;;  %4137 = vmatpush3.bf16.msra.mxu1 %v7523_v44  ;;  %v7530_v44 = vld [vmem:[#allocation27_spill] sm:$0xff] }
 0x597   :  { %2383 = vmatprep.subr.bf16.mxu0 %v7524_v58  ;;  %4138 = vmatprep.subr.bf16.mxu1 %v7382_v13 }
 0x59a   :  { %2384 = vmatpush1.bf16.msra.mxu0 %v7525_v4  ;;  %4139 = vmatpush3.bf16.msra.mxu1 %v7526_v49 }
 0x59b   :  { %2385 = vmatprep.subr.bf16.mxu0 %v7527_v15  ;;  %4140 = vmatprep.subr.bf16.mxu1 %v7382_v13 }
 0x59c   :  { %v4606_v10 = vpop.eup %4605 }
 0x59d   :  { %v2182_v17 = vsub.f32 %v6310_v26, %v4606_v10  ;;  %v4608_v24 = vpop.eup %4607  ;;  %v6460_v26 = vld [vmem:[%s7207_s3 + $0x4] ss:$12 sps:$4 sm:$0xff]  }
 0x59e   :  { %2386 = vmatpush1.bf16.msra.mxu0 %v7528_v30  ;;  %4141 = vmatpush3.bf16.msra.mxu1 %v7529_v25  ;;  %7532 = vst [vmem:[#allocation32_spill] sm:$0xff] %v6460_v26 }
 0x59f   :  { %2387 = vmatprep.subr.bf16.mxu0 %v7530_v44  ;;  %4142 = vmatprep.subr.bf16.mxu1 %v7382_v13  ;;  %v2183_v58 = vmul.f32 %v4608_v24, %v2182_v17  ;;  %v6479_v17 = vld [vmem:[%s7207_s3 + $0x1c] ss:$12 sps:$4 sm:$0xff]   ;;  %v6495_v24 = vld [vmem:[%s7207_s3 + $0x20] ss:$12 sps:$4 sm:$0xff]  }
 0x5a0   :  { %7535 = vst [vmem:[#allocation45_spill] sm:$0xff] %v6479_v17  ;;  %7537 = vst [vmem:[#allocation47_spill] sm:$0xff] %v6495_v24 }
 0x5a1   :  { %v6451_v4 = vadd.f32 %v4606_v10, %v2183_v58  ;;  %v6467_v58 = vld [vmem:[%s7207_s3] ss:$12 sps:$4 sm:$0xff]   ;;  %v6473_v10 = vld [vmem:[%s7207_s3 + $0x8] ss:$12 sps:$4 sm:$0xff]  }
 0x5a2   :  { %2388 = vmatpush1.bf16.msra.mxu0 %v6315_v53  ;;  %4143 = vmatpush3.bf16.msra.mxu1 %v6321_v0  ;;  %7533 = vst [vmem:[#allocation43_spill] sm:$0xff] %v6467_v58  ;;  %7534 = vst [vmem:[#allocation44_spill] sm:$0xff] %v6473_v10 }
 0x5a3   :  { %7531 = vst [vmem:[#allocation30_spill] sm:$0xff] %v6451_v4  ;;  %v2372_v15 = vpack.c.bf16 %v6451_v4, %v6451_v4  ;;  %2479 = vmatprep.subr.bf16.mxu0 %v6460_v26  ;;  %4148 = vmatprep.subr.bf16.mxu1 %v7382_v13 }
 0x5a5   :  { %2406 = vmatmul.mubr.bf16.vlgmr.msra.gmra.mrb[56].mxu0 %v2372_v15  ;;  %4145 = vmatmul.mubr.bf16.vlgmr.msra.gmra.mrb[68].mxu1 %v2372_v15  ;;  %v6489_v15 = vld [vmem:[%s7207_s3 + $0x18] ss:$12 sps:$4 sm:$0xff]  }
 0x5a6   :  { %2480 = vmatpush1.bf16.msra.mxu0 %v6467_v58  ;;  %4149 = vmatpush3.bf16.msra.mxu1 %v6473_v10  ;;  %7536 = vst [vmem:[#allocation46_spill] sm:$0xff] %v6489_v15  ;;  %v7552_v58 = vld [vmem:[#allocation13_spill] sm:$0xff] }
 0x5a7   :  { %2481 = vmatprep.subr.bf16.mxu0 %v6479_v17  ;;  %4150 = vmatprep.subr.bf16.mxu1 %v7382_v13  ;;  %v6501_v17 = vld [vmem:[%s7207_s3 + $0x34] ss:$12 sps:$4 sm:$0xff]  }
 0x5a8   :  { %2511 = vmatprep.mubr.bf16.mxu0 %v7383_v22  ;;  %4164 = vmatprep.mubr.msk.bf16.mxu1 %vm4829_vm0, %v7382_v13  ;;  %7538 = vst [vmem:[#allocation48_spill] sm:$0xff] %v6501_v17 }
 0x5aa   :  { %2482 = vmatpush1.bf16.msra.mxu0 %v6489_v15  ;;  %4151 = vmatpush3.bf16.msra.mxu1 %v6495_v24  ;;  %v6508_v15 = vld [vmem:[%s7207_s3 + $0x30] ss:$12 sps:$4 sm:$0xff]   ;;  %v6514_v24 = vld [vmem:[%s7207_s3 + $0x38] ss:$12 sps:$4 sm:$0xff]  }
 0x5ab   :  { %2483 = vmatprep.subr.bf16.mxu0 %v6501_v17  ;;  %4152 = vmatprep.subr.bf16.mxu1 %v7382_v13  ;;  %7539 = vst [vmem:[#allocation49_spill] sm:$0xff] %v6508_v15  ;;  %7540 = vst [vmem:[#allocation50_spill] sm:$0xff] %v6514_v24  ;;  %v6520_v17 = vld [vmem:[%s7207_s3 + $0x4c] ss:$12 sps:$4 sm:$0xff]  }
 0x5ac   :  { %7541 = vst [vmem:[#allocation51_spill] sm:$0xff] %v6520_v17 }
 0x5ae   :  { %2484 = vmatpush1.bf16.msra.mxu0 %v6508_v15  ;;  %4153 = vmatpush3.bf16.msra.mxu1 %v6514_v24  ;;  %v6527_v15 = vld [vmem:[%s7207_s3 + $0x48] ss:$12 sps:$4 sm:$0xff]   ;;  %v6533_v24 = vld [vmem:[%s7207_s3 + $0x50] ss:$12 sps:$4 sm:$0xff]  }
 0x5af   :  { %2485 = vmatprep.subr.bf16.mxu0 %v6520_v17  ;;  %4154 = vmatprep.subr.bf16.mxu1 %v7382_v13  ;;  %7542 = vst [vmem:[#allocation5_spill] sm:$0xff] %v6527_v15  ;;  %7543 = vst [vmem:[#allocation7_spill] sm:$0xff] %v6533_v24  ;;  %v6539_v17 = vld [vmem:[%s7207_s3 + $0x64] ss:$12 sps:$4 sm:$0xff]  }
 0x5b0   :  { %7544 = vst [vmem:[#allocation8_spill] sm:$0xff] %v6539_v17 }
 0x5b2   :  { %2486 = vmatpush1.bf16.msra.mxu0 %v6527_v15  ;;  %4155 = vmatpush3.bf16.msra.mxu1 %v6533_v24  ;;  %v6546_v15 = vld [vmem:[%s7207_s3 + $0x60] ss:$12 sps:$4 sm:$0xff]   ;;  %v6553_v24 = vld [vmem:[%s7207_s3 + $0x7c] ss:$12 sps:$4 sm:$0xff]  }
 0x5b3   :  { %2487 = vmatprep.subr.bf16.mxu0 %v6539_v17  ;;  %4156 = vmatprep.subr.bf16.mxu1 %v7382_v13  ;;  %7545 = vst [vmem:[#allocation9_spill] sm:$0xff] %v6546_v15  ;;  %7546 = vst [vmem:[#allocation10_spill] sm:$0xff] %v6553_v24  ;;  %v6560_v17 = vld [vmem:[%s7207_s3 + $0x78] ss:$12 sps:$4 sm:$0xff]  }
 0x5b4   :  { %7547 = vst [vmem:[#allocation14_spill] sm:$0xff] %v6560_v17 }
 0x5b6   :  { %2488 = vmatpush1.bf16.msra.mxu0 %v6546_v15  ;;  %4157 = vmatpush3.bf16.msra.mxu1 %v5946_v18  ;;  %v6567_v18 = vld [vmem:[%s7207_s3 + $0x94] ss:$12 sps:$4 sm:$0xff]  }
 0x5b7   :  { %2489 = vmatprep.subr.bf16.mxu0 %v6553_v24  ;;  %4158 = vmatprep.subr.bf16.mxu1 %v7382_v13  ;;  %7548 = vst [vmem:[#allocation3_spill] sm:$0xff] %v6567_v18  ;;  %v6574_v24 = vld [vmem:[%s7207_s3 + $0x90] ss:$12 sps:$4 sm:$0xff]  }
 0x5b8   :  { %7549 = vst [vmem:[#allocation4_spill] sm:$0xff] %v6574_v24 }
 0x5ba   :  { %2490 = vmatpush1.bf16.msra.mxu0 %v6560_v17  ;;  %4159 = vmatpush3.bf16.msra.mxu1 %v5955_v62  ;;  %v6581_v62 = vld [vmem:[%s7207_s3 + $0xac] ss:$12 sps:$4 sm:$0xff]  }
 0x5bb   :  { %2491 = vmatprep.subr.bf16.mxu0 %v6567_v18  ;;  %4160 = vmatprep.subr.bf16.mxu1 %v7382_v13  ;;  %7550 = vst [vmem:[#allocation6_spill] sm:$0xff] %v6581_v62 }
 0x5be   :  { %2492 = vmatpush1.bf16.msra.mxu0 %v6574_v24  ;;  %4161 = vmatpush3.bf16.msra.mxu1 %v5964_v51  ;;  %v7551_v51 = vld [vmem:[#allocation11_spill] sm:$0xff] }
 0x5bf   :  { %2493 = vmatprep.subr.bf16.mxu0 %v6581_v62  ;;  %4162 = vmatprep.subr.bf16.mxu1 %v7382_v13 }
 0x5c2   :  { %2494 = vmatpush1.bf16.msra.mxu0 %v5972_v43  ;;  %4163 = vmatpush3.bf16.msra.mxu1 %v5978_v60 }
 0x5c3   :  { %2581 = vmatprep.subr.bf16.mxu0 %v5984_v16  ;;  %4168 = vmatprep.subr.bf16.mxu1 %v7382_v13 }
 0x638   :  { %v2223_v24 = vpop.f32.mrb[52].mxu0  ;;  %v2264_v18 = vpop.f32.mrb[60].mxu1 }
 0x639   :  { %v2270_v17 = vadd.f32 %v2223_v24, %v7551_v51  ;;  %v2225_v15 = vpop.f32.mrb[53].mxu0  ;;  %v4106_v10 = vpop.f32.mrb[61].mxu1  ;;  %v2284_v4 = vadd.f32 %v5993_v9, %v2264_v18  ;;  %v7553_v51 = vld [vmem:[#allocation16_spill] sm:$0xff]  ;;  %v7567_v18 = vld [vmem:[#allocation43_spill] sm:$0xff] }
 0x63a   :  { %v2277_v26 = vadd.f32 %v2225_v15, %v7552_v58  ;;  %v2227_v0 = vpop.f32.mrb[54].mxu0  ;;  %v2267_v62 = vpop.f32.mrb[62].mxu1 }
 0x63b   :  { %v3544_v53 = vmul.f32 -1.442695, %v2270_v17  ;;  %v2228_v44 = vpop.f32.mrb[55].mxu0  ;;  %v4107_v25 = vpop.f32.mrb[63].mxu1  ;;  %v7568_v62 = vld [vmem:[#allocation44_spill] sm:$0xff] }
 0x63c   :  { %v3545_v43 = vmul.f32 -1.442695, %v2277_v26 }
 0x63d   :  { %4609 = vpow2.f32 %v3544_v53 }
 0x63e   :  { %4611 = vpow2.f32 %v3545_v43  ;;  %v7569_v43 = vld [vmem:[#allocation45_spill] sm:$0xff] }
 0x647   :  { %v4610_v60 = vpop.eup %4609 }
 0x648   :  { %v2274_v30 = vadd.f32 1.0, %v4610_v60  ;;  %v4612_v16 = vpop.eup %4611  ;;  %v7570_v60 = vld [vmem:[#allocation46_spill] sm:$0xff] }
 0x649   :  { %v2281_v29 = vadd.f32 1.0, %v4612_v16  ;;  %v7571_v16 = vld [vmem:[#allocation47_spill] sm:$0xff] }
 0x64a   :  { %4613 = vrcp.f32 %v2274_v30 }
 0x654   :  { %v4614_v49 = vpop.eup %4613 }
 0x655   :  { %v2285_v24 = vmul.f32 %v4614_v49, %v2284_v4  ;;  %v7566_v49 = vld [vmem:[#allocation32_spill] sm:$0xff] }
 0x657   :  { %v2286_v10 = vadd.f32 %v2285_v24, %v7553_v51  ;;  %v7572_v24 = vld [vmem:[#allocation48_spill] sm:$0xff]  ;;  %v7573_v51 = vld [vmem:[#allocation49_spill] sm:$0xff] }
 0x658   :  { %v6593_v58 = vpop.f32.mrb[64].mxu1 }
 0x659   :  { %4615 = vtanh.f32 %v2286_v10  ;;  %v4126_v0 = vpop.f32.mrb[65].mxu1  ;;  %v7574_v10 = vld [vmem:[#allocation50_spill] sm:$0xff] }
 0x65a   :  { %v2369_v44 = vpop.f32.mrb[66].mxu1  ;;  %4617 = vrcp.f32 %v2281_v29  ;;  %v7565_v29 = vld [vmem:[#allocation29_spill] sm:$0xff] }
 0x65b   :  { %v4127_v53 = vpop.f32.mrb[67].mxu1  ;;  %v7576_v0 = vld [vmem:[#allocation5_spill] sm:$0xff]  ;;  %v7577_v44 = vld [vmem:[#allocation7_spill] sm:$0xff] }
 0x65c   :  { %v7578_v53 = vld [vmem:[#allocation8_spill] sm:$0xff] }
 0x663   :  { %v4616_v25 = vpop.eup %4615 }
 0x664   :  { %v2288_v26 = vsub.f32 %v6370_v48, %v4616_v25  ;;  %v4618_v17 = vpop.eup %4617 }
 0x666   :  { %v2289_v30 = vmul.f32 %v4618_v17, %v2288_v26  ;;  %v4772_v26 = vld [vmem:[%s7207_s3 + $0x68] ss:$12 sps:$4 sm:$0xff]   ;;  %v7580_v17 = vld [vmem:[#allocation10_spill] sm:$0xff] }
 0x668   :  { %v6596_v15 = vadd.f32 %v4616_v25, %v2289_v30  ;;  %v7579_v25 = vld [vmem:[#allocation9_spill] sm:$0xff]  ;;  %v7581_v30 = vld [vmem:[#allocation14_spill] sm:$0xff] }
 0x66a   :  { %v2478_v9 = vpack.c.bf16 %v6596_v15, %v6596_v15 }
 0x66c   :  { %2512 = vmatmul.mubr.bf16.vlgmr.msra.gmra.mrb[60].mxu0 %v2478_v9  ;;  %4165 = vmatmul.mubr.bf16.vlgmr.msra.gmra.mrb[72].mxu1 %v2478_v9 }
 0x66d   :  { %2582 = vmatpush1.bf16.msra.mxu0 %v6011_v59  ;;  %4169 = vmatpush3.bf16.msra.mxu1 %v6017_v47 }
 0x66e   :  { %2583 = vmatprep.subr.bf16.mxu0 %v6023_v1  ;;  %4170 = vmatprep.subr.bf16.mxu1 %v7382_v13 }
 0x66f   :  { %2613 = vmatprep.mubr.bf16.mxu0 %v7383_v22  ;;  %4184 = vmatprep.mubr.msk.bf16.mxu1 %vm4829_vm0, %v7382_v13 }
 0x671   :  { %2584 = vmatpush1.bf16.msra.mxu0 %v6033_v61  ;;  %4171 = vmatpush3.bf16.msra.mxu1 %v6039_v63 }
 0x672   :  { %2585 = vmatprep.subr.bf16.mxu0 %v6045_v21  ;;  %4172 = vmatprep.subr.bf16.mxu1 %v7382_v13 }
 0x675   :  { %2586 = vmatpush1.bf16.msra.mxu0 %v6052_v28  ;;  %4173 = vmatpush3.bf16.msra.mxu1 %v6058_v35 }
 0x676   :  { %2587 = vmatprep.subr.bf16.mxu0 %v6064_v57  ;;  %4174 = vmatprep.subr.bf16.mxu1 %v7382_v13 }
 0x678   :  { %v2407_v59 = vpop.f32.mrb[56].mxu0  ;;  %v2448_v47 = vpop.f32.mrb[68].mxu1 }
 0x679   :  { %v4336_v1 = vadd.f32 %v2407_v59, %v5620_v37  ;;  %v2409_v48 = vpop.f32.mrb[57].mxu0  ;;  %v4146_v61 = vpop.f32.mrb[69].mxu1  ;;  %2588 = vmatpush1.bf16.msra.mxu0 %v6074_v3  ;;  %4175 = vmatpush3.bf16.msra.mxu1 %v6080_v14  ;;  %v7582_v59 = vld [vmem:[#allocation3_spill] sm:$0xff] }
 0x67a   :  { %v2411_v63 = vpop.f32.mrb[58].mxu0  ;;  %v2451_v21 = vpop.f32.mrb[70].mxu1  ;;  %2589 = vmatprep.subr.bf16.mxu0 %v6086_v41  ;;  %4176 = vmatprep.subr.bf16.mxu1 %v7382_v13  ;;  %v4337_v3 = vadd.f32 %v2409_v48, %v5631_v19  ;;  %v7584_v48 = vld [vmem:[#allocation6_spill] sm:$0xff]  ;;  %v4775_v61 = vld [vmem:[%s7207_s3 + $0xa8] ss:$12 sps:$4 sm:$0xff]  }
 0x67b   :  { %v3546_v28 = vmul.f32 -1.442695, %v4336_v1  ;;  %v2412_v35 = vpop.f32.mrb[59].mxu0  ;;  %v4147_v57 = vpop.f32.mrb[71].mxu1  ;;  %v4774_v1 = vld [vmem:[%s7207_s3 + $0x98] ss:$12 sps:$4 sm:$0xff]  }
 0x67c   :  { %v3547_v14 = vmul.f32 -1.442695, %v4337_v3  ;;  %v4776_v63 = vld [vmem:[%s7207_s3 + $0xb0] ss:$12 sps:$4 sm:$0xff]  }
 0x67d   :  { %4619 = vpow2.f32 %v3546_v28  ;;  %2590 = vmatpush1.bf16.msra.mxu0 %v6093_v23  ;;  %4177 = vmatpush3.bf16.msra.mxu1 %v6099_v27  ;;  %v6726_v21 = vld [vmem:[%s7205_s2 + $0xc4] ss:$12 sps:$4 sm:$0xff]  }
 0x67e   :  { %2591 = vmatprep.subr.bf16.mxu0 %v6105_v7  ;;  %4178 = vmatprep.subr.bf16.mxu1 %v7382_v13  ;;  %4621 = vpow2.f32 %v3547_v14  ;;  %v2468_v7 = vadd.f32 %v6425_v12, %v2448_v47  ;;  %v7583_v47 = vld [vmem:[#allocation4_spill] sm:$0xff]  ;;  %v7585_v57 = vld [vmem:[#allocation17_spill] sm:$0xff] }
 0x681   :  { %2592 = vmatpush1.bf16.msra.mxu0 %v6113_v45  ;;  %4179 = vmatpush3.bf16.msra.mxu1 %v6119_v31  ;;  %v2367_v31 = vadd.f32 %v6593_v58, %v5664_v38  ;;  %v7575_v58 = vld [vmem:[#allocation51_spill] sm:$0xff] }
 0x682   :  { %2593 = vmatprep.subr.bf16.mxu0 %v6125_v11  ;;  %4180 = vmatprep.subr.bf16.mxu1 %v7382_v13 }
 0x685   :  { %2594 = vmatpush1.bf16.msra.mxu0 %v6132_v2  ;;  %4181 = vmatpush3.bf16.msra.mxu1 %v6138_v6 }
 0x686   :  { %2595 = vmatprep.subr.bf16.mxu0 %v6144_v32  ;;  %4182 = vmatprep.subr.bf16.mxu1 %v7382_v13  ;;  %v7554_v32 = vld [vmem:[#allocation40_spill] sm:$0xff] }
 0x687   :  { %v4620_v41 = vpop.eup %4619 }
 0x688   :  { %v2458_v23 = vadd.f32 1.0, %v4620_v41  ;;  %v4622_v27 = vpop.eup %4621 }
 0x689   :  { %2596 = vmatpush1.bf16.msra.mxu0 %v7510_v5  ;;  %4183 = vmatpush3.bf16.msra.mxu1 %v7511_v46  ;;  %v2465_v6 = vadd.f32 1.0, %v4622_v27  ;;  %v7558_v5 = vld [vmem:[#allocation23_spill] sm:$0xff]  ;;  %v7559_v46 = vld [vmem:[#allocation24_spill] sm:$0xff] }
 0x68a   :  { %4623 = vrcp.f32 %v2458_v23  ;;  %2663 = vmatprep.subr.bf16.mxu0 %v7512_v52  ;;  %4188 = vmatprep.subr.bf16.mxu1 %v7382_v13  ;;  %v7586_v23 = vld [vmem:[#allocation18_spill] sm:$0xff] }
 0x68c   :  { %2614 = vmatmul.mubr.bf16.vlgmr.msra.gmra.mrb[64].mxu0 %v2478_v9  ;;  %4185 = vmatmul.mubr.bf16.vlgmr.msra.gmra.mrb[76].mxu1 %v2478_v9  ;;  %v4773_v9 = vld [vmem:[%s7207_s3 + $0x80] ss:$12 sps:$4 sm:$0xff]  }
 0x68d   :  { %2664 = vmatpush1.bf16.msra.mxu0 %v7513_v50  ;;  %4189 = vmatpush3.bf16.msra.mxu1 %v7514_v55  ;;  %v7560_v50 = vld [vmem:[#allocation30_spill] sm:$0xff] }
 0x68e   :  { %2665 = vmatprep.subr.bf16.mxu0 %v7515_v56  ;;  %4190 = vmatprep.subr.bf16.mxu1 %v7382_v13 }
 0x68f   :  { %2695 = vmatprep.mubr.bf16.mxu0 %v7383_v22  ;;  %4204 = vmatprep.mubr.msk.bf16.mxu1 %vm4829_vm0, %v7382_v13 }
 0x691   :  { %2666 = vmatpush1.bf16.msra.mxu0 %v7516_v39  ;;  %4191 = vmatpush3.bf16.msra.mxu1 %v7517_v54  ;;  %v7561_v39 = vld [vmem:[#allocation25_spill] sm:$0xff]  ;;  %v7562_v54 = vld [vmem:[#allocation26_spill] sm:$0xff] }
 0x692   :  { %2667 = vmatprep.subr.bf16.mxu0 %v7518_v36  ;;  %4192 = vmatprep.subr.bf16.mxu1 %v7382_v13  ;;  %v7563_v36 = vld [vmem:[#allocation27_spill] sm:$0xff] }
 0x694   :  { %v4624_v45 = vpop.eup %4623 }
 0x695   :  { %v2469_v11 = vmul.f32 %v4624_v45, %v2468_v7  ;;  %2668 = vmatpush1.bf16.msra.mxu0 %v6217_v20  ;;  %4193 = vmatpush3.bf16.msra.mxu1 %v6223_v42  ;;  %v7555_v20 = vld [vmem:[#allocation41_spill] sm:$0xff]  ;;  %v7556_v42 = vld [vmem:[#allocation42_spill] sm:$0xff] }
 0x696   :  { %2669 = vmatprep.subr.bf16.mxu0 %v6229_v33  ;;  %4194 = vmatprep.subr.bf16.mxu1 %v7382_v13  ;;  %v7557_v33 = vld [vmem:[#allocation22_spill] sm:$0xff] }
 0x697   :  { %v2470_v2 = vadd.f32 %v2469_v11, %v2367_v31 }
 0x699   :  { %4625 = vtanh.f32 %v2470_v2  ;;  %2670 = vmatpush1.bf16.msra.mxu0 %v7519_v8  ;;  %4195 = vmatpush3.bf16.msra.mxu1 %v7520_v34 }
 0x69a   :  { %2671 = vmatprep.subr.bf16.mxu0 %v7521_v40  ;;  %4196 = vmatprep.subr.bf16.mxu1 %v7382_v13  ;;  %4627 = vrcp.f32 %v2465_v6  ;;  %v7564_v40 = vld [vmem:[#allocation28_spill] sm:$0xff] }
 0x69d   :  { %2672 = vmatpush1.bf16.msra.mxu0 %v7554_v32  ;;  %4197 = vmatpush3.bf16.msra.mxu1 %v7555_v20 }
 0x69e   :  { %2673 = vmatprep.subr.bf16.mxu0 %v7556_v42  ;;  %4198 = vmatprep.subr.bf16.mxu1 %v7382_v13 }
 0x6a1   :  { %2674 = vmatpush1.bf16.msra.mxu0 %v7557_v33  ;;  %4199 = vmatpush3.bf16.msra.mxu1 %v7558_v5  ;;  %v6735_v33 = vld [vmem:[%s7210_s5] ss:$0 sm:$0xff] }
 0x6a2   :  { %2675 = vmatprep.subr.bf16.mxu0 %v7559_v46  ;;  %4200 = vmatprep.subr.bf16.mxu1 %v7382_v13 }
 0x6a3   :  { %v4626_v52 = vpop.eup %4625 }
 0x6a4   :  { %v2472_v55 = vsub.f32 %v7560_v50, %v4626_v52  ;;  %v4628_v56 = vpop.eup %4627  ;;  %v7587_v50 = vld [vmem:[#allocation12_spill] sm:$0xff] }
 0x6a5   :  { %2676 = vmatpush1.bf16.msra.mxu0 %v7561_v39  ;;  %4201 = vmatpush3.bf16.msra.mxu1 %v7562_v54 }
 0x6a6   :  { %2677 = vmatprep.subr.bf16.mxu0 %v7563_v36  ;;  %4202 = vmatprep.subr.bf16.mxu1 %v7382_v13  ;;  %v2473_v8 = vmul.f32 %v4628_v56, %v2472_v55 }
 0x6a8   :  { %v6672_v34 = vadd.f32 %v4626_v52, %v2473_v8 }
 0x6a9   :  { %2678 = vmatpush1.bf16.msra.mxu0 %v7564_v40  ;;  %4203 = vmatpush3.bf16.msra.mxu1 %v7565_v29 }
 0x6aa   :  { %v2662_v4 = vpack.c.bf16 %v6672_v34, %v6672_v34  ;;  %2769 = vmatprep.subr.bf16.mxu0 %v7566_v49  ;;  %4208 = vmatprep.subr.bf16.mxu1 %v7382_v13 }
 0x6ac   :  { %2696 = vmatmul.mubr.bf16.vlgmr.msra.gmra.mrb[64].mxu0 %v2662_v4  ;;  %4205 = vmatmul.mubr.bf16.vlgmr.msra.gmra.mrb[80].mxu1 %v2662_v4 }
 0x6ad   :  { %2770 = vmatpush1.bf16.msra.mxu0 %v7567_v18  ;;  %4209 = vmatpush3.bf16.msra.mxu1 %v7568_v62 }
 0x6ae   :  { %2771 = vmatprep.subr.bf16.mxu0 %v7569_v43  ;;  %4210 = vmatprep.subr.bf16.mxu1 %v7382_v13  ;;  %v6753_v43 = vld [vmem:[%s7205_s2 + $0xc0] ss:$12 sps:$4 sm:$0xff]  }
 0x6af   :  { %2801 = vmatprep.mubr.bf16.mxu0 %v7383_v22  ;;  %4224 = vmatprep.mubr.msk.bf16.mxu1 %vm4829_vm0, %v7382_v13 }
 0x6b1   :  { %2772 = vmatpush1.bf16.msra.mxu0 %v7570_v60  ;;  %4211 = vmatpush3.bf16.msra.mxu1 %v7571_v16  ;;  %v6765_v60 = vld [vmem:[%s7205_s2 + $0xdc] ss:$12 sps:$4 sm:$0xff]   ;;  %v6775_v16 = vld [vmem:[%s7205_s2 + $0xd8] ss:$12 sps:$4 sm:$0xff]  }
 0x6b2   :  { %2773 = vmatprep.subr.bf16.mxu0 %v7572_v24  ;;  %4212 = vmatprep.subr.bf16.mxu1 %v7382_v13  ;;  %v6781_v24 = vld [vmem:[%s7205_s2 + $0xe0] ss:$12 sps:$4 sm:$0xff]  }
 0x6b5   :  { %2774 = vmatpush1.bf16.msra.mxu0 %v7573_v51  ;;  %4213 = vmatpush3.bf16.msra.mxu1 %v7574_v10  ;;  %v6787_v51 = vld [vmem:[%s7205_s2 + $0xf4] ss:$12 sps:$4 sm:$0xff]   ;;  %v6794_v10 = vld [vmem:[%s7205_s2 + $0xf0] ss:$12 sps:$4 sm:$0xff]  }
 0x6b6   :  { %2775 = vmatprep.subr.bf16.mxu0 %v7575_v58  ;;  %4214 = vmatprep.subr.bf16.mxu1 %v7382_v13  ;;  %v6800_v58 = vld [vmem:[%s7205_s2 + $0xf8] ss:$12 sps:$4 sm:$0xff]  }
 0x6b9   :  { %2776 = vmatpush1.bf16.msra.mxu0 %v7576_v0  ;;  %4215 = vmatpush3.bf16.msra.mxu1 %v7577_v44  ;;  %v6806_v0 = vld [vmem:[%s7205_s2 + $0x10c] ss:$12 sps:$4 sm:$0xff]  }
 0x6ba   :  { %2777 = vmatprep.subr.bf16.mxu0 %v7578_v53  ;;  %4216 = vmatprep.subr.bf16.mxu1 %v7382_v13 }
 0x6bd   :  { %2778 = vmatpush1.bf16.msra.mxu0 %v7579_v25  ;;  %4217 = vmatpush3.bf16.msra.mxu1 %v4772_v26 }
 0x6be   :  { %2779 = vmatprep.subr.bf16.mxu0 %v7580_v17  ;;  %4218 = vmatprep.subr.bf16.mxu1 %v7382_v13 }
 0x6c1   :  { %2780 = vmatpush1.bf16.msra.mxu0 %v7581_v30  ;;  %4219 = vmatpush3.bf16.msra.mxu1 %v4773_v9  ;;  %v6816_v30 = vld [vmem:[%s7205_s2 + $0x108] ss:$12 sps:$4 sm:$0xff]   ;;  %v6822_v9 = vld [vmem:[%s7205_s2 + $0x110] ss:$12 sps:$4 sm:$0xff]  }
 0x6c2   :  { %2781 = vmatprep.subr.bf16.mxu0 %v7582_v59  ;;  %4220 = vmatprep.subr.bf16.mxu1 %v7382_v13 }
 0x6c5   :  { %2782 = vmatpush1.bf16.msra.mxu0 %v7583_v47  ;;  %4221 = vmatpush3.bf16.msra.mxu1 %v4774_v1  ;;  %v6828_v1 = vld [vmem:[%s7205_s2 + $0x124] ss:$12 sps:$4 sm:$0xff]  }
 0x6c6   :  { %2783 = vmatprep.subr.bf16.mxu0 %v7584_v48  ;;  %4222 = vmatprep.subr.bf16.mxu1 %v7382_v13 }
 0x6c9   :  { %2784 = vmatpush1.bf16.msra.mxu0 %v4775_v61  ;;  %4223 = vmatpush3.bf16.msra.mxu1 %v4776_v63 }
 0x6ca   :  { %2871 = vmatprep.subr.bf16.mxu0 %v6726_v21  ;;  %4228 = vmatprep.subr.bf16.mxu1 %v7382_v13 }
 0x73f   :  { %v2513_v28 = vpop.f32.mrb[60].mxu0  ;;  %v2554_v35 = vpop.f32.mrb[72].mxu1 }
 0x740   :  { %v2560_v3 = vadd.f32 %v2513_v28, %v7585_v57  ;;  %v2515_v14 = vpop.f32.mrb[61].mxu0  ;;  %v4166_v41 = vpop.f32.mrb[73].mxu1  ;;  %v2574_v5 = vadd.f32 %v6735_v33, %v2554_v35  ;;  %v6835_v28 = vld [vmem:[%s7205_s2 + $0x120] ss:$12 sps:$4 sm:$0xff]   ;;  %v6841_v35 = vld [vmem:[%s7205_s2 + $0x128] ss:$12 sps:$4 sm:$0xff]  }
 0x741   :  { %v2567_v27 = vadd.f32 %v2515_v14, %v7586_v23  ;;  %v2517_v7 = vpop.f32.mrb[62].mxu0  ;;  %v2557_v45 = vpop.f32.mrb[74].mxu1  ;;  %v6847_v57 = vld [vmem:[%s7205_s2 + $0x13c] ss:$12 sps:$4 sm:$0xff]   ;;  %v6855_v14 = vld [vmem:[%s7205_s2 + $0x138] ss:$12 sps:$4 sm:$0xff]  }
 0x742   :  { %v3548_v31 = vmul.f32 -1.442695, %v2560_v3  ;;  %v2518_v11 = vpop.f32.mrb[63].mxu0  ;;  %v4167_v2 = vpop.f32.mrb[75].mxu1  ;;  %v6861_v41 = vld [vmem:[%s7205_s2 + $0x140] ss:$12 sps:$4 sm:$0xff]  }
 0x743   :  { %v3549_v6 = vmul.f32 -1.442695, %v2567_v27  ;;  %v6867_v23 = vld [vmem:[%s7205_s2 + $0x154] ss:$12 sps:$4 sm:$0xff]   ;;  %v6874_v7 = vld [vmem:[%s7205_s2 + $0x150] ss:$12 sps:$4 sm:$0xff]  }
 0x744   :  { %4629 = vpow2.f32 %v3548_v31  ;;  %v6880_v45 = vld [vmem:[%s7205_s2 + $0x158] ss:$12 sps:$4 sm:$0xff]  }
 0x745   :  { %4631 = vpow2.f32 %v3549_v6  ;;  %v6886_v31 = vld [vmem:[%s7205_s2 + $0x16c] ss:$12 sps:$4 sm:$0xff]   ;;  %v6893_v6 = vld [vmem:[%s7205_s2 + $0x168] ss:$12 sps:$4 sm:$0xff]  }
 0x74e   :  { %v4630_v32 = vpop.eup %4629 }
 0x74f   :  { %v2564_v20 = vadd.f32 1.0, %v4630_v32  ;;  %v4632_v42 = vpop.eup %4631  ;;  %v6899_v32 = vld [vmem:[%s7205_s2 + $0x170] ss:$12 sps:$4 sm:$0xff]  }
 0x750   :  { %v2571_v56 = vadd.f32 1.0, %v4632_v42  ;;  %v6914_v42 = vld [vmem:[%s7207_s3 + $0xc0] ss:$12 sps:$4 sm:$0xff]  }
 0x751   :  { %4633 = vrcp.f32 %v2564_v20  ;;  %v6905_v20 = vld [vmem:[%s7207_s3 + $0xc4] ss:$12 sps:$4 sm:$0xff]  }
 0x75b   :  { %v4634_v46 = vpop.eup %4633 }
 0x75c   :  { %v2575_v52 = vmul.f32 %v4634_v46, %v2574_v5  ;;  %v6920_v5 = vld [vmem:[%s7207_s3 + $0xc8] ss:$12 sps:$4 sm:$0xff]  }
 0x75d   :  { %v6926_v46 = vld [vmem:[%s7207_s3 + $0xdc] ss:$12 sps:$4 sm:$0xff]  }
 0x75e   :  { %v2576_v55 = vadd.f32 %v2575_v52, %v7587_v50  ;;  %v6936_v52 = vld [vmem:[%s7207_s3 + $0xd8] ss:$12 sps:$4 sm:$0xff]   ;;  %v6942_v50 = vld [vmem:[%s7207_s3 + $0xe0] ss:$12 sps:$4 sm:$0xff]  }
 0x75f   :  { %v6739_v39 = vpop.f32.mrb[76].mxu1 }
 0x760   :  { %4635 = vtanh.f32 %v2576_v55  ;;  %v4186_v54 = vpop.f32.mrb[77].mxu1  ;;  %v6948_v55 = vld [vmem:[%s7207_s3 + $0xf4] ss:$12 sps:$4 sm:$0xff]  }
 0x761   :  { %v2659_v36 = vpop.f32.mrb[78].mxu1  ;;  %4637 = vrcp.f32 %v2571_v56 }
 0x762   :  { %v4187_v8 = vpop.f32.mrb[79].mxu1 }
 0x763   :  { %v2657_v8 = vadd.f32 %v6739_v39, %v5664_v38 }
 0x76a   :  { %v4636_v40 = vpop.eup %4635 }
 0x76b   :  { %v2578_v29 = vsub.f32 %v6596_v15, %v4636_v40  ;;  %v4638_v4 = vpop.eup %4637  ;;  %v6759_v15 = vld [vmem:[%s7205_s2 + $0xc8] ss:$12 sps:$4 sm:$0xff]  }
 0x76d   :  { %v2579_v49 = vmul.f32 %v4638_v4, %v2578_v29  ;;  %v6959_v29 = vld [vmem:[%s7207_s3 + $0xf0] ss:$12 sps:$4 sm:$0xff]   ;;  %v6965_v4 = vld [vmem:[%s7207_s3 + $0xf8] ss:$12 sps:$4 sm:$0xff]  }
 0x76f   :  { %v6742_v18 = vadd.f32 %v4636_v40, %v2579_v49 }
 0x771   :  { %v6746_v62 = vpack.c.bf16 %v6742_v18, %v6742_v18 }
 0x773   :  { %2802 = vmatmul.mubr.bf16.vlgmr.msra.gmra.mrb[68].mxu0 %v6746_v62  ;;  %4225 = vmatmul.mubr.bf16.vlgmr.msra.gmra.mrb[84].mxu1 %v6746_v62 }
 0x774   :  { %2872 = vmatpush1.bf16.msra.mxu0 %v6753_v43  ;;  %4229 = vmatpush3.bf16.msra.mxu1 %v6759_v15 }
 0x775   :  { %2873 = vmatprep.subr.bf16.mxu0 %v6765_v60  ;;  %4230 = vmatprep.subr.bf16.mxu1 %v7382_v13 }
 0x776   :  { %2903 = vmatprep.mubr.bf16.mxu0 %v7383_v22  ;;  %4244 = vmatprep.mubr.msk.bf16.mxu1 %vm4829_vm0, %v7382_v13 }
 0x778   :  { %2874 = vmatpush1.bf16.msra.mxu0 %v6775_v16  ;;  %4231 = vmatpush3.bf16.msra.mxu1 %v6781_v24 }
 0x779   :  { %2875 = vmatprep.subr.bf16.mxu0 %v6787_v51  ;;  %4232 = vmatprep.subr.bf16.mxu1 %v7382_v13 }
 0x77c   :  { %2876 = vmatpush1.bf16.msra.mxu0 %v6794_v10  ;;  %4233 = vmatpush3.bf16.msra.mxu1 %v6800_v58 }
 0x77d   :  { %2877 = vmatprep.subr.bf16.mxu0 %v6806_v0  ;;  %4234 = vmatprep.subr.bf16.mxu1 %v7382_v13 }
 0x77f   :  { %v2697_v44 = vpop.f32.mrb[64].mxu0  ;;  %v6810_v53 = vpop.f32.mrb[80].mxu1 }
 0x780   :  { %v4338_v25 = vadd.f32 %v2697_v44, %v5620_v37  ;;  %v2699_v26 = vpop.f32.mrb[65].mxu0  ;;  %v4206_v17 = vpop.f32.mrb[81].mxu1  ;;  %2878 = vmatpush1.bf16.msra.mxu0 %v6816_v30  ;;  %4235 = vmatpush3.bf16.msra.mxu1 %v6822_v9  ;;  %v2758_v54 = vadd.f32 %v6425_v12, %v6810_v53  ;;  %v6971_v12 = vld [vmem:[%s7207_s3 + $0x10c] ss:$12 sps:$4 sm:$0xff]   ;;  %v6984_v44 = vld [vmem:[%s7207_s3 + $0x110] ss:$12 sps:$4 sm:$0xff]  }
 0x781   :  { %v2701_v59 = vpop.f32.mrb[66].mxu0  ;;  %v2741_v47 = vpop.f32.mrb[82].mxu1  ;;  %2879 = vmatprep.subr.bf16.mxu0 %v6828_v1  ;;  %4236 = vmatprep.subr.bf16.mxu1 %v7382_v13  ;;  %v4339_v3 = vadd.f32 %v2699_v26, %v5631_v19  ;;  %v6990_v53 = vld [vmem:[%s7207_s3 + $0x124] ss:$12 sps:$4 sm:$0xff]   ;;  %v7003_v26 = vld [vmem:[%s7207_s3 + $0x128] ss:$12 sps:$4 sm:$0xff]  }
 0x782   :  { %v3550_v48 = vmul.f32 -1.442695, %v4338_v25  ;;  %v2702_v61 = vpop.f32.mrb[67].mxu0  ;;  %v4207_v63 = vpop.f32.mrb[83].mxu1  ;;  %v6997_v25 = vld [vmem:[%s7207_s3 + $0x120] ss:$12 sps:$4 sm:$0xff]  }
 0x783   :  { %v3551_v27 = vmul.f32 -1.442695, %v4339_v3  ;;  %v7009_v17 = vld [vmem:[%s7207_s3 + $0x13c] ss:$12 sps:$4 sm:$0xff]   ;;  %v7016_v59 = vld [vmem:[%s7207_s3 + $0x138] ss:$12 sps:$4 sm:$0xff]  }
 0x784   :  { %4639 = vpow2.f32 %v3550_v48  ;;  %2880 = vmatpush1.bf16.msra.mxu0 %v6835_v28  ;;  %4237 = vmatpush3.bf16.msra.mxu1 %v6841_v35  ;;  %v7022_v47 = vld [vmem:[%s7207_s3 + $0x140] ss:$12 sps:$4 sm:$0xff]  }
 0x785   :  { %2881 = vmatprep.subr.bf16.mxu0 %v6847_v57  ;;  %4238 = vmatprep.subr.bf16.mxu1 %v7382_v13  ;;  %4641 = vpow2.f32 %v3551_v27  ;;  %v7028_v48 = vld [vmem:[%s7207_s3 + $0x154] ss:$12 sps:$4 sm:$0xff]   ;;  %v7036_v27 = vld [vmem:[%s7207_s3 + $0x150] ss:$12 sps:$4 sm:$0xff]  }
 0x788   :  { %2882 = vmatpush1.bf16.msra.mxu0 %v6855_v14  ;;  %4239 = vmatpush3.bf16.msra.mxu1 %v6861_v41 }
 0x789   :  { %2883 = vmatprep.subr.bf16.mxu0 %v6867_v23  ;;  %4240 = vmatprep.subr.bf16.mxu1 %v7382_v13 }
 0x78c   :  { %2884 = vmatpush1.bf16.msra.mxu0 %v6874_v7  ;;  %4241 = vmatpush3.bf16.msra.mxu1 %v6880_v45 }
 0x78d   :  { %2885 = vmatprep.subr.bf16.mxu0 %v6886_v31  ;;  %4242 = vmatprep.subr.bf16.mxu1 %v7382_v13 }
 0x78e   :  { %v4640_v11 = vpop.eup %4639 }
 0x78f   :  { %v2748_v2 = vadd.f32 1.0, %v4640_v11  ;;  %v4642_v56 = vpop.eup %4641  ;;  %v7042_v11 = vld [vmem:[%s7207_s3 + $0x158] ss:$12 sps:$4 sm:$0xff]  }
 0x790   :  { %2886 = vmatpush1.bf16.msra.mxu0 %v6893_v6  ;;  %4243 = vmatpush3.bf16.msra.mxu1 %v6899_v32  ;;  %v2755_v49 = vadd.f32 1.0, %v4642_v56 }
 0x791   :  { %4643 = vrcp.f32 %v2748_v2  ;;  %2953 = vmatprep.subr.bf16.mxu0 %v6905_v20  ;;  %4248 = vmatprep.subr.bf16.mxu1 %v7382_v13  ;;  %v7048_v2 = vld [vmem:[%s7207_s3 + $0x16c] ss:$12 sps:$4 sm:$0xff]  }
 0x793   :  { %2904 = vmatmul.mubr.bf16.vlgmr.msra.gmra.mrb[72].mxu0 %v6746_v62  ;;  %4245 = vmatmul.mubr.bf16.vlgmr.msra.gmra.mrb[88].mxu1 %v6746_v62  ;;  %v6978_v62 = vld [vmem:[%s7207_s3 + $0x108] ss:$12 sps:$4 sm:$0xff]  }
 0x794   :  { %2954 = vmatpush1.bf16.msra.mxu0 %v6914_v42  ;;  %4249 = vmatpush3.bf16.msra.mxu1 %v6920_v5 }
 0x795   :  { %2955 = vmatprep.subr.bf16.mxu0 %v6926_v46  ;;  %4250 = vmatprep.subr.bf16.mxu1 %v7382_v13 }
 0x796   :  { %2985 = vmatprep.mubr.bf16.mxu0 %v7383_v22  ;;  %4264 = vmatprep.mubr.msk.bf16.mxu1 %vm4829_vm0, %v7382_v13 }
 0x798   :  { %2956 = vmatpush1.bf16.msra.mxu0 %v6936_v52  ;;  %4251 = vmatpush3.bf16.msra.mxu1 %v6942_v50 }
 0x799   :  { %2957 = vmatprep.subr.bf16.mxu0 %v6948_v55  ;;  %4252 = vmatprep.subr.bf16.mxu1 %v7382_v13 }
 0x79b   :  { %v4644_v36 = vpop.eup %4643 }
 0x79c   :  { %v2759_v40 = vmul.f32 %v4644_v36, %v2758_v54  ;;  %2958 = vmatpush1.bf16.msra.mxu0 %v6959_v29  ;;  %4253 = vmatpush3.bf16.msra.mxu1 %v6965_v4  ;;  %v7057_v54 = vld [vmem:[%s7207_s3 + $0x168] ss:$12 sps:$4 sm:$0xff]   ;;  %v7063_v36 = vld [vmem:[%s7207_s3 + $0x170] ss:$12 sps:$4 sm:$0xff]  }
 0x79d   :  { %2959 = vmatprep.subr.bf16.mxu0 %v6971_v12  ;;  %4254 = vmatprep.subr.bf16.mxu1 %v7382_v13 }
 0x79e   :  { %v2760_v39 = vadd.f32 %v2759_v40, %v2657_v8 }
 0x7a0   :  { %4645 = vtanh.f32 %v2760_v39  ;;  %2960 = vmatpush1.bf16.msra.mxu0 %v6978_v62  ;;  %4255 = vmatpush3.bf16.msra.mxu1 %v6984_v44 }
 0x7a1   :  { %2961 = vmatprep.subr.bf16.mxu0 %v6990_v53  ;;  %4256 = vmatprep.subr.bf16.mxu1 %v7382_v13  ;;  %4647 = vrcp.f32 %v2755_v49 }
 0x7a4   :  { %2962 = vmatpush1.bf16.msra.mxu0 %v6997_v25  ;;  %4257 = vmatpush3.bf16.msra.mxu1 %v7003_v26 }
 0x7a5   :  { %2963 = vmatprep.subr.bf16.mxu0 %v7009_v17  ;;  %4258 = vmatprep.subr.bf16.mxu1 %v7382_v13 }
 0x7a8   :  { %2964 = vmatpush1.bf16.msra.mxu0 %v7016_v59  ;;  %4259 = vmatpush3.bf16.msra.mxu1 %v7022_v47 }
 0x7a9   :  { %2965 = vmatprep.subr.bf16.mxu0 %v7028_v48  ;;  %4260 = vmatprep.subr.bf16.mxu1 %v7382_v13 }
 0x7aa   :  { %v4646_v61 = vpop.eup %4645 }
 0x7ab   :  { %v2762_v63 = vsub.f32 %v6672_v34, %v4646_v61  ;;  %v4648_v3 = vpop.eup %4647 }
 0x7ac   :  { %2966 = vmatpush1.bf16.msra.mxu0 %v7036_v27  ;;  %4261 = vmatpush3.bf16.msra.mxu1 %v7042_v11 }
 0x7ad   :  { %2967 = vmatprep.subr.bf16.mxu0 %v7048_v2  ;;  %4262 = vmatprep.subr.bf16.mxu1 %v7382_v13  ;;  %v2763_v34 = vmul.f32 %v4648_v3, %v2762_v63 }
 0x7af   :  { %v7052_v56 = vadd.f32 %v4646_v61, %v2763_v34 }
 0x7b0   :  { %2968 = vmatpush1.bf16.msra.mxu0 %v7057_v54  ;;  %4263 = vmatpush3.bf16.msra.mxu1 %v7063_v36 }
 0x7b1   :  { %v2952_v8 = vpack.c.bf16 %v7052_v56, %v7052_v56  ;;  %3056 = vmatprep.subr.bf16.mxu0 %v6726_v21  ;;  %4268 = vmatprep.subr.bf16.mxu1 %v7382_v13 }
 0x7b3   :  { %2986 = vmatmul.mubr.bf16.vlgmr.msra.gmra.mrb[72].mxu0 %v2952_v8  ;;  %4265 = vmatmul.mubr.bf16.vlgmr.msra.gmra.mrb[92].mxu1 %v2952_v8 }
 0x7b4   :  { %3057 = vmatpush1.bf16.msra.mxu0 %v6753_v43  ;;  %4269 = vmatpush3.bf16.msra.mxu1 %v6759_v15  ;;  %v7588_v15 = vld [vmem:[#allocation19_spill] sm:$0xff] }
 0x7b5   :  { %3058 = vmatprep.subr.bf16.mxu0 %v6765_v60  ;;  %4270 = vmatprep.subr.bf16.mxu1 %v7382_v13 }
 0x7b6   :  { %3088 = vmatprep.mubr.bf16.mxu0 %v7383_v22  ;;  %4284 = vmatprep.mubr.msk.bf16.mxu1 %vm4829_vm0, %v7382_v13 }
 0x7b8   :  { %3059 = vmatpush1.bf16.msra.mxu0 %v6775_v16  ;;  %4271 = vmatpush3.bf16.msra.mxu1 %v6781_v24 }
 0x7b9   :  { %3060 = vmatprep.subr.bf16.mxu0 %v6787_v51  ;;  %4272 = vmatprep.subr.bf16.mxu1 %v7382_v13  ;;  %v7589_v51 = vld [vmem:[#allocation20_spill] sm:$0xff] }
 0x7bc   :  { %3061 = vmatpush1.bf16.msra.mxu0 %v6794_v10  ;;  %4273 = vmatpush3.bf16.msra.mxu1 %v6800_v58 }
 0x7bd   :  { %3062 = vmatprep.subr.bf16.mxu0 %v6806_v0  ;;  %4274 = vmatprep.subr.bf16.mxu1 %v7382_v13 }
 0x7c0   :  { %3063 = vmatpush1.bf16.msra.mxu0 %v6816_v30  ;;  %4275 = vmatpush3.bf16.msra.mxu1 %v6822_v9 }
 0x7c1   :  { %3064 = vmatprep.subr.bf16.mxu0 %v6828_v1  ;;  %4276 = vmatprep.subr.bf16.mxu1 %v7382_v13 }
 0x7c4   :  { %3065 = vmatpush1.bf16.msra.mxu0 %v6835_v28  ;;  %4277 = vmatpush3.bf16.msra.mxu1 %v6841_v35 }
 0x7c5   :  { %3066 = vmatprep.subr.bf16.mxu0 %v6847_v57  ;;  %4278 = vmatprep.subr.bf16.mxu1 %v7382_v13 }
 0x7c8   :  { %3067 = vmatpush1.bf16.msra.mxu0 %v6855_v14  ;;  %4279 = vmatpush3.bf16.msra.mxu1 %v6861_v41 }
 0x7c9   :  { %3068 = vmatprep.subr.bf16.mxu0 %v6867_v23  ;;  %4280 = vmatprep.subr.bf16.mxu1 %v7382_v13 }
 0x7cc   :  { %3069 = vmatpush1.bf16.msra.mxu0 %v6874_v7  ;;  %4281 = vmatpush3.bf16.msra.mxu1 %v6880_v45  ;;  %v7590_v45 = vld [vmem:[#allocation15_spill] sm:$0xff] }
 0x7cd   :  { %3070 = vmatprep.subr.bf16.mxu0 %v6886_v31  ;;  %4282 = vmatprep.subr.bf16.mxu1 %v7382_v13 }
 0x7d0   :  { %3071 = vmatpush1.bf16.msra.mxu0 %v6893_v6  ;;  %4283 = vmatpush3.bf16.msra.mxu1 %v6899_v32 }
 0x7d1   :  { %3138 = vmatprep.subr.bf16.mxu0 %v6905_v20  ;;  %4288 = vmatprep.subr.bf16.mxu1 %v7382_v13 }
 0x846   :  { %v2803_v21 = vpop.f32.mrb[68].mxu0  ;;  %v2844_v43 = vpop.f32.mrb[84].mxu1 }
 0x847   :  { %v2850_v60 = vadd.f32 %v2803_v21, %v7588_v15  ;;  %v2805_v16 = vpop.f32.mrb[69].mxu0  ;;  %v4226_v24 = vpop.f32.mrb[85].mxu1  ;;  %v2864_v41 = vadd.f32 %v6735_v33, %v2844_v43  ;;  %v4511_v15 = vld [vmem:[%s7211_s6] sm:$0xff]  }
 0x848   :  { %v2857_v10 = vadd.f32 %v2805_v16, %v7589_v51  ;;  %v2807_v58 = vpop.f32.mrb[70].mxu0  ;;  %v2847_v0 = vpop.f32.mrb[86].mxu1  ;;  %v4514_v16 = vld [vmem:[%s7211_s6 + $0x18] sm:$0xff]   ;;  %v4515_v24 = vld [vmem:[%s7211_s6 + $0x20] sm:$0xff]   ;;  %v4516_v51 = vld [vmem:[%s7211_s6 + $0x28] sm:$0xff]  }
 0x849   :  { %v3552_v30 = vmul.f32 -1.442695, %v2850_v60  ;;  %v2808_v9 = vpop.f32.mrb[71].mxu0  ;;  %v4227_v1 = vpop.f32.mrb[87].mxu1  ;;  %v4513_v60 = vld [vmem:[%s7211_s6 + $0x10] sm:$0xff]   ;;  %v4518_v58 = vld [vmem:[%s7211_s6 + $0x38] sm:$0xff]  }
 0x84a   :  { %v3553_v28 = vmul.f32 -1.442695, %v2857_v10  ;;  %v4517_v10 = vld [vmem:[%s7211_s6 + $0x30] sm:$0xff]  }
 0x84b   :  { %4649 = vpow2.f32 %v3552_v30 }
 0x84c   :  { %4651 = vpow2.f32 %v3553_v28 }
 0x855   :  { %v4650_v35 = vpop.eup %4649 }
 0x856   :  { %v2854_v57 = vadd.f32 1.0, %v4650_v35  ;;  %v4652_v14 = vpop.eup %4651 }
 0x857   :  { %v2861_v6 = vadd.f32 1.0, %v4652_v14 }
 0x858   :  { %4653 = vrcp.f32 %v2854_v57 }
 0x862   :  { %v4654_v23 = vpop.eup %4653 }
 0x863   :  { %v2865_v7 = vmul.f32 %v4654_v23, %v2864_v41 }
 0x865   :  { %v2866_v31 = vadd.f32 %v2865_v7, %v7590_v45 }
 0x866   :  { %v7109_v32 = vpop.f32.mrb[88].mxu1 }
 0x867   :  { %4655 = vtanh.f32 %v2866_v31  ;;  %v4246_v20 = vpop.f32.mrb[89].mxu1 }
 0x868   :  { %v2949_v40 = vpop.f32.mrb[90].mxu1  ;;  %4657 = vrcp.f32 %v2861_v6 }
 0x869   :  { %v4247_v39 = vpop.f32.mrb[91].mxu1 }
 0x871   :  { %v4656_v49 = vpop.eup %4655 }
 0x872   :  { %v2868_v61 = vsub.f32 %v6742_v18, %v4656_v49  ;;  %v4658_v63 = vpop.eup %4657 }
 0x874   :  { %v2869_v3 = vmul.f32 %v4658_v63, %v2868_v61 }
 0x876   :  { %v2870_v34 = vadd.f32 %v4656_v49, %v2869_v3 }
 0x878   :  { %v3055_v8 = vpack.c.bf16 %v2870_v34, %v2870_v34 }
 0x87a   :  { %3089 = vmatmul.mubr.bf16.vlgmr.msra.gmra.mrb[76].mxu0 %v3055_v8  ;;  %4285 = vmatmul.mubr.bf16.vlgmr.msra.gmra.mrb[96].mxu1 %v3055_v8 }
 0x87b   :  { %3139 = vmatpush1.bf16.msra.mxu0 %v6914_v42  ;;  %4289 = vmatpush3.bf16.msra.mxu1 %v6920_v5 }
 0x87c   :  { %3140 = vmatprep.subr.bf16.mxu0 %v6926_v46  ;;  %4290 = vmatprep.subr.bf16.mxu1 %v7382_v13 }
 0x87d   :  { %3170 = vmatprep.mubr.bf16.mxu0 %v7383_v22  ;;  %4304 = vmatprep.mubr.msk.bf16.mxu1 %vm4829_vm0, %v7382_v13 }
 0x87f   :  { %3141 = vmatpush1.bf16.msra.mxu0 %v6936_v52  ;;  %4291 = vmatpush3.bf16.msra.mxu1 %v6942_v50 }
 0x880   :  { %3142 = vmatprep.subr.bf16.mxu0 %v6948_v55  ;;  %4292 = vmatprep.subr.bf16.mxu1 %v7382_v13 }
 0x883   :  { %3143 = vmatpush1.bf16.msra.mxu0 %v6959_v29  ;;  %4293 = vmatpush3.bf16.msra.mxu1 %v6965_v4 }
 0x884   :  { %3144 = vmatprep.subr.bf16.mxu0 %v6971_v12  ;;  %4294 = vmatprep.subr.bf16.mxu1 %v7382_v13 }
 0x886   :  { %v2987_v22 = vpop.f32.mrb[72].mxu0  ;;  %v3028_v33 = vpop.f32.mrb[92].mxu1 }
 0x887   :  { %v4340_v18 = vadd.f32 %v2987_v22, %v5620_v37  ;;  %v2989_v42 = vpop.f32.mrb[73].mxu0  ;;  %v4266_v5 = vpop.f32.mrb[93].mxu1  ;;  %3145 = vmatpush1.bf16.msra.mxu0 %v6978_v62  ;;  %4295 = vmatpush3.bf16.msra.mxu1 %v6984_v44 }
 0x888   :  { %v2991_v46 = vpop.f32.mrb[74].mxu0  ;;  %v3031_v52 = vpop.f32.mrb[94].mxu1  ;;  %3146 = vmatprep.subr.bf16.mxu0 %v6990_v53  ;;  %4296 = vmatprep.subr.bf16.mxu1 %v7382_v13  ;;  %v4341_v4 = vadd.f32 %v2989_v42, %v5631_v19  ;;  %v3558_v5 = vld [vmem:[%s7212_s7] ss:$0 sm:$0xff] }
 0x889   :  { %v3554_v50 = vmul.f32 -1.442695, %v4340_v18  ;;  %v2992_v55 = vpop.f32.mrb[75].mxu0  ;;  %v4267_v29 = vpop.f32.mrb[95].mxu1 }
 0x88a   :  { %v3555_v12 = vmul.f32 -1.442695, %v4341_v4 }
 0x88b   :  { %4659 = vpow2.f32 %v3554_v50  ;;  %3147 = vmatpush1.bf16.msra.mxu0 %v6997_v25  ;;  %4297 = vmatpush3.bf16.msra.mxu1 %v7003_v26  ;;  %v7151_v25 = vld [vmem:[%s7210_s5 + $0x1] ss:$0 sm:$0xff] }
 0x88c   :  { %3148 = vmatprep.subr.bf16.mxu0 %v7009_v17  ;;  %4298 = vmatprep.subr.bf16.mxu1 %v7382_v13  ;;  %4661 = vpow2.f32 %v3555_v12  ;;  %v3048_v26 = vadd.f32 %v7151_v25, %v3028_v33 }
 0x88f   :  { %3149 = vmatpush1.bf16.msra.mxu0 %v7016_v59  ;;  %4299 = vmatpush3.bf16.msra.mxu1 %v7022_v47  ;;  %v2947_v59 = vadd.f32 %v7109_v32, %v5664_v38 }
 0x890   :  { %3150 = vmatprep.subr.bf16.mxu0 %v7028_v48  ;;  %4300 = vmatprep.subr.bf16.mxu1 %v7382_v13 }
 0x893   :  { %3151 = vmatpush1.bf16.msra.mxu0 %v7036_v27  ;;  %4301 = vmatpush3.bf16.msra.mxu1 %v7042_v11 }
 0x894   :  { %3152 = vmatprep.subr.bf16.mxu0 %v7048_v2  ;;  %4302 = vmatprep.subr.bf16.mxu1 %v7382_v13 }
 0x895   :  { %v4660_v62 = vpop.eup %4659 }
 0x896   :  { %v3038_v44 = vadd.f32 1.0, %v4660_v62  ;;  %v4662_v53 = vpop.eup %4661 }
 0x897   :  { %3153 = vmatpush1.bf16.msra.mxu0 %v7057_v54  ;;  %4303 = vmatpush3.bf16.msra.mxu1 %v7063_v36  ;;  %v3045_v27 = vadd.f32 1.0, %v4662_v53 }
 0x898   :  { %4663 = vrcp.f32 %v3038_v44  ;;  %4308 = vmatprep.subr.bf16.mxu0 %v7382_v13 }
 0x8a2   :  { %v4664_v17 = vpop.eup %4663 }
 0x8a3   :  { %v3049_v47 = vmul.f32 %v4664_v17, %v3048_v26 }
 0x8a5   :  { %v3050_v48 = vadd.f32 %v3049_v47, %v2947_v59 }
 0x8a7   :  { %4665 = vtanh.f32 %v3050_v48 }
 0x8a8   :  { %4667 = vrcp.f32 %v3045_v27 }
 0x8b1   :  { %v4666_v11 = vpop.eup %4665 }
 0x8b2   :  { %v3052_v2 = vsub.f32 %v7052_v56, %v4666_v11  ;;  %v4668_v54 = vpop.eup %4667  ;;  %v4512_v56 = vld [vmem:[%s7211_s6 + $0x8] sm:$0xff]  }
 0x8b4   :  { %v3053_v36 = vmul.f32 %v4668_v54, %v3052_v2 }
 0x8b6   :  { %v7157_v21 = vadd.f32 %v4666_v11, %v3053_v36 }
 0x8b8   :  { %v3137_v43 = vpack.c.bf16 %v7157_v21, %v7157_v21 }
 0x8ba   :  { %3171 = vmatmul.mubr.bf16.vlgmr.msra.gmra.mrb[76].mxu0 %v3137_v43  ;;  %4305 = vmatmul.mubr.bf16.vlgmr.msra.gmra.mrb[100].mxu1 %v3137_v43 }
 0x8bb   :  { %4324 = vmatprep.mubr.msk.bf16.mxu0 %vm4829_vm0, %v7382_v13  ;;  %4309 = vmatpush3.bf16.msra.mxu0 %v4511_v15 }
 0x8bc   :  { %4310 = vmatprep.subr.bf16.mxu0 %v7382_v13 }
 0x8bf   :  { %4311 = vmatpush3.bf16.msra.mxu0 %v4512_v56 }
 0x8c0   :  { %4312 = vmatprep.subr.bf16.mxu0 %v7382_v13 }
 0x8c3   :  { %4313 = vmatpush3.bf16.msra.mxu0 %v4513_v60 }
 0x8c4   :  { %4314 = vmatprep.subr.bf16.mxu0 %v7382_v13 }
 0x8c7   :  { %4315 = vmatpush3.bf16.msra.mxu0 %v4514_v16 }
 0x8c8   :  { %4316 = vmatprep.subr.bf16.mxu0 %v7382_v13 }
 0x8cb   :  { %4317 = vmatpush3.bf16.msra.mxu0 %v4515_v24 }
 0x8cc   :  { %4318 = vmatprep.subr.bf16.mxu0 %v7382_v13 }
 0x8cf   :  { %4319 = vmatpush3.bf16.msra.mxu0 %v4516_v51 }
 0x8d0   :  { %4320 = vmatprep.subr.bf16.mxu0 %v7382_v13 }
 0x8d3   :  { %4321 = vmatpush3.bf16.msra.mxu0 %v4517_v10 }
 0x8d4   :  { %4322 = vmatprep.subr.bf16.mxu0 %v7382_v13 }
 0x8d7   :  { %4323 = vmatpush3.bf16.msra.mxu0 %v4518_v58 }
 0x94d   :  { %v3131_v0 = vpop.f32.mrb[96].mxu1 }
 0x94e   :  { %v4286_v30 = vpop.f32.mrb[97].mxu1 }
 0x94f   :  { %v3134_v9 = vpop.f32.mrb[98].mxu1 }
 0x950   :  { %v4287_v1 = vpop.f32.mrb[99].mxu1 }
 0x98d   :  { %v3172_v28 = vpop.f32.mrb[76].mxu0  ;;  %v3213_v35 = vpop.f32.mrb[100].mxu1 }
 0x98e   :  { %v4342_v57 = vadd.f32 %v3172_v28, %v5620_v37  ;;  %v3174_v14 = vpop.f32.mrb[77].mxu0  ;;  %v4306_v41 = vpop.f32.mrb[101].mxu1  ;;  %v3233_v49 = vadd.f32 %v7151_v25, %v3213_v35  ;;  %v3132_v37 = vadd.f32 %v3131_v0, %v5664_v38 }
 0x98f   :  { %v3176_v23 = vpop.f32.mrb[78].mxu0  ;;  %v3216_v7 = vpop.f32.mrb[102].mxu1  ;;  %v4343_v32 = vadd.f32 %v3174_v14, %v5631_v19 }
 0x990   :  { %v3556_v45 = vmul.f32 -1.442695, %v4342_v57  ;;  %v3177_v31 = vpop.f32.mrb[79].mxu0  ;;  %v4307_v6 = vpop.f32.mrb[103].mxu1 }
 0x991   :  { %v3557_v13 = vmul.f32 -1.442695, %v4343_v32 }
 0x992   :  { %4669 = vpow2.f32 %v3556_v45 }
 0x993   :  { %4671 = vpow2.f32 %v3557_v13 }
 0x99c   :  { %v4670_v20 = vpop.eup %4669 }
 0x99d   :  { %v3223_v40 = vadd.f32 1.0, %v4670_v20  ;;  %v4672_v39 = vpop.eup %4671 }
 0x99e   :  { %v3230_v34 = vadd.f32 1.0, %v4672_v39 }
 0x99f   :  { %4673 = vrcp.f32 %v3223_v40 }
 0x9a9   :  { %v4674_v61 = vpop.eup %4673 }
 0x9aa   :  { %v3234_v63 = vmul.f32 %v4674_v61, %v3233_v49 }
 0x9ac   :  { %v3235_v3 = vadd.f32 %v3234_v63, %v3132_v37 }
 0x9ae   :  { %4675 = vtanh.f32 %v3235_v3 }
 0x9af   :  { %4677 = vrcp.f32 %v3230_v34 }
 0x9b8   :  { %v4676_v8 = vpop.eup %4675 }
 0x9b9   :  { %v3237_v22 = vsub.f32 %v7157_v21, %v4676_v8  ;;  %v4678_v19 = vpop.eup %4677 }
 0x9bb   :  { %v3238_v33 = vmul.f32 %v4678_v19, %v3237_v22 }
 0x9bd   :  { %v3239_v18 = vadd.f32 %v4676_v8, %v3238_v33 }
 0x9bf   :  { %v3240_v42 = vpack.c.bf16 %v3239_v18, %v3239_v18 }
 0x9c1   :  { %4325 = vmatmul.mubr.bf16.vlgmr.msra.gmra.mrb[80].mxu0 %v3240_v42 }
 0xa94   :  { %v3346_v46 = vpop.f32.mrb[80].mxu0 }
 0xa95   :  { %v3347_v52 = vadd.f32 %v3558_v5, %v3346_v46  ;;  %v4326_v38 = vpop.f32.mrb[81].mxu0 }
 0xa96   :  { %v3349_v50 = vpop.f32.mrb[82].mxu0 }
 0xa97   :  { %3352 = vst [vmem:[%s7213_s8] sm:$0xff] %v3347_v52  ;;  %v4327_v55 = vpop.f32.mrb[83].mxu0 }

</bundles_post_ra>
